<compile_context>
chip_gen: v6e
topology: v6e:2x2x1
jax: 0.10.0
libtpu: 0.0.40
codegen_flags: <defaults>
</compile_context>

<pallas_src>
import functools

import jax
import jax.numpy as jnp
import numpy as np
from jax.experimental import pallas as pl
from jax.experimental.pallas import tpu as pltpu

EPS = 1e-5


def _bn_relu(y, gamma, beta, inv_m):
    """Training-mode BatchNorm1d (biased var) + ReLU on (M, C) rows.

    Single-pass stats: var = E[y^2] - mean^2, clamped at 0 so f32 cancellation
    can never push rsqrt's argument below 0 (review correctness concern)."""
    mean = jnp.sum(y, axis=0, keepdims=True) * inv_m
    ex2 = jnp.sum(y * y, axis=0, keepdims=True) * inv_m
    var = jnp.maximum(ex2 - mean * mean, 0.0)
    yn = (y - mean) * jax.lax.rsqrt(var + EPS)
    return jnp.maximum(yn * gamma + beta, 0.0)


def encoder_kernel(x_ref,
                   w1_ref, b1_ref, g1_ref, be1_ref,
                   w2_ref, b2_ref, g2_ref, be2_ref,
                   w3_ref, b3_ref, g3_ref, be3_ref,
                   w4a_hbm, w4b_hbm, b4_hbm, w5_hbm, b5_hbm,
                   out_ref,
                   # scratch
                   w4a_v, w4b_v, b4_v, w5_v, b5_v, dma_sems,
                   h1_v, h3_v, gmax_v, gm_v,
                   *, B, N):
    M = B * N
    inv_m = 1.0 / M
    bf16 = jnp.bfloat16

    # ---- kick off late-layer weight DMAs; they hide under the conv/BN phase ----
    w4a_cp = pltpu.make_async_copy(w4a_hbm, w4a_v, dma_sems.at[0])
    w4b_cp = pltpu.make_async_copy(w4b_hbm, w4b_v, dma_sems.at[1])
    b4_cp = pltpu.make_async_copy(b4_hbm, b4_v, dma_sems.at[2])
    w5_cp = pltpu.make_async_copy(w5_hbm, w5_v, dma_sems.at[3])
    b5_cp = pltpu.make_async_copy(b5_hbm, b5_v, dma_sems.at[4])
    w4a_cp.start(); w4b_cp.start(); b4_cp.start(); w5_cp.start(); b5_cp.start()

    x = x_ref[...]                                     # (M, 4) f32, flattened in wrapper

    # ---- conv1 / bn1 / relu1 : single K=4 dot (MXU pads K; frees VPU/XLU slots) ----
    h1 = _bn_relu(
        jnp.dot(x, w1_ref[...], preferred_element_type=jnp.float32) + b1_ref[...],
        g1_ref[...], be1_ref[...], inv_m)                                     # (M, 64)
    h1_b16 = h1.astype(bf16)
    h1_v[...] = h1_b16                                 # local_feature_1, reused per batch

    # ---- conv2 / bn2 / relu2 ----
    h2 = _bn_relu(
        jnp.dot(h1_b16, w2_ref[...], preferred_element_type=jnp.float32) + b2_ref[...],
        g2_ref[...], be2_ref[...], inv_m)                                     # (M, 128)

    # ---- conv3 / bn3 / relu3 (written straight to scratch; only gmax needs it) ----
    h3_v[...] = _bn_relu(
        jnp.dot(h2.astype(bf16), w3_ref[...],
                preferred_element_type=jnp.float32) + b3_ref[...],
        g3_ref[...], be3_ref[...], inv_m)                                     # (M, 256)

    # ---- per-batch global max over points (pl.ds row slices, no 3-D reshapes) ----
    @pl.loop(0, B)
    def _(b):
        rows = pl.ds(pl.multiple_of(b * N, N), N)
        gmax_v[pl.ds(b, 1), :] = jnp.max(h3_v[rows, :], axis=0, keepdims=True)

    # ---- fc1 global branch computed once per batch (rows identical within a batch) ----
    w4b_cp.wait()
    b4_cp.wait()
    gm_v[...] = jnp.dot(gmax_v[...].astype(bf16), w4b_v[...],
                        preferred_element_type=jnp.float32) + b4_v[...]       # (B, 512)

    # ---- row-tiled epilogue: fc1-local + global add + ReLU + fc2 + ReLU + max ----
    w4a_cp.wait()
    w5_cp.wait()
    b5_cp.wait()

    @pl.loop(0, B)
    def _(b):
        rows = pl.ds(pl.multiple_of(b * N, N), N)
        f1 = jnp.maximum(
            jnp.dot(h1_v[rows, :], w4a_v[...], preferred_element_type=jnp.float32)
            + gm_v[pl.ds(b, 1), :], 0.0)                                      # (N, 512)
        f2 = jnp.maximum(
            jnp.dot(f1.astype(bf16), w5_v[...], preferred_element_type=jnp.float32)
            + b5_v[...], 0.0)                                                 # (N, 512)
        out_ref[pl.ds(b, 1), :] = jnp.max(f2, axis=0, keepdims=True)          # (1, 512)


def _vmem_limit_bytes():
    # ~75% of physical per-core VMEM; never the full 64 MiB of a v7x core.
    try:
        cap = int(pltpu.get_tpu_info().vmem_capacity_bytes)
        return (cap * 3) // 4
    except Exception:
        return 48 * 1024 * 1024


def encoder_forward(x, params):
    B, N, Cin = x.shape
    M = B * N
    x_flat = x.reshape(M, Cin)                         # free metadata reshape in JAX land
    args = (x_flat,) + tuple(params)                   # 18 arrays

    matmul_flops = 2 * M * (4 * 64 + 64 * 128 + 128 * 256 + 64 * 512 + 512 * 512) \
        + 2 * B * 256 * 512
    elementwise_flops = 8 * M * (64 + 128 + 256) + 4 * M * 512 + 4 * M * 512
    flops = matmul_flops + elementwise_flops
    transcendentals = 64 + 128 + 256                   # per-channel rsqrt in the 3 BNs
    bytes_accessed = sum(int(np.prod(a.shape)) * a.dtype.itemsize for a in args) \
        + B * 512 * 4

    # x + conv1-3 weights/biases/BN params are auto-DMA'd into VMEM; the 5
    # late-layer tensors stay in HBM (pl.ANY) and are copied manually in-kernel.
    in_specs = ([pl.BlockSpec(memory_space=pltpu.MemorySpace.VMEM)] * 13
                + [pl.BlockSpec(memory_space=pl.ANY)] * 5)

    scratch_shapes = [
        pltpu.VMEM((64, 512), jnp.bfloat16),           # w4a
        pltpu.VMEM((256, 512), jnp.bfloat16),          # w4b
        pltpu.VMEM((1, 512), jnp.float32),             # b4
        pltpu.VMEM((512, 512), jnp.bfloat16),          # w5
        pltpu.VMEM((1, 512), jnp.float32),             # b5
        pltpu.SemaphoreType.DMA((5,)),                 # one sem per weight DMA
        pltpu.VMEM((M, 64), jnp.bfloat16),             # h1 (local_feature_1)
        pltpu.VMEM((M, 256), jnp.float32),             # h3 (feeds per-batch max only)
        pltpu.VMEM((B, 256), jnp.float32),             # gmax
        pltpu.VMEM((B, 512), jnp.float32),             # gm = gmax @ w4b + b4
    ]

    kern = functools.partial(encoder_kernel, B=B, N=N)
    out2d = pl.pallas_call(
        kern,
        out_shape=jax.ShapeDtypeStruct((B, 512), jnp.float32),
        in_specs=in_specs,
        out_specs=pl.BlockSpec(memory_space=pltpu.MemorySpace.VMEM),
        scratch_shapes=scratch_shapes,
        compiler_params=pltpu.CompilerParams(vmem_limit_bytes=_vmem_limit_bytes()),
        cost_estimate=pl.CostEstimate(flops=flops, transcendentals=transcendentals,
                                      bytes_accessed=bytes_accessed),
    )(*args)
    return out2d.reshape(B, 1, 512)


def init_params(key):
    """Deterministic parameter init (shapes from Encoder.__init__).
    Linear weights are stored pre-transposed as (in, out); large weights are
    shipped to the kernel as bf16 (MXU operands), biases/BN params stay f32."""
    ks = jax.random.split(key, 16)

    def lin(kw, kb, fin, fout):
        bound = 1.0 / np.sqrt(fin)
        w = jax.random.uniform(kw, (fin, fout), jnp.float32, -bound, bound)
        b = jax.random.uniform(kb, (1, fout), jnp.float32, -bound, bound)
        return w, b

    w1, b1 = lin(ks[0], ks[1], 4, 64)
    w2, b2 = lin(ks[2], ks[3], 64, 128)
    w3, b3 = lin(ks[4], ks[5], 128, 256)
    w4, b4 = lin(ks[6], ks[7], 64 + 256, 512)
    w5, b5 = lin(ks[8], ks[9], 512, 512)

    # BatchNorm affine params (deterministic, non-trivial to exercise the math)
    g1 = (1.0 + 0.1 * jax.random.normal(ks[10], (1, 64))).astype(jnp.float32)
    be1 = (0.1 * jax.random.normal(ks[11], (1, 64))).astype(jnp.float32)
    g2 = (1.0 + 0.1 * jax.random.normal(ks[12], (1, 128))).astype(jnp.float32)
    be2 = (0.1 * jax.random.normal(ks[13], (1, 128))).astype(jnp.float32)
    g3 = (1.0 + 0.1 * jax.random.normal(ks[14], (1, 256))).astype(jnp.float32)
    be3 = (0.1 * jax.random.normal(ks[15], (1, 256))).astype(jnp.float32)

    # split fc1 weight at the concat boundary (rows 0:64 -> local_feature_1,
    # rows 64:320 -> global_feature) so the kernel never materializes the concat.
    w4a, w4b = w4[:64], w4[64:]

    bf = lambda a: a.astype(jnp.bfloat16)
    return (w1, b1, g1, be1,                 # layer 1 stays f32
            bf(w2), b2, g2, be2,
            bf(w3), b3, g3, be3,
            bf(w4a), bf(w4b), b4,
            bf(w5), b5)


def encoder_reference(x, params):
    """Pure-JAX f32 reference mirroring the PyTorch forward (training-mode BN).
    Uses the bf16-rounded weights (cast back to f32) so the comparison only
    measures activation rounding inside the kernel."""
    (w1, b1, g1, be1, w2, b2, g2, be2, w3, b3, g3, be3,
     w4a, w4b, b4, w5, b5) = params
    f32 = lambda a: a.astype(jnp.float32)

    def bn_relu(y, g, be):
        m = jnp.mean(y, axis=(0, 1), keepdims=True)
        v = jnp.mean((y - m) ** 2, axis=(0, 1), keepdims=True)
        return jnp.maximum((y - m) / jnp.sqrt(v + EPS) * g + be, 0.0)

    B, N, _ = x.shape
    h1 = bn_relu(x @ w1 + b1, g1, be1)                       # (B, N, 64) local_feature_1
    h2 = bn_relu(h1 @ f32(w2) + b2, g2, be2)                 # (B, N, 128)
    h3 = bn_relu(h2 @ f32(w3) + b3, g3, be3)                 # (B, N, 256)
    gmax = jnp.max(h3, axis=1, keepdims=True)                # (B, 1, 256)
    gfeat = jnp.broadcast_to(gmax, (B, N, 256))
    feature = jnp.concatenate([h1, gfeat], axis=-1)          # (B, N, 320)
    w4 = jnp.concatenate([f32(w4a), f32(w4b)], axis=0)
    f1 = jnp.maximum(feature @ w4 + b4, 0.0)
    f2 = jnp.maximum(f1 @ f32(w5) + b5, 0.0)
    return jnp.max(f2, axis=1, keepdims=True)                # (B, 1, 512)


if __name__ == "__main__":
    # Encoder(num_patches=32, num_points_per_patch=128); input (B, N, 4)
    B, N = 2, 128
    key = jax.random.PRNGKey(0)
    kx, kp = jax.random.split(key)
    x = jax.random.normal(kx, (B, N, 4), dtype=jnp.float32)
    params = init_params(kp)

    out = jax.block_until_ready(encoder_forward(x, params))
    ref = jax.block_until_ready(encoder_reference(x, params))

    assert out.shape == (B, 1, 512), out.shape
    # bf16 MXU operands (f32 accumulation) -> loosened tolerance vs f32 reference
    np.testing.assert_allclose(np.asarray(out), np.asarray(ref), rtol=3e-2, atol=3e-2)

    print("KERNEL_OK")
</pallas_src>

<mosaic_0001>
module attributes {stable_mosaic.version = 11 : i64} {
  func.func @encoder_kernel(%arg0: memref<256x4xf32, #tpu.memory_space<vmem>>, %arg1: memref<4x64xf32, #tpu.memory_space<vmem>>, %arg2: memref<1x64xf32, #tpu.memory_space<vmem>>, %arg3: memref<1x64xf32, #tpu.memory_space<vmem>>, %arg4: memref<1x64xf32, #tpu.memory_space<vmem>>, %arg5: memref<64x128xbf16, #tpu.memory_space<vmem>>, %arg6: memref<1x128xf32, #tpu.memory_space<vmem>>, %arg7: memref<1x128xf32, #tpu.memory_space<vmem>>, %arg8: memref<1x128xf32, #tpu.memory_space<vmem>>, %arg9: memref<128x256xbf16, #tpu.memory_space<vmem>>, %arg10: memref<1x256xf32, #tpu.memory_space<vmem>>, %arg11: memref<1x256xf32, #tpu.memory_space<vmem>>, %arg12: memref<1x256xf32, #tpu.memory_space<vmem>>, %arg13: memref<64x512xbf16, #tpu.memory_space<any>>, %arg14: memref<256x512xbf16, #tpu.memory_space<any>>, %arg15: memref<1x512xf32, #tpu.memory_space<any>>, %arg16: memref<512x512xbf16, #tpu.memory_space<any>>, %arg17: memref<1x512xf32, #tpu.memory_space<any>>, %arg18: memref<2x512xf32, #tpu.memory_space<vmem>>, %arg19: memref<64x512xbf16, #tpu.memory_space<vmem>>, %arg20: memref<256x512xbf16, #tpu.memory_space<vmem>>, %arg21: memref<1x512xf32, #tpu.memory_space<vmem>>, %arg22: memref<512x512xbf16, #tpu.memory_space<vmem>>, %arg23: memref<1x512xf32, #tpu.memory_space<vmem>>, %arg24: memref<5x!tpu.dma_semaphore, #tpu.memory_space<semaphore_mem>>, %arg25: memref<256x64xbf16, #tpu.memory_space<vmem>>, %arg26: memref<256x256xf32, #tpu.memory_space<vmem>>, %arg27: memref<2x256xf32, #tpu.memory_space<vmem>>, %arg28: memref<2x512xf32, #tpu.memory_space<vmem>>) attributes {dimension_semantics = [], scalar_prefetch = 0 : i64, scratch_operands = 10 : i64, tpu.core_type = #tpu.core_type<tc>} {
    %c0_i32 = arith.constant 0 : i32
    %0 = tpu.memref_slice %arg24[%c0_i32] : memref<5x!tpu.dma_semaphore, #tpu.memory_space<semaphore_mem>> -> memref<1x!tpu.dma_semaphore, #tpu.memory_space<semaphore_mem>>
    %1 = tpu.memref_squeeze %0 : memref<1x!tpu.dma_semaphore, #tpu.memory_space<semaphore_mem>> -> memref<!tpu.dma_semaphore, #tpu.memory_space<semaphore_mem>>
    tpu.enqueue_dma source(%arg13 : memref<64x512xbf16, #tpu.memory_space<any>>) target(%arg19 : memref<64x512xbf16, #tpu.memory_space<vmem>>) target_semaphore(%1 : memref<!tpu.dma_semaphore, #tpu.memory_space<semaphore_mem>>)
    %c1_i32 = arith.constant 1 : i32
    %2 = tpu.memref_slice %arg24[%c1_i32] : memref<5x!tpu.dma_semaphore, #tpu.memory_space<semaphore_mem>> -> memref<1x!tpu.dma_semaphore, #tpu.memory_space<semaphore_mem>>
    %3 = tpu.memref_squeeze %2 : memref<1x!tpu.dma_semaphore, #tpu.memory_space<semaphore_mem>> -> memref<!tpu.dma_semaphore, #tpu.memory_space<semaphore_mem>>
    tpu.enqueue_dma source(%arg14 : memref<256x512xbf16, #tpu.memory_space<any>>) target(%arg20 : memref<256x512xbf16, #tpu.memory_space<vmem>>) target_semaphore(%3 : memref<!tpu.dma_semaphore, #tpu.memory_space<semaphore_mem>>)
    %c2_i32 = arith.constant 2 : i32
    %4 = tpu.memref_slice %arg24[%c2_i32] : memref<5x!tpu.dma_semaphore, #tpu.memory_space<semaphore_mem>> -> memref<1x!tpu.dma_semaphore, #tpu.memory_space<semaphore_mem>>
    %5 = tpu.memref_squeeze %4 : memref<1x!tpu.dma_semaphore, #tpu.memory_space<semaphore_mem>> -> memref<!tpu.dma_semaphore, #tpu.memory_space<semaphore_mem>>
    tpu.enqueue_dma source(%arg15 : memref<1x512xf32, #tpu.memory_space<any>>) target(%arg21 : memref<1x512xf32, #tpu.memory_space<vmem>>) target_semaphore(%5 : memref<!tpu.dma_semaphore, #tpu.memory_space<semaphore_mem>>)
    %c3_i32 = arith.constant 3 : i32
    %6 = tpu.memref_slice %arg24[%c3_i32] : memref<5x!tpu.dma_semaphore, #tpu.memory_space<semaphore_mem>> -> memref<1x!tpu.dma_semaphore, #tpu.memory_space<semaphore_mem>>
    %7 = tpu.memref_squeeze %6 : memref<1x!tpu.dma_semaphore, #tpu.memory_space<semaphore_mem>> -> memref<!tpu.dma_semaphore, #tpu.memory_space<semaphore_mem>>
    tpu.enqueue_dma source(%arg16 : memref<512x512xbf16, #tpu.memory_space<any>>) target(%arg22 : memref<512x512xbf16, #tpu.memory_space<vmem>>) target_semaphore(%7 : memref<!tpu.dma_semaphore, #tpu.memory_space<semaphore_mem>>)
    %c4_i32 = arith.constant 4 : i32
    %8 = tpu.memref_slice %arg24[%c4_i32] : memref<5x!tpu.dma_semaphore, #tpu.memory_space<semaphore_mem>> -> memref<1x!tpu.dma_semaphore, #tpu.memory_space<semaphore_mem>>
    %9 = tpu.memref_squeeze %8 : memref<1x!tpu.dma_semaphore, #tpu.memory_space<semaphore_mem>> -> memref<!tpu.dma_semaphore, #tpu.memory_space<semaphore_mem>>
    tpu.enqueue_dma source(%arg17 : memref<1x512xf32, #tpu.memory_space<any>>) target(%arg23 : memref<1x512xf32, #tpu.memory_space<vmem>>) target_semaphore(%9 : memref<!tpu.dma_semaphore, #tpu.memory_space<semaphore_mem>>)
    %c0 = arith.constant 0 : index
    %c0_0 = arith.constant 0 : index
    %10 = vector.load %arg0[%c0, %c0_0] : memref<256x4xf32, #tpu.memory_space<vmem>>, vector<256x4xf32>
    %c0_1 = arith.constant 0 : index
    %c0_2 = arith.constant 0 : index
    %11 = vector.load %arg1[%c0_1, %c0_2] : memref<4x64xf32, #tpu.memory_space<vmem>>, vector<4x64xf32>
    %cst = arith.constant dense<0.000000e+00> : vector<256x64xf32>
    %12 = tpu.matmul %10, %11, %cst {dimension_numbers = #tpu.dot_dimension_numbers<[1], [0], [0], [1], [0, 0, 1, 1], [], []>} : vector<256x4xf32>, vector<4x64xf32>, vector<256x64xf32> -> vector<256x64xf32>
    %c0_3 = arith.constant 0 : index
    %c0_4 = arith.constant 0 : index
    %13 = vector.load %arg2[%c0_3, %c0_4] : memref<1x64xf32, #tpu.memory_space<vmem>>, vector<1x64xf32>
    %14 = vector.broadcast %13 : vector<1x64xf32> to vector<256x64xf32>
    %15 = arith.addf %12, %14 : vector<256x64xf32>
    %c0_5 = arith.constant 0 : index
    %c0_6 = arith.constant 0 : index
    %16 = vector.load %arg3[%c0_5, %c0_6] : memref<1x64xf32, #tpu.memory_space<vmem>>, vector<1x64xf32>
    %c0_7 = arith.constant 0 : index
    %c0_8 = arith.constant 0 : index
    %17 = vector.load %arg4[%c0_7, %c0_8] : memref<1x64xf32, #tpu.memory_space<vmem>>, vector<1x64xf32>
    %cst_9 = arith.constant dense<0.000000e+00> : vector<64xf32>
    %18 = vector.multi_reduction <add>, %15, %cst_9 [0] : vector<256x64xf32> to vector<64xf32>
    %19 = vector.shape_cast %18 : vector<64xf32> to vector<1x64xf32>
    %cst_10 = arith.constant 3.906250e-03 : f32
    %20 = vector.broadcast %cst_10 : f32 to vector<1x64xf32>
    %21 = arith.mulf %19, %20 : vector<1x64xf32>
    %22 = arith.mulf %15, %15 : vector<256x64xf32>
    %cst_11 = arith.constant dense<0.000000e+00> : vector<64xf32>
    %23 = vector.multi_reduction <add>, %22, %cst_11 [0] : vector<256x64xf32> to vector<64xf32>
    %24 = vector.shape_cast %23 : vector<64xf32> to vector<1x64xf32>
    %cst_12 = arith.constant 3.906250e-03 : f32
    %25 = vector.broadcast %cst_12 : f32 to vector<1x64xf32>
    %26 = arith.mulf %24, %25 : vector<1x64xf32>
    %27 = arith.mulf %21, %21 : vector<1x64xf32>
    %28 = arith.subf %26, %27 : vector<1x64xf32>
    %cst_13 = arith.constant 0.000000e+00 : f32
    %29 = vector.broadcast %cst_13 : f32 to vector<1x64xf32>
    %30 = arith.maximumf %28, %29 : vector<1x64xf32>
    %31 = vector.broadcast %21 : vector<1x64xf32> to vector<256x64xf32>
    %32 = arith.subf %15, %31 : vector<256x64xf32>
    %cst_14 = arith.constant 9.99999974E-6 : f32
    %33 = vector.broadcast %cst_14 : f32 to vector<1x64xf32>
    %34 = arith.addf %30, %33 : vector<1x64xf32>
    %35 = math.rsqrt %34 : vector<1x64xf32>
    %36 = vector.broadcast %35 : vector<1x64xf32> to vector<256x64xf32>
    %37 = arith.mulf %32, %36 : vector<256x64xf32>
    %38 = vector.broadcast %16 : vector<1x64xf32> to vector<256x64xf32>
    %39 = arith.mulf %37, %38 : vector<256x64xf32>
    %40 = vector.broadcast %17 : vector<1x64xf32> to vector<256x64xf32>
    %41 = arith.addf %39, %40 : vector<256x64xf32>
    %cst_15 = arith.constant 0.000000e+00 : f32
    %42 = vector.broadcast %cst_15 : f32 to vector<256x64xf32>
    %43 = arith.maximumf %41, %42 : vector<256x64xf32>
    %44 = arith.truncf %43 : vector<256x64xf32> to vector<256x64xbf16>
    %c0_16 = arith.constant 0 : index
    %c0_17 = arith.constant 0 : index
    %45 = vector.load %arg25[%c0_16, %c0_17] : memref<256x64xbf16, #tpu.memory_space<vmem>>, vector<256x64xbf16>
    tpu.vector_store %arg25[%c0_16, %c0_17], %44 {strides = array<i32>} : memref<256x64xbf16, #tpu.memory_space<vmem>>, vector<256x64xbf16>,
    %c0_18 = arith.constant 0 : index
    %c0_19 = arith.constant 0 : index
    %46 = vector.load %arg5[%c0_18, %c0_19] : memref<64x128xbf16, #tpu.memory_space<vmem>>, vector<64x128xbf16>
    %cst_20 = arith.constant dense<0.000000e+00> : vector<256x128xf32>
    %47 = tpu.matmul %44, %46, %cst_20 {dimension_numbers = #tpu.dot_dimension_numbers<[1], [0], [0], [1], [0, 0, 1, 1], [], []>} : vector<256x64xbf16>, vector<64x128xbf16>, vector<256x128xf32> -> vector<256x128xf32>
    %c0_21 = arith.constant 0 : index
    %c0_22 = arith.constant 0 : index
    %48 = vector.load %arg6[%c0_21, %c0_22] : memref<1x128xf32, #tpu.memory_space<vmem>>, vector<1x128xf32>
    %49 = vector.broadcast %48 : vector<1x128xf32> to vector<256x128xf32>
    %50 = arith.addf %47, %49 : vector<256x128xf32>
    %c0_23 = arith.constant 0 : index
    %c0_24 = arith.constant 0 : index
    %51 = vector.load %arg7[%c0_23, %c0_24] : memref<1x128xf32, #tpu.memory_space<vmem>>, vector<1x128xf32>
    %c0_25 = arith.constant 0 : index
    %c0_26 = arith.constant 0 : index
    %52 = vector.load %arg8[%c0_25, %c0_26] : memref<1x128xf32, #tpu.memory_space<vmem>>, vector<1x128xf32>
    %cst_27 = arith.constant dense<0.000000e+00> : vector<128xf32>
    %53 = vector.multi_reduction <add>, %50, %cst_27 [0] : vector<256x128xf32> to vector<128xf32>
    %54 = vector.shape_cast %53 : vector<128xf32> to vector<1x128xf32>
    %cst_28 = arith.constant 3.906250e-03 : f32
    %55 = vector.broadcast %cst_28 : f32 to vector<1x128xf32>
    %56 = arith.mulf %54, %55 : vector<1x128xf32>
    %57 = arith.mulf %50, %50 : vector<256x128xf32>
    %cst_29 = arith.constant dense<0.000000e+00> : vector<128xf32>
    %58 = vector.multi_reduction <add>, %57, %cst_29 [0] : vector<256x128xf32> to vector<128xf32>
    %59 = vector.shape_cast %58 : vector<128xf32> to vector<1x128xf32>
    %cst_30 = arith.constant 3.906250e-03 : f32
    %60 = vector.broadcast %cst_30 : f32 to vector<1x128xf32>
    %61 = arith.mulf %59, %60 : vector<1x128xf32>
    %62 = arith.mulf %56, %56 : vector<1x128xf32>
    %63 = arith.subf %61, %62 : vector<1x128xf32>
    %cst_31 = arith.constant 0.000000e+00 : f32
    %64 = vector.broadcast %cst_31 : f32 to vector<1x128xf32>
    %65 = arith.maximumf %63, %64 : vector<1x128xf32>
    %66 = vector.broadcast %56 : vector<1x128xf32> to vector<256x128xf32>
    %67 = arith.subf %50, %66 : vector<256x128xf32>
    %cst_32 = arith.constant 9.99999974E-6 : f32
    %68 = vector.broadcast %cst_32 : f32 to vector<1x128xf32>
    %69 = arith.addf %65, %68 : vector<1x128xf32>
    %70 = math.rsqrt %69 : vector<1x128xf32>
    %71 = vector.broadcast %70 : vector<1x128xf32> to vector<256x128xf32>
    %72 = arith.mulf %67, %71 : vector<256x128xf32>
    %73 = vector.broadcast %51 : vector<1x128xf32> to vector<256x128xf32>
    %74 = arith.mulf %72, %73 : vector<256x128xf32>
    %75 = vector.broadcast %52 : vector<1x128xf32> to vector<256x128xf32>
    %76 = arith.addf %74, %75 : vector<256x128xf32>
    %cst_33 = arith.constant 0.000000e+00 : f32
    %77 = vector.broadcast %cst_33 : f32 to vector<256x128xf32>
    %78 = arith.maximumf %76, %77 : vector<256x128xf32>
    %79 = arith.truncf %78 : vector<256x128xf32> to vector<256x128xbf16>
    %c0_34 = arith.constant 0 : index
    %c0_35 = arith.constant 0 : index
    %80 = vector.load %arg9[%c0_34, %c0_35] : memref<128x256xbf16, #tpu.memory_space<vmem>>, vector<128x256xbf16>
    %cst_36 = arith.constant dense<0.000000e+00> : vector<256x256xf32>
    %81 = tpu.matmul %79, %80, %cst_36 {dimension_numbers = #tpu.dot_dimension_numbers<[1], [0], [0], [1], [0, 0, 1, 1], [], []>} : vector<256x128xbf16>, vector<128x256xbf16>, vector<256x256xf32> -> vector<256x256xf32>
    %c0_37 = arith.constant 0 : index
    %c0_38 = arith.constant 0 : index
    %82 = vector.load %arg10[%c0_37, %c0_38] : memref<1x256xf32, #tpu.memory_space<vmem>>, vector<1x256xf32>
    %83 = vector.broadcast %82 : vector<1x256xf32> to vector<256x256xf32>
    %84 = arith.addf %81, %83 : vector<256x256xf32>
    %c0_39 = arith.constant 0 : index
    %c0_40 = arith.constant 0 : index
    %85 = vector.load %arg11[%c0_39, %c0_40] : memref<1x256xf32, #tpu.memory_space<vmem>>, vector<1x256xf32>
    %c0_41 = arith.constant 0 : index
    %c0_42 = arith.constant 0 : index
    %86 = vector.load %arg12[%c0_41, %c0_42] : memref<1x256xf32, #tpu.memory_space<vmem>>, vector<1x256xf32>
    %cst_43 = arith.constant dense<0.000000e+00> : vector<256xf32>
    %87 = vector.multi_reduction <add>, %84, %cst_43 [0] : vector<256x256xf32> to vector<256xf32>
    %88 = vector.shape_cast %87 : vector<256xf32> to vector<1x256xf32>
    %cst_44 = arith.constant 3.906250e-03 : f32
    %89 = vector.broadcast %cst_44 : f32 to vector<1x256xf32>
    %90 = arith.mulf %88, %89 : vector<1x256xf32>
    %91 = arith.mulf %84, %84 : vector<256x256xf32>
    %cst_45 = arith.constant dense<0.000000e+00> : vector<256xf32>
    %92 = vector.multi_reduction <add>, %91, %cst_45 [0] : vector<256x256xf32> to vector<256xf32>
    %93 = vector.shape_cast %92 : vector<256xf32> to vector<1x256xf32>
    %cst_46 = arith.constant 3.906250e-03 : f32
    %94 = vector.broadcast %cst_46 : f32 to vector<1x256xf32>
    %95 = arith.mulf %93, %94 : vector<1x256xf32>
    %96 = arith.mulf %90, %90 : vector<1x256xf32>
    %97 = arith.subf %95, %96 : vector<1x256xf32>
    %cst_47 = arith.constant 0.000000e+00 : f32
    %98 = vector.broadcast %cst_47 : f32 to vector<1x256xf32>
    %99 = arith.maximumf %97, %98 : vector<1x256xf32>
    %100 = vector.broadcast %90 : vector<1x256xf32> to vector<256x256xf32>
    %101 = arith.subf %84, %100 : vector<256x256xf32>
    %cst_48 = arith.constant 9.99999974E-6 : f32
    %102 = vector.broadcast %cst_48 : f32 to vector<1x256xf32>
    %103 = arith.addf %99, %102 : vector<1x256xf32>
    %104 = math.rsqrt %103 : vector<1x256xf32>
    %105 = vector.broadcast %104 : vector<1x256xf32> to vector<256x256xf32>
    %106 = arith.mulf %101, %105 : vector<256x256xf32>
    %107 = vector.broadcast %85 : vector<1x256xf32> to vector<256x256xf32>
    %108 = arith.mulf %106, %107 : vector<256x256xf32>
    %109 = vector.broadcast %86 : vector<1x256xf32> to vector<256x256xf32>
    %110 = arith.addf %108, %109 : vector<256x256xf32>
    %cst_49 = arith.constant 0.000000e+00 : f32
    %111 = vector.broadcast %cst_49 : f32 to vector<256x256xf32>
    %112 = arith.maximumf %110, %111 : vector<256x256xf32>
    %c0_50 = arith.constant 0 : index
    %c0_51 = arith.constant 0 : index
    %113 = vector.load %arg26[%c0_50, %c0_51] : memref<256x256xf32, #tpu.memory_space<vmem>>, vector<256x256xf32>
    tpu.vector_store %arg26[%c0_50, %c0_51], %112 {strides = array<i32>} : memref<256x256xf32, #tpu.memory_space<vmem>>, vector<256x256xf32>,
    %c0_i32_52 = arith.constant 0 : i32
    %c2_i32_53 = arith.constant 2 : i32
    %114 = arith.addi %c0_i32_52, %c2_i32_53 : i32
    %c1_i32_54 = arith.constant 1 : i32
    scf.for %arg29 = %c0_i32_52 to %114 step %c1_i32_54  : i32 {
      %c1_i32_74 = arith.constant 1 : i32
      %134 = arith.muli %arg29, %c1_i32_74 : i32
      %c0_i32_75 = arith.constant 0 : i32
      %135 = arith.addi %c0_i32_75, %134 : i32
      %c128_i32 = arith.constant 128 : i32
      %136 = arith.muli %135, %c128_i32 : i32
      %137 = tpu.assume_multiple %136, 128 : i32
      %138 = arith.index_cast %137 : i32 to index
      %c0_76 = arith.constant 0 : index
      %139 = vector.load %arg26[%138, %c0_76] : memref<256x256xf32, #tpu.memory_space<vmem>>, vector<128x256xf32>
      %cst_77 = arith.constant dense<0xFF800000> : vector<256xf32>
      %140 = vector.multi_reduction <maximumf>, %139, %cst_77 [0] : vector<128x256xf32> to vector<256xf32>
      %141 = vector.shape_cast %140 : vector<256xf32> to vector<1x256xf32>
      %142 = arith.index_cast %135 : i32 to index
      %c0_78 = arith.constant 0 : index
      %143 = vector.load %arg27[%142, %c0_78] : memref<2x256xf32, #tpu.memory_space<vmem>>, vector<1x256xf32>
      tpu.vector_store %arg27[%142, %c0_78], %141 {strides = array<i32>} : memref<2x256xf32, #tpu.memory_space<vmem>>, vector<1x256xf32>,
    }
    %c2_i32_55 = arith.constant 2 : i32
    %c1_i32_56 = arith.constant 1 : i32
    %115 = tpu.memref_slice %arg24[%c1_i32_56] : memref<5x!tpu.dma_semaphore, #tpu.memory_space<semaphore_mem>> -> memref<1x!tpu.dma_semaphore, #tpu.memory_space<semaphore_mem>>
    %116 = tpu.memref_squeeze %115 : memref<1x!tpu.dma_semaphore, #tpu.memory_space<semaphore_mem>> -> memref<!tpu.dma_semaphore, #tpu.memory_space<semaphore_mem>>
    tpu.wait_dma2 semaphore(%116 : memref<!tpu.dma_semaphore, #tpu.memory_space<semaphore_mem>>) src(%arg14 : memref<256x512xbf16, #tpu.memory_space<any>>) dst(%arg20 : memref<256x512xbf16, #tpu.memory_space<vmem>>)
    %c2_i32_57 = arith.constant 2 : i32
    %117 = tpu.memref_slice %arg24[%c2_i32_57] : memref<5x!tpu.dma_semaphore, #tpu.memory_space<semaphore_mem>> -> memref<1x!tpu.dma_semaphore, #tpu.memory_space<semaphore_mem>>
    %118 = tpu.memref_squeeze %117 : memref<1x!tpu.dma_semaphore, #tpu.memory_space<semaphore_mem>> -> memref<!tpu.dma_semaphore, #tpu.memory_space<semaphore_mem>>
    tpu.wait_dma2 semaphore(%118 : memref<!tpu.dma_semaphore, #tpu.memory_space<semaphore_mem>>) src(%arg15 : memref<1x512xf32, #tpu.memory_space<any>>) dst(%arg21 : memref<1x512xf32, #tpu.memory_space<vmem>>)
    %c0_58 = arith.constant 0 : index
    %c0_59 = arith.constant 0 : index
    %119 = vector.load %arg27[%c0_58, %c0_59] : memref<2x256xf32, #tpu.memory_space<vmem>>, vector<2x256xf32>
    %120 = arith.truncf %119 : vector<2x256xf32> to vector<2x256xbf16>
    %c0_60 = arith.constant 0 : index
    %c0_61 = arith.constant 0 : index
    %121 = vector.load %arg20[%c0_60, %c0_61] : memref<256x512xbf16, #tpu.memory_space<vmem>>, vector<256x512xbf16>
    %cst_62 = arith.constant dense<0.000000e+00> : vector<2x512xf32>
    %122 = tpu.matmul %120, %121, %cst_62 {dimension_numbers = #tpu.dot_dimension_numbers<[1], [0], [0], [1], [0, 0, 1, 1], [], []>} : vector<2x256xbf16>, vector<256x512xbf16>, vector<2x512xf32> -> vector<2x512xf32>
    %c0_63 = arith.constant 0 : index
    %c0_64 = arith.constant 0 : index
    %123 = vector.load %arg21[%c0_63, %c0_64] : memref<1x512xf32, #tpu.memory_space<vmem>>, vector<1x512xf32>
    %124 = vector.broadcast %123 : vector<1x512xf32> to vector<2x512xf32>
    %125 = arith.addf %122, %124 : vector<2x512xf32>
    %c0_65 = arith.constant 0 : index
    %c0_66 = arith.constant 0 : index
    %126 = vector.load %arg28[%c0_65, %c0_66] : memref<2x512xf32, #tpu.memory_space<vmem>>, vector<2x512xf32>
    tpu.vector_store %arg28[%c0_65, %c0_66], %125 {strides = array<i32>} : memref<2x512xf32, #tpu.memory_space<vmem>>, vector<2x512xf32>,
    %c0_i32_67 = arith.constant 0 : i32
    %127 = tpu.memref_slice %arg24[%c0_i32_67] : memref<5x!tpu.dma_semaphore, #tpu.memory_space<semaphore_mem>> -> memref<1x!tpu.dma_semaphore, #tpu.memory_space<semaphore_mem>>
    %128 = tpu.memref_squeeze %127 : memref<1x!tpu.dma_semaphore, #tpu.memory_space<semaphore_mem>> -> memref<!tpu.dma_semaphore, #tpu.memory_space<semaphore_mem>>
    tpu.wait_dma2 semaphore(%128 : memref<!tpu.dma_semaphore, #tpu.memory_space<semaphore_mem>>) src(%arg13 : memref<64x512xbf16, #tpu.memory_space<any>>) dst(%arg19 : memref<64x512xbf16, #tpu.memory_space<vmem>>)
    %c3_i32_68 = arith.constant 3 : i32
    %129 = tpu.memref_slice %arg24[%c3_i32_68] : memref<5x!tpu.dma_semaphore, #tpu.memory_space<semaphore_mem>> -> memref<1x!tpu.dma_semaphore, #tpu.memory_space<semaphore_mem>>
    %130 = tpu.memref_squeeze %129 : memref<1x!tpu.dma_semaphore, #tpu.memory_space<semaphore_mem>> -> memref<!tpu.dma_semaphore, #tpu.memory_space<semaphore_mem>>
    tpu.wait_dma2 semaphore(%130 : memref<!tpu.dma_semaphore, #tpu.memory_space<semaphore_mem>>) src(%arg16 : memref<512x512xbf16, #tpu.memory_space<any>>) dst(%arg22 : memref<512x512xbf16, #tpu.memory_space<vmem>>)
    %c4_i32_69 = arith.constant 4 : i32
    %131 = tpu.memref_slice %arg24[%c4_i32_69] : memref<5x!tpu.dma_semaphore, #tpu.memory_space<semaphore_mem>> -> memref<1x!tpu.dma_semaphore, #tpu.memory_space<semaphore_mem>>
    %132 = tpu.memref_squeeze %131 : memref<1x!tpu.dma_semaphore, #tpu.memory_space<semaphore_mem>> -> memref<!tpu.dma_semaphore, #tpu.memory_space<semaphore_mem>>
    tpu.wait_dma2 semaphore(%132 : memref<!tpu.dma_semaphore, #tpu.memory_space<semaphore_mem>>) src(%arg17 : memref<1x512xf32, #tpu.memory_space<any>>) dst(%arg23 : memref<1x512xf32, #tpu.memory_space<vmem>>)
    %c0_i32_70 = arith.constant 0 : i32
    %c2_i32_71 = arith.constant 2 : i32
    %133 = arith.addi %c0_i32_70, %c2_i32_71 : i32
    %c1_i32_72 = arith.constant 1 : i32
    scf.for %arg29 = %c0_i32_70 to %133 step %c1_i32_72  : i32 {
      %c1_i32_74 = arith.constant 1 : i32
      %134 = arith.muli %arg29, %c1_i32_74 : i32
      %c0_i32_75 = arith.constant 0 : i32
      %135 = arith.addi %c0_i32_75, %134 : i32
      %c128_i32 = arith.constant 128 : i32
      %136 = arith.muli %135, %c128_i32 : i32
      %137 = tpu.assume_multiple %136, 128 : i32
      %138 = arith.index_cast %137 : i32 to index
      %c0_76 = arith.constant 0 : index
      %139 = vector.load %arg25[%138, %c0_76] : memref<256x64xbf16, #tpu.memory_space<vmem>>, vector<128x64xbf16>
      %c0_77 = arith.constant 0 : index
      %c0_78 = arith.constant 0 : index
      %140 = vector.load %arg19[%c0_77, %c0_78] : memref<64x512xbf16, #tpu.memory_space<vmem>>, vector<64x512xbf16>
      %cst_79 = arith.constant dense<0.000000e+00> : vector<128x512xf32>
      %141 = tpu.matmul %139, %140, %cst_79 {dimension_numbers = #tpu.dot_dimension_numbers<[1], [0], [0], [1], [0, 0, 1, 1], [], []>} : vector<128x64xbf16>, vector<64x512xbf16>, vector<128x512xf32> -> vector<128x512xf32>
      %142 = arith.index_cast %135 : i32 to index
      %c0_80 = arith.constant 0 : index
      %143 = vector.load %arg28[%142, %c0_80] : memref<2x512xf32, #tpu.memory_space<vmem>>, vector<1x512xf32>
      %144 = vector.broadcast %143 : vector<1x512xf32> to vector<128x512xf32>
      %145 = arith.addf %141, %144 : vector<128x512xf32>
      %cst_81 = arith.constant 0.000000e+00 : f32
      %146 = vector.broadcast %cst_81 : f32 to vector<128x512xf32>
      %147 = arith.maximumf %145, %146 : vector<128x512xf32>
      %148 = arith.truncf %147 : vector<128x512xf32> to vector<128x512xbf16>
      %c0_82 = arith.constant 0 : index
      %c0_83 = arith.constant 0 : index
      %149 = vector.load %arg22[%c0_82, %c0_83] : memref<512x512xbf16, #tpu.memory_space<vmem>>, vector<512x512xbf16>
      %cst_84 = arith.constant dense<0.000000e+00> : vector<128x512xf32>
      %150 = tpu.matmul %148, %149, %cst_84 {dimension_numbers = #tpu.dot_dimension_numbers<[1], [0], [0], [1], [0, 0, 1, 1], [], []>} : vector<128x512xbf16>, vector<512x512xbf16>, vector<128x512xf32> -> vector<128x512xf32>
      %c0_85 = arith.constant 0 : index
      %c0_86 = arith.constant 0 : index
      %151 = vector.load %arg23[%c0_85, %c0_86] : memref<1x512xf32, #tpu.memory_space<vmem>>, vector<1x512xf32>
      %152 = vector.broadcast %151 : vector<1x512xf32> to vector<128x512xf32>
      %153 = arith.addf %150, %152 : vector<128x512xf32>
      %cst_87 = arith.constant 0.000000e+00 : f32
      %154 = vector.broadcast %cst_87 : f32 to vector<128x512xf32>
      %155 = arith.maximumf %153, %154 : vector<128x512xf32>
      %cst_88 = arith.constant dense<0xFF800000> : vector<512xf32>
      %156 = vector.multi_reduction <maximumf>, %155, %cst_88 [0] : vector<128x512xf32> to vector<512xf32>
      %157 = vector.shape_cast %156 : vector<512xf32> to vector<1x512xf32>
      %158 = arith.index_cast %135 : i32 to index
      %c0_89 = arith.constant 0 : index
      %159 = vector.load %arg18[%158, %c0_89] : memref<2x512xf32, #tpu.memory_space<vmem>>, vector<1x512xf32>
      tpu.vector_store %arg18[%158, %c0_89], %157 {strides = array<i32>} : memref<2x512xf32, #tpu.memory_space<vmem>>, vector<1x512xf32>,
    }
    %c2_i32_73 = arith.constant 2 : i32
    return
  }
}

</mosaic_0001>

<bundles_post_ra>
// kernel: tpu_custom_call.1
= control target key start
LH: loop header
LB: loop body
LE: loop exit
PB: predicated region body
PF: predicated region fallthrough
CT: control target
= control target key end

     0   :  { %s9432_s0 = inlined_call_operand.vmem [shape: f32[256,4], index: 0, kind: input, shape index: {}]   ;;  %s9433_s1 = inlined_call_operand.vmem [shape: f32[4,64], index: 1, kind: input, shape index: {}]   ;;  %s9434_s2 = inlined_call_operand.hbm [shape: f32[1,64], index: 2, kind: input, shape index: {}]   ;;  %s9435_s3 = inlined_call_operand.hbm [shape: f32[1,64], index: 3, kind: input, shape index: {}]   ;;  %s9436_s4 = inlined_call_operand.hbm [shape: f32[1,64], index: 4, kind: input, shape index: {}]   ;;  %s9437_s5 = inlined_call_operand.hbm [shape: bf16[64,128], index: 5, kind: input, shape index: {}]   ;;  %s9438_s6 = inlined_call_operand.hbm [shape: f32[1,128], index: 6, kind: input, shape index: {}]   ;;  %s9439_s7 = inlined_call_operand.hbm [shape: f32[1,128], index: 7, kind: input, shape index: {}]   ;;  %s9440_s8 = inlined_call_operand.vmem [shape: f32[1,128], index: 8, kind: input, shape index: {}]   ;;  %s9441_s9 = inlined_call_operand.vmem [shape: bf16[128,256], index: 9, kind: input, shape index: {}]   ;;  %s9442_s10 = inlined_call_operand.vmem [shape: f32[1,256], index: 10, kind: input, shape index: {}]   ;;  %s9443_s11 = inlined_call_operand.vmem [shape: f32[1,256], index: 11, kind: input, shape index: {}]   ;;  %s9444_s12 = inlined_call_operand.vmem [shape: f32[1,256], index: 12, kind: input, shape index: {}]   ;;  %s9445_s13 = inlined_call_operand.vmem [shape: bf16[64,512], index: 13, kind: input, shape index: {}]   ;;  %s9446_s14 = inlined_call_operand.hbm [shape: bf16[256,512], index: 14, kind: input, shape index: {}]   ;;  %s9447_s15 = inlined_call_operand.vmem [shape: f32[1,512], index: 15, kind: input, shape index: {}]   ;;  %s9448_s16 = inlined_call_operand.hbm [shape: bf16[512,512], index: 16, kind: input, shape index: {}]   ;;  %s9449_s17 = inlined_call_operand.vmem [shape: f32[1,512], index: 17, kind: input, shape index: {}]   ;;  %s9450_s18 = inlined_call_operand.hbm [shape: f32[2,512], index: 18, kind: output, shape index: {}]  }
   0x1   :  { %9516 = sst [smem:[#allocation76_spill]] %s9432_s0 }
   0x2   :  { %9517 = sst [smem:[#allocation77_spill]] %s9433_s1 }
   0x3   :  { %9518 = sst [smem:[#allocation78_spill]] %s9434_s2 }
   0x4   :  { %23 = vsyncpa [#allocation13], 0 }
   0x5   :  { %24 = vsyncpa [#allocation16], 0 }
   0x6   :  { %25 = vsyncpa [#allocation19], 0 }
   0x7   :  { %26 = vsyncpa [#allocation22], 0 }
   0x8   :  { %27 = vsyncpa [#allocation14], 0  ;;  %s6539_s27 = smov [#allocation15]   ;;  %s6540_s29 = smov [#allocation18]  }
   0x9   :  { %s48_s28 = sshll.u32 %s6539_s27, 4  ;;  %s67_s30 = sshll.u32 %s6540_s29, 4  ;;  %s49_s28 = int_to_ptr.vmem [resolvable:$true] %s48_s28  ;;  %s68_s30 = int_to_ptr.vmem [resolvable:$true] %s67_s30 }
   0xa   :  { %s6331_s0 = scalar_lea.vmem %s49_s28, 16  ;;  %s6335_s19 = scalar_lea.vmem %s49_s28, 32 }
   0xb   :  { %p6332_p0 = scmp.ne.s32.totalorder %s49_s28, %s6331_s0  ;;  %p6336_p1 = scmp.lt.s32.totalorder %s49_s28, %s49_s28 }
   0xc   :  { %p6337_p2 = scmp.lt.s32.totalorder %s6335_s19, %s6331_s0 }
   0xe   :  { %p6338_p3 = por %p6337_p2, %p6336_p1 }
  0x10   :  { %p6339_p4 = pnand %p6338_p3, %p6332_p0 }
  0x12   :  { %6342 = shalt.err (!%p6339_p4)
}
  0x13   :  { %51 = dma.hbm_to_vmem [thread:$0]  %s9435_s3, 16, %s49_s28, [#allocation16]  }
  0x14   :  { %s6351_s21 = scalar_lea.vmem %s68_s30, 512  ;;  %p6356_p6 = scmp.lt.s32.totalorder %s68_s30, %s68_s30 }
  0x15   :  { %p6352_p5 = scmp.ne.s32.totalorder %s68_s30, %s6351_s21  ;;  %p6357_p7 = scmp.lt.s32.totalorder %s6351_s21, %s6351_s21 }
  0x17   :  { %p6358_p8 = por %p6357_p7, %p6356_p6 }
  0x19   :  { %p6359_p9 = pnand %p6358_p8, %p6352_p5 }
  0x1b   :  { %6362 = shalt.err (!%p6359_p9)
}
  0x1c   :  { %s6541_s22 = smov 64   ;;  %s6542_s2 = smov 4  }
  0x1d   :  { %73 = dma.hbm_to_vmem [thread:$0]  %s9437_s5, 512, %s68_s30, [#allocation19], %s6541_s22, %s6541_s22, %s6542_s2  }
  0x1e   :  { %s6543_s25 = smov [#allocation12]   ;;  %s6544_s27 = smov [#allocation17]  }
  0x1f   :  { %s38_s26 = sshll.u32 %s6543_s25, 4  ;;  %s58_s29 = sshll.u32 %s6544_s27, 4  ;;  %s39_s26 = int_to_ptr.vmem [resolvable:$true] %s38_s26  ;;  %s59_s29 = int_to_ptr.vmem [resolvable:$true] %s58_s29 }
  0x20   :  { %s6371_s3 = scalar_lea.vmem %s39_s26, 16  ;;  %s6375_s28 = scalar_lea.vmem %s39_s26, 32 }
  0x21   :  { %p6372_p10 = scmp.ne.s32.totalorder %s39_s26, %s6371_s3  ;;  %p6376_p11 = scmp.lt.s32.totalorder %s39_s26, %s39_s26 }
  0x22   :  { %p6377_p12 = scmp.lt.s32.totalorder %s6375_s28, %s6371_s3 }
  0x24   :  { %p6378_p13 = por %p6377_p12, %p6376_p11 }
  0x26   :  { %p6379_p0 = pnand %p6378_p13, %p6372_p10 }
  0x28   :  { %6382 = shalt.err (!%p6379_p0)
}
  0x29   :  { %s9519_s1 = sld [smem:[#allocation78_spill]]  ;;  %s6391_s20 = scalar_lea.vmem %s59_s29, 16 }
  0x2a   :  { %p6392_p1 = scmp.ne.s32.totalorder %s59_s29, %s6391_s20  ;;  %s6395_s5 = scalar_lea.vmem %s59_s29, 32 }
  0x2b   :  { %p6396_p2 = scmp.lt.s32.totalorder %s59_s29, %s59_s29  ;;  %p6397_p3 = scmp.lt.s32.totalorder %s6395_s5, %s6391_s20 }
  0x2d   :  { %p6398_p4 = por %p6397_p3, %p6396_p2 }
  0x2f   :  { %41 = dma.hbm_to_vmem [thread:$0]  %s9519_s1, 16, %s39_s26, [#allocation13]  }
  0x30   :  { %p6399_p5 = pnand %p6398_p4, %p6392_p1 }
  0x32   :  { %6402 = shalt.err (!%p6399_p5)
}
  0x33   :  { %61 = dma.hbm_to_vmem [thread:$0]  %s9436_s4, 16, %s59_s29, [#allocation16]  }
  0x34   :  { %s6545_s22 = smov [#allocation20]   ;;  %s6546_s23 = smov [#allocation21]  }
  0x35   :  { %s80_s2 = sshll.u32 %s6545_s22, 4  ;;  %s90_s24 = sshll.u32 %s6546_s23, 4  ;;  %s81_s2 = int_to_ptr.vmem [resolvable:$true] %s80_s2  ;;  %s91_s24 = int_to_ptr.vmem [resolvable:$true] %s90_s24 }
  0x36   :  { %s6411_s25 = scalar_lea.vmem %s81_s2, 16  ;;  %s6415_s26 = scalar_lea.vmem %s81_s2, 32 }
  0x37   :  { %p6412_p6 = scmp.ne.s32.totalorder %s81_s2, %s6411_s25  ;;  %p6416_p7 = scmp.lt.s32.totalorder %s81_s2, %s81_s2 }
  0x38   :  { %p6417_p8 = scmp.lt.s32.totalorder %s6415_s26, %s6411_s25 }
  0x3a   :  { %p6418_p9 = por %p6417_p8, %p6416_p7 }
  0x3c   :  { %p6419_p10 = pnand %p6418_p9, %p6412_p6 }
  0x3e   :  { %6422 = shalt.err (!%p6419_p10)
}
  0x3f   :  { %83 = dma.hbm_to_vmem [thread:$0]  %s9438_s6, 16, %s81_s2, [#allocation19]  }
  0x40   :  { %s6431_s28 = scalar_lea.vmem %s91_s24, 16  ;;  %s6435_s4 = scalar_lea.vmem %s91_s24, 32 }
  0x41   :  { %p6432_p11 = scmp.ne.s32.totalorder %s91_s24, %s6431_s28  ;;  %p6436_p12 = scmp.lt.s32.totalorder %s91_s24, %s91_s24 }
  0x42   :  { %p6437_p13 = scmp.lt.s32.totalorder %s6435_s4, %s6431_s28 }
  0x44   :  { %p6438_p0 = por %p6437_p13, %p6436_p12 }
  0x46   :  { %p6439_p1 = pnand %p6438_p0, %p6432_p11 }
  0x48   :  { %6442 = shalt.err (!%p6439_p1)
}
  0x49   :  { %93 = dma.hbm_to_vmem [thread:$0]  %s9439_s7, 16, %s91_s24, [#allocation22]  }
  0x4a   :  { %6511 = dma.done.wait [#allocation13], 16  }
  0x4b   :  { %6512 = vsyncadd [#allocation13], 4294967280 }
  0x4c   :  { %6513 = dma.done.wait [#allocation16], 32  }
  0x4d   :  { %6514 = vsyncadd [#allocation16], 4294967264 }
  0x4e   :  { %6515 = dma.done.wait [#allocation19], 528  }
  0x4f   :  { %6516 = vsyncadd [#allocation19], 4294966768 }
  0x50   :  { %6517 = dma.done.wait [#allocation22], 16  }
  0x51   :  { %6518 = vsyncadd [#allocation22], 4294967280  ;;  %v156_v0 = vld [vmem:[%s9445_s13] sm:$0xff]  ;;  %v158_v1 = vld [vmem:[%s9445_s13 + $0x8] sm:$0xff] }
  0x52   :  { %v160_v2 = vld [vmem:[%s9445_s13 + $0x10] sm:$0xff]  ;;  %157 = vst [vmem:[#allocation2 + $0x30] sm:$0xff] %v156_v0  ;;  %159 = vst [vmem:[#allocation2] sm:$0xff] %v158_v1  ;;  %v162_v3 = vld [vmem:[%s9445_s13 + $0x18] sm:$0xff] }
  0x53   :  { %161 = vst [vmem:[#allocation2 + $0x58] sm:$0xff] %v160_v2  ;;  %v164_v4 = vld [vmem:[%s9445_s13 + $0x20] sm:$0xff]  ;;  %v166_v5 = vld [vmem:[%s9445_s13 + $0x28] sm:$0xff]  ;;  %163 = vst [vmem:[#allocation2 + $0x18] sm:$0xff] %v162_v3 }
  0x54   :  { %165 = vst [vmem:[#allocation2 + $0x50] sm:$0xff] %v164_v4  ;;  %167 = vst [vmem:[#allocation2 + $0x68] sm:$0xff] %v166_v5  ;;  %v168_v6 = vld [vmem:[%s9445_s13 + $0x30] sm:$0xff]  ;;  %v170_v7 = vld [vmem:[%s9445_s13 + $0x38] sm:$0xff] }
  0x55   :  { %v172_v8 = vld [vmem:[%s9445_s13 + $0x40] sm:$0xff]  ;;  %169 = vst [vmem:[#allocation2 + $0x8] sm:$0xff] %v168_v6  ;;  %171 = vst [vmem:[#allocation2 + $0x48] sm:$0xff] %v170_v7  ;;  %v174_v9 = vld [vmem:[%s9445_s13 + $0x48] sm:$0xff] }
  0x56   :  { %173 = vst [vmem:[#allocation2 + $0x40] sm:$0xff] %v172_v8  ;;  %v176_v10 = vld [vmem:[%s9445_s13 + $0x50] sm:$0xff]  ;;  %v178_v11 = vld [vmem:[%s9445_s13 + $0x58] sm:$0xff]  ;;  %175 = vst [vmem:[#allocation2 + $0x20] sm:$0xff] %v174_v9 }
  0x57   :  { %177 = vst [vmem:[#allocation2 + $0x10] sm:$0xff] %v176_v10  ;;  %179 = vst [vmem:[#allocation2 + $0x38] sm:$0xff] %v178_v11  ;;  %v180_v12 = vld [vmem:[%s9445_s13 + $0x60] sm:$0xff]  ;;  %v182_v13 = vld [vmem:[%s9445_s13 + $0x68] sm:$0xff] }
  0x58   :  { %v184_v14 = vld [vmem:[%s9445_s13 + $0x70] sm:$0xff]  ;;  %181 = vst [vmem:[#allocation2 + $0x60] sm:$0xff] %v180_v12  ;;  %183 = vst [vmem:[#allocation2 + $0x70] sm:$0xff] %v182_v13  ;;  %v186_v15 = vld [vmem:[%s9445_s13 + $0x78] sm:$0xff] }
  0x59   :  { %185 = vst [vmem:[#allocation2 + $0x78] sm:$0xff] %v184_v14  ;;  %187 = vst [vmem:[#allocation2 + $0x28] sm:$0xff] %v186_v15 }
  0x5a   :  { %195 = vsyncadd [#allocation7], 2048  ;;  %v227_v16 = vld [vmem:[%s9447_s15] sm:$0xf]  ;;  %s6547_s27 = smov [#allocation3]  }
  0x5b   :  { %s204_s3 = sshll.u32 %s6547_s27, 4  ;;  %228 = vst [vmem:[#allocation4] sm:$0xf] %v227_v16  ;;  %s205_s3 = int_to_ptr.vmem [resolvable:$true] %s204_s3 }
  0x5c   :  { %s6451_s28 = scalar_lea.vmem %s205_s3, 8192  ;;  %p6456_p3 = scmp.lt.s32.totalorder %s205_s3, %s205_s3 }
  0x5d   :  { %p6452_p2 = scmp.ne.s32.totalorder %s205_s3, %s6451_s28  ;;  %p6457_p4 = scmp.lt.s32.totalorder %s6451_s28, %s6451_s28 }
  0x5f   :  { %p6458_p5 = por %p6457_p4, %p6456_p3 }
  0x61   :  { %p6459_p6 = pnand %p6458_p5, %p6452_p2 }
  0x63   :  { %6462 = shalt.err (!%p6459_p6)  }
  0x64   :  { %207 = dma.hbm_to_vmem [thread:$0]  %s9446_s14, 8192, %s205_s3, [#allocation7 + $0x1] }
  0x65   :  { %254 = vsyncadd [#allocation7 + $0x2], 64  ;;  %v286_v17 = vld [vmem:[%s9449_s17] sm:$0xf]  ;;  %s6548_s15 = smov [#allocation5]  }
  0x66   :  { %s263_s6 = sshll.u32 %s6548_s15, 4  ;;  %287 = vst [vmem:[#allocation6] sm:$0xf] %v286_v17  ;;  %s264_s6 = int_to_ptr.vmem [resolvable:$true] %s263_s6 }
  0x67   :  { %s6471_s19 = scalar_lea.vmem %s264_s6, 16384  ;;  %p6476_p8 = scmp.lt.s32.totalorder %s264_s6, %s264_s6 }
  0x68   :  { %p6472_p7 = scmp.ne.s32.totalorder %s264_s6, %s6471_s19  ;;  %p6477_p9 = scmp.lt.s32.totalorder %s6471_s19, %s6471_s19 }
  0x6a   :  { %p6478_p10 = por %p6477_p9, %p6476_p8 }
  0x6c   :  { %p6479_p11 = pnand %p6478_p10, %p6472_p7 }
  0x6e   :  { %6482 = shalt.err (!%p6479_p11)  }
  0x6f   :  { %266 = dma.hbm_to_vmem [thread:$0]  %s9448_s16, 16384, %s264_s6, [#allocation7 + $0x3] }
  0x70   :  { %313 = vsyncadd [#allocation7 + $0x4], 64  ;;  %s9520_s30 = sld [smem:[#allocation77_spill]]  ;;  %vm451_vm0 = vcmask 1043456   ;;  %vm354_vm1 = vcmask 31744   ;;  %v5970_v51 = vld [vmem:[#allocation18 + $0x18] sm:$0xff]  }
  0x71   :  { %s9521_s21 = sld [smem:[#allocation76_spill]]  ;;  %v5971_v52 = vld [vmem:[#allocation18 + $0x10] sm:$0xff]   ;;  %v5972_v53 = vld [vmem:[#allocation18 + $0x8] sm:$0xff]   ;;  %v5973_v54 = vld [vmem:[#allocation18] sm:$0xff]   ;;  %vm682_vm2 = vcmask 523264   ;;  %vm1160_vm3 = vcmask 519168  }
  0x72   :  { %v6858_v55 = vld [vmem:[#allocation12] ss:$0 sm:$0xff] }
  0x76   :  { %v346_v18 = vld [vmem:[%s9520_s30] sm:$0xf] }
  0x77   :  { %v314_v19 = vld [vmem:[%s9521_s21] sm:$0xff]  ;;  %5847 = vmatprep.subr.msk.mxu0 %vm451_vm0, %v346_v18  ;;  %v315_v20 = vld [vmem:[%s9521_s21 + $0x8] sm:$0xff]  ;;  %v316_v21 = vld [vmem:[%s9521_s21 + $0x10] sm:$0xff]  ;;  %5937 = vmatprep.subr.msk.mxu1 %vm451_vm0, %v346_v18 }
  0x78   :  { %5848 = vmatpush3.msk.msra.mxu0 %vm451_vm0, %v346_v18  ;;  %5849 = vmatprep.mubr.msk.f32.mxu0 %vm354_vm1, %v314_v19  ;;  %v317_v22 = vld [vmem:[%s9521_s21 + $0x18] sm:$0xff]  ;;  %v318_v23 = vld [vmem:[%s9521_s21 + $0x20] sm:$0xff]  ;;  %v332_v24 = vld [vmem:[%s9521_s21 + $0x90] sm:$0xff] }
  0x79   :  { %5850 = vmatmul.mubr.msk.f32.vlgmr.msra.gmra.mxu0 %vm354_vm1, %v315_v20  ;;  %5938 = vmatpush3.msk.msra.mxu1 %vm451_vm0, %v346_v18  ;;  %v333_v25 = vld [vmem:[%s9521_s21 + $0x98] sm:$0xff]  ;;  %v334_v26 = vld [vmem:[%s9521_s21 + $0xa0] sm:$0xff]  ;;  %v319_v27 = vld [vmem:[%s9521_s21 + $0x28] sm:$0xff] }
  0x7a   :  { %5852 = vmatprep.mubr.msk.f32.mxu0 %vm354_vm1, %v316_v21  ;;  %5876 = vmatprep.mubr.msk.f32.mxu1 %vm354_vm1, %v332_v24  ;;  %v320_v28 = vld [vmem:[%s9521_s21 + $0x30] sm:$0xff]  ;;  %v335_v29 = vld [vmem:[%s9521_s21 + $0xa8] sm:$0xff]  ;;  %v321_v30 = vld [vmem:[%s9521_s21 + $0x38] sm:$0xff] }
  0x7b   :  { %5877 = vmatmul.mubr.msk.f32.vlgmr.msra.gmra.mxu1 %vm354_vm1, %v333_v25  ;;  %v336_v31 = vld [vmem:[%s9521_s21 + $0xb0] sm:$0xff]  ;;  %v322_v32 = vld [vmem:[%s9521_s21 + $0x40] sm:$0xff]  ;;  %v337_v33 = vld [vmem:[%s9521_s21 + $0xb8] sm:$0xff]  ;;  %5897 = vmatprep.subr.bf16.mxu1 %v5970_v51 }
  0x7c   :  { %5879 = vmatprep.mubr.msk.f32.mxu1 %vm354_vm1, %v334_v26  ;;  %v338_v34 = vld [vmem:[%s9521_s21 + $0xc0] sm:$0xff]  ;;  %v323_v35 = vld [vmem:[%s9521_s21 + $0x48] sm:$0xff]  ;;  %v324_v36 = vld [vmem:[%s9521_s21 + $0x50] sm:$0xff]  ;;  %5898 = vmatpush3.bf16.msra.mxu1 %v5970_v51 }
  0x7d   :  { %5853 = vmatmul.mubr.msk.f32.gmra.mxu0 %vm354_vm1, %v317_v22  ;;  %v339_v37 = vld [vmem:[%s9521_s21 + $0xc8] sm:$0xff]  ;;  %v340_v38 = vld [vmem:[%s9521_s21 + $0xd0] sm:$0xff]  ;;  %v325_v39 = vld [vmem:[%s9521_s21 + $0x58] sm:$0xff]  ;;  %5899 = vmatprep.subr.bf16.mxu1 %v5971_v52 }
  0x7e   :  { %5855 = vmatprep.mubr.msk.f32.mxu0 %vm354_vm1, %v318_v23  ;;  %v326_v40 = vld [vmem:[%s9521_s21 + $0x60] sm:$0xff]  ;;  %v341_v41 = vld [vmem:[%s9521_s21 + $0xd8] sm:$0xff]  ;;  %v327_v43 = vld [vmem:[%s9521_s21 + $0x68] sm:$0xff] }
  0x7f   :  { %5880 = vmatmul.mubr.msk.f32.gmra.mxu1 %vm354_vm1, %v335_v29  ;;  %v342_v42 = vld [vmem:[%s9521_s21 + $0xe0] sm:$0xff]  ;;  %v328_v44 = vld [vmem:[%s9521_s21 + $0x70] sm:$0xff]  ;;  %v343_v45 = vld [vmem:[%s9521_s21 + $0xe8] sm:$0xff] }
  0x80   :  { %5882 = vmatprep.mubr.msk.f32.mxu1 %vm354_vm1, %v336_v31  ;;  %v344_v46 = vld [vmem:[%s9521_s21 + $0xf0] sm:$0xff]  ;;  %v329_v47 = vld [vmem:[%s9521_s21 + $0x78] sm:$0xff]  ;;  %v330_v48 = vld [vmem:[%s9521_s21 + $0x80] sm:$0xff]  ;;  %5900 = vmatpush3.bf16.msra.mxu1 %v5971_v52 }
  0x81   :  { %5856 = vmatmul.mubr.msk.f32.gmra.mxu0 %vm354_vm1, %v319_v27  ;;  %v345_v49 = vld [vmem:[%s9521_s21 + $0xf8] sm:$0xff]  ;;  %v331_v50 = vld [vmem:[%s9521_s21 + $0x88] sm:$0xff]  ;;  %5901 = vmatprep.subr.bf16.mxu1 %v5972_v53 }
  0x82   :  { %5858 = vmatprep.mubr.msk.f32.mxu0 %vm354_vm1, %v320_v28 }
  0x83   :  { %5883 = vmatmul.mubr.msk.f32.gmra.mxu1 %vm354_vm1, %v337_v33 }
  0x84   :  { %5885 = vmatprep.mubr.msk.f32.mxu1 %vm354_vm1, %v338_v34  ;;  %5902 = vmatpush3.bf16.msra.mxu1 %v5972_v53 }
  0x85   :  { %5859 = vmatmul.mubr.msk.f32.gmra.mxu0 %vm354_vm1, %v321_v30  ;;  %5903 = vmatprep.subr.bf16.mxu1 %v5973_v54 }
  0x86   :  { %5861 = vmatprep.mubr.msk.f32.mxu0 %vm354_vm1, %v322_v32 }
  0x87   :  { %5886 = vmatmul.mubr.msk.f32.gmra.mxu1 %vm354_vm1, %v339_v37 }
  0x88   :  { %5888 = vmatprep.mubr.msk.f32.mxu1 %vm354_vm1, %v340_v38  ;;  %5904 = vmatpush3.bf16.msra.mxu1 %v5973_v54 }
  0x89   :  { %5862 = vmatmul.mubr.msk.f32.gmra.mxu0 %vm354_vm1, %v323_v35 }
  0x8a   :  { %5864 = vmatprep.mubr.msk.f32.mxu0 %vm354_vm1, %v324_v36 }
  0x8b   :  { %5889 = vmatmul.mubr.msk.f32.gmra.mxu1 %vm354_vm1, %v341_v41 }
  0x8c   :  { %5891 = vmatprep.mubr.msk.f32.mxu1 %vm354_vm1, %v342_v42 }
  0x8d   :  { %5865 = vmatmul.mubr.msk.f32.gmra.mxu0 %vm354_vm1, %v325_v39 }
  0x8e   :  { %5867 = vmatprep.mubr.msk.f32.mxu0 %vm354_vm1, %v326_v40 }
  0x8f   :  { %5892 = vmatmul.mubr.msk.f32.gmra.mxu1 %vm354_vm1, %v343_v45 }
  0x90   :  { %5894 = vmatprep.mubr.msk.f32.mxu1 %vm354_vm1, %v344_v46 }
  0x91   :  { %5868 = vmatmul.mubr.msk.f32.gmra.mxu0 %vm354_vm1, %v327_v43 }
  0x92   :  { %5870 = vmatprep.mubr.msk.f32.mxu0 %vm354_vm1, %v328_v44 }
  0x93   :  { %5895 = vmatmul.mubr.msk.f32.gmra.mxu1 %vm354_vm1, %v345_v49 }
  0x95   :  { %5871 = vmatmul.mubr.msk.f32.gmra.mxu0 %vm354_vm1, %v329_v47 }
  0x96   :  { %5873 = vmatprep.mubr.msk.f32.mxu0 %vm354_vm1, %v330_v48 }
  0x99   :  { %5874 = vmatmul.mubr.msk.f32.gmra.mxu0 %vm354_vm1, %v331_v50 }
 0x139   :  { %v5851_v56 = vpop.f32.mrf.mxu0 }
 0x13a   :  { %v6861_v57 = vadd.f32 %v5851_v56, %v6858_v55 }
 0x13b   :  { %v521_v58 = vpop.f32.mrf.mxu0  ;;  %v6875_v1 = vpop.f32.mrf.mxu1 }
 0x13c   :  { %v6864_v59 = vadd.f32 %v6858_v55, %v521_v58  ;;  %v754_v60 = vmul.f32 %v6861_v57, %v6861_v57  ;;  %v684_v3 = vsel %vm682_vm2, %v6861_v57, 0.0 }
 0x13d   :  { %v5854_v61 = vpop.f32.mrf.mxu0  ;;  %v6884_v9 = vpop.f32.mrf.mxu1 }
 0x13e   :  { %v683_v62 = vsel %vm682_vm2, %v6864_v59, 0.0  ;;  %v753_v63 = vmul.f32 %v6864_v59, %v6864_v59  ;;  %v6873_v0 = vadd.f32 %v5854_v61, %v6858_v55  ;;  %v786_v6 = vsel %vm682_vm2, %v754_v60, 0.0 }
 0x13f   :  { %v531_v2 = vpop.f32.mrf.mxu0  ;;  %v685_v7 = vadd.f32 %v684_v3, %v683_v62  ;;  %v6903_v24 = vpop.f32.mrf.mxu1 }
 0x140   :  { %v785_v4 = vsel %vm682_vm2, %v753_v63, 0.0  ;;  %v6881_v5 = vadd.f32 %v6858_v55, %v531_v2  ;;  %v756_v10 = vmul.f32 %v6873_v0, %v6873_v0  ;;  %v688_v17 = vsel %vm682_vm2, %v6873_v0, 0.0 }
 0x141   :  { %v5857_v8 = vpop.f32.mrf.mxu0  ;;  %v787_v14 = vadd.f32 %v786_v6, %v785_v4  ;;  %v6920_v39 = vpop.f32.mrf.mxu1 }
 0x142   :  { %v686_v11 = vsel %vm682_vm2, %v6881_v5, 0.0  ;;  %v755_v12 = vmul.f32 %v6881_v5, %v6881_v5  ;;  %v6893_v13 = vadd.f32 %v5857_v8, %v6858_v55  ;;  %v790_v25 = vsel %vm682_vm2, %v756_v10, 0.0 }
 0x143   :  { %v687_v15 = vadd.f32 %v686_v11, %v685_v7  ;;  %v541_v16 = vpop.f32.mrf.mxu0  ;;  %v6939_v54 = vpop.f32.mrf.mxu1 }
 0x144   :  { %v788_v18 = vsel %vm682_vm2, %v755_v12, 0.0  ;;  %v6899_v19 = vadd.f32 %v6858_v55, %v541_v16  ;;  %v758_v21 = vmul.f32 %v6893_v13, %v6893_v13  ;;  %v692_v32 = vsel %vm682_vm2, %v6893_v13, 0.0 }
 0x145   :  { %v789_v20 = vadd.f32 %v788_v18, %v787_v14  ;;  %v689_v22 = vadd.f32 %v688_v17, %v687_v15  ;;  %v5860_v23 = vpop.f32.mrf.mxu0  ;;  %v6956_v12 = vpop.f32.mrf.mxu1 }
 0x146   :  { %v690_v26 = vsel %vm682_vm2, %v6899_v19, 0.0  ;;  %v757_v27 = vmul.f32 %v6899_v19, %v6899_v19  ;;  %v6911_v28 = vadd.f32 %v5860_v23, %v6858_v55  ;;  %v794_v35 = vsel %vm682_vm2, %v758_v21, 0.0 }
 0x147   :  { %v691_v29 = vadd.f32 %v690_v26, %v689_v22  ;;  %v791_v30 = vadd.f32 %v790_v25, %v789_v20  ;;  %v551_v31 = vpop.f32.mrf.mxu0 }
 0x148   :  { %v792_v33 = vsel %vm682_vm2, %v757_v27, 0.0  ;;  %v6917_v34 = vadd.f32 %v6858_v55, %v551_v31  ;;  %v760_v40 = vmul.f32 %v6911_v28, %v6911_v28  ;;  %v696_v47 = vsel %vm682_vm2, %v6911_v28, 0.0  ;;  %v6975_v31 = vpop.f32.mrf.mxu1 }
 0x149   :  { %v793_v36 = vadd.f32 %v792_v33, %v791_v30  ;;  %v693_v37 = vadd.f32 %v692_v32, %v691_v29  ;;  %v5863_v38 = vpop.f32.mrf.mxu0 }
 0x14a   :  { %v694_v41 = vsel %vm682_vm2, %v6917_v34, 0.0  ;;  %v759_v42 = vmul.f32 %v6917_v34, %v6917_v34  ;;  %v6929_v43 = vadd.f32 %v5863_v38, %v6858_v55  ;;  %v798_v56 = vsel %vm682_vm2, %v760_v40, 0.0 }
 0x14b   :  { %v695_v44 = vadd.f32 %v694_v41, %v693_v37  ;;  %v795_v45 = vadd.f32 %v794_v35, %v793_v36  ;;  %v561_v46 = vpop.f32.mrf.mxu0 }
 0x14c   :  { %v796_v48 = vsel %vm682_vm2, %v759_v42, 0.0  ;;  %v6935_v49 = vadd.f32 %v6858_v55, %v561_v46  ;;  %v762_v51 = vmul.f32 %v6929_v43, %v6929_v43  ;;  %v700_v3 = vsel %vm682_vm2, %v6929_v43, 0.0 }
 0x14d   :  { %v797_v50 = vadd.f32 %v796_v48, %v795_v45  ;;  %v697_v52 = vadd.f32 %v696_v47, %v695_v44  ;;  %v5866_v53 = vpop.f32.mrf.mxu0 }
 0x14e   :  { %v698_v58 = vsel %vm682_vm2, %v6935_v49, 0.0  ;;  %v761_v60 = vmul.f32 %v6935_v49, %v6935_v49  ;;  %v6947_v61 = vadd.f32 %v5866_v53, %v6858_v55  ;;  %v802_v7 = vsel %vm682_vm2, %v762_v51, 0.0 }
 0x14f   :  { %v699_v62 = vadd.f32 %v698_v58, %v697_v52  ;;  %v799_v63 = vadd.f32 %v798_v56, %v797_v50  ;;  %v571_v2 = vpop.f32.mrf.mxu0  ;;  %v641_v50 = vpop.f32.mrf.mxu1 }
 0x150   :  { %v800_v4 = vsel %vm682_vm2, %v761_v60, 0.0  ;;  %v6953_v6 = vadd.f32 %v6858_v55, %v571_v2  ;;  %v764_v14 = vmul.f32 %v6947_v61, %v6947_v61  ;;  %v704_v22 = vsel %vm682_vm2, %v6947_v61, 0.0 }
 0x151   :  { %v801_v8 = vadd.f32 %v800_v4, %v799_v63  ;;  %v701_v10 = vadd.f32 %v700_v3, %v699_v62  ;;  %v5869_v11 = vpop.f32.mrf.mxu0  ;;  %v7009_v4 = vadd.f32 %v6858_v55, %v6884_v9 }
 0x152   :  { %v702_v15 = vsel %vm682_vm2, %v6953_v6, 0.0  ;;  %v763_v16 = vmul.f32 %v6953_v6, %v6953_v6  ;;  %v6965_v17 = vadd.f32 %v5869_v11, %v6858_v55  ;;  %v806_v32 = vsel %vm682_vm2, %v764_v14, 0.0  ;;  %v5890_v11 = vpop.f32.mrf.mxu1 }
 0x153   :  { %v703_v18 = vadd.f32 %v702_v15, %v701_v10  ;;  %v803_v20 = vadd.f32 %v802_v7, %v801_v8  ;;  %v581_v21 = vpop.f32.mrf.mxu0  ;;  %v7013_v10 = vadd.f32 %v6875_v1, %v6858_v55 }
 0x154   :  { %v804_v23 = vsel %vm682_vm2, %v763_v16, 0.0  ;;  %v6971_v25 = vadd.f32 %v6858_v55, %v581_v21  ;;  %v766_v27 = vmul.f32 %v6965_v17, %v6965_v17  ;;  %v708_v41 = vsel %vm682_vm2, %v6965_v17, 0.0 }
 0x155   :  { %v805_v26 = vadd.f32 %v804_v23, %v803_v20  ;;  %v705_v29 = vadd.f32 %v704_v22, %v703_v18  ;;  %v5872_v30 = vpop.f32.mrf.mxu0  ;;  %v771_v22 = vmul.f32 %v7009_v4, %v7009_v4  ;;  %v7029_v23 = vadd.f32 %v6858_v55, %v6920_v39 }
 0x156   :  { %v706_v33 = vsel %vm682_vm2, %v6971_v25, 0.0  ;;  %v765_v35 = vmul.f32 %v6971_v25, %v6971_v25  ;;  %v6983_v36 = vadd.f32 %v5872_v30, %v6858_v55  ;;  %v810_v45 = vsel %vm682_vm2, %v766_v27, 0.0 }
 0x157   :  { %v707_v37 = vadd.f32 %v706_v33, %v705_v29  ;;  %v807_v38 = vadd.f32 %v806_v32, %v805_v26  ;;  %v591_v40 = vpop.f32.mrf.mxu0  ;;  %v651_v29 = vpop.f32.mrf.mxu1  ;;  %v772_v32 = vmul.f32 %v7013_v10, %v7013_v10  ;;  %v718_v33 = vsel %vm682_vm2, %v7009_v4, 0.0 }
 0x158   :  { %v808_v42 = vsel %vm682_vm2, %v765_v35, 0.0  ;;  %v6989_v44 = vadd.f32 %v6858_v55, %v591_v40  ;;  %v768_v51 = vmul.f32 %v6983_v36, %v6983_v36  ;;  %v712_v63 = vsel %vm682_vm2, %v6983_v36, 0.0 }
 0x159   :  { %v809_v46 = vadd.f32 %v808_v42, %v807_v38  ;;  %v709_v47 = vadd.f32 %v708_v41, %v707_v37  ;;  %v5875_v48 = vpop.f32.mrf.mxu0  ;;  %v7038_v35 = vadd.f32 %v6903_v24, %v6858_v55  ;;  %v720_v39 = vsel %vm682_vm2, %v7013_v10, 0.0 }
 0x15a   :  { %v710_v52 = vsel %vm682_vm2, %v6989_v44, 0.0  ;;  %v767_v53 = vmul.f32 %v6989_v44, %v6989_v44  ;;  %v6999_v56 = vadd.f32 %v5875_v48, %v6858_v55  ;;  %v814_v14 = vsel %vm682_vm2, %v768_v51, 0.0 }
 0x15b   :  { %v711_v58 = vadd.f32 %v710_v52, %v709_v47  ;;  %v811_v60 = vadd.f32 %v810_v45, %v809_v46  ;;  %v601_v62 = vpop.f32.mrf.mxu0  ;;  %v820_v40 = vsel %vm682_vm2, %v771_v22, 0.0  ;;  %v773_v41 = vmul.f32 %v7029_v23, %v7029_v23  ;;  %v5893_v47 = vpop.f32.mrf.mxu1 }
 0x15c   :  { %v812_v2 = vsel %vm682_vm2, %v767_v53, 0.0  ;;  %v7005_v3 = vadd.f32 %v6858_v55, %v601_v62  ;;  %v770_v15 = vmul.f32 %v6999_v56, %v6999_v56  ;;  %v716_v21 = vsel %vm682_vm2, %v6999_v56, 0.0 }
 0x15d   :  { %v813_v7 = vadd.f32 %v812_v2, %v811_v60  ;;  %v713_v8 = vadd.f32 %v712_v63, %v711_v58  ;;  %v7047_v42 = vadd.f32 %v6858_v55, %v6956_v12  ;;  %v822_v24 = vsel %vm682_vm2, %v772_v32, 0.0 }
 0x15e   :  { %v714_v16 = vsel %vm682_vm2, %v7005_v3, 0.0  ;;  %v769_v18 = vmul.f32 %v7005_v3, %v7005_v3  ;;  %v818_v30 = vsel %vm682_vm2, %v770_v15, 0.0  ;;  %v774_v48 = vmul.f32 %v7038_v35, %v7038_v35 }
 0x15f   :  { %v715_v9 = vadd.f32 %v714_v16, %v713_v8  ;;  %v815_v20 = vadd.f32 %v814_v14, %v813_v7  ;;  %v722_v51 = vsel %vm682_vm2, %v7029_v23, 0.0  ;;  %v7056_v52 = vadd.f32 %v6939_v54, %v6858_v55  ;;  %v661_v8 = vpop.f32.mrf.mxu1 }
 0x160   :  { %v816_v1 = vsel %vm682_vm2, %v769_v18, 0.0  ;;  %v724_v12 = vsel %vm682_vm2, %v7038_v35, 0.0  ;;  %v824_v60 = vsel %vm682_vm2, %v773_v41, 0.0  ;;  %v775_v62 = vmul.f32 %v7047_v42, %v7047_v42 }
 0x161   :  { %v817_v26 = vadd.f32 %v816_v1, %v815_v20  ;;  %v717_v27 = vadd.f32 %v716_v21, %v715_v9  ;;  %v7064_v63 = vadd.f32 %v6858_v55, %v641_v50  ;;  %v826_v14 = vsel %vm682_vm2, %v774_v48, 0.0 }
 0x162   :  { %v776_v54 = vmul.f32 %v7056_v52, %v7056_v52  ;;  %v726_v15 = vsel %vm682_vm2, %v7047_v42, 0.0  ;;  %v7073_v16 = vadd.f32 %v6975_v31, %v6858_v55  ;;  %v728_v50 = vsel %vm682_vm2, %v7056_v52, 0.0 }
 0x163   :  { %v719_v37 = vadd.f32 %v718_v33, %v717_v27  ;;  %v819_v38 = vadd.f32 %v818_v30, %v817_v26  ;;  %v828_v20 = vsel %vm682_vm2, %v775_v62, 0.0  ;;  %v777_v21 = vmul.f32 %v7064_v63, %v7064_v63  ;;  %v5896_v27 = vpop.f32.mrf.mxu1 }
 0x164   :  { %v7081_v1 = vadd.f32 %v6858_v55, %v651_v29  ;;  %v830_v30 = vsel %vm682_vm2, %v776_v54, 0.0  ;;  %v778_v31 = vmul.f32 %v7073_v16, %v7073_v16  ;;  %v730_v32 = vsel %vm682_vm2, %v7064_v63, 0.0 }
 0x165   :  { %v821_v45 = vadd.f32 %v820_v40, %v819_v38  ;;  %v721_v46 = vadd.f32 %v720_v39, %v719_v37  ;;  %v7089_v33 = vadd.f32 %v5890_v11, %v6858_v55  ;;  %v732_v29 = vsel %vm682_vm2, %v7073_v16, 0.0 }
 0x166   :  { %v832_v39 = vsel %vm682_vm2, %v777_v21, 0.0  ;;  %v779_v40 = vmul.f32 %v7081_v1, %v7081_v1  ;;  %v7097_v41 = vadd.f32 %v6858_v55, %v661_v8  ;;  %v834_v48 = vsel %vm682_vm2, %v778_v31, 0.0 }
 0x167   :  { %v723_v53 = vadd.f32 %v722_v51, %v721_v46  ;;  %v823_v58 = vadd.f32 %v822_v24, %v821_v45  ;;  %v671_v24 = vpop.f32.mrf.mxu1  ;;  %v780_v11 = vmul.f32 %v7089_v33, %v7089_v33  ;;  %v734_v51 = vsel %vm682_vm2, %v7081_v1, 0.0 }
 0x168   :  { %v836_v62 = vsel %vm682_vm2, %v779_v40, 0.0 }
 0x169   :  { %v825_v2 = vadd.f32 %v824_v60, %v823_v58  ;;  %v725_v7 = vadd.f32 %v724_v12, %v723_v53  ;;  %v7105_v53 = vadd.f32 %v5893_v47, %v6858_v55  ;;  %v736_v60 = vsel %vm682_vm2, %v7089_v33, 0.0 }
 0x16a   :  { %v838_v54 = vsel %vm682_vm2, %v780_v11, 0.0 }
 0x16b   :  { %v727_v18 = vadd.f32 %v726_v15, %v725_v7  ;;  %v827_v9 = vadd.f32 %v826_v14, %v825_v2  ;;  %v781_v2 = vmul.f32 %v7097_v41, %v7097_v41  ;;  %v7113_v7 = vadd.f32 %v6858_v55, %v671_v24 }
 0x16c   :  { %v782_v47 = vmul.f32 %v7105_v53, %v7105_v53  ;;  %v738_v15 = vsel %vm682_vm2, %v7097_v41, 0.0 }
 0x16d   :  { %v829_v22 = vadd.f32 %v828_v20, %v827_v9  ;;  %v729_v26 = vadd.f32 %v728_v50, %v727_v18  ;;  %v7121_v18 = vadd.f32 %v5896_v27, %v6858_v55  ;;  %v740_v20 = vsel %vm682_vm2, %v7105_v53, 0.0 }
 0x16e   :  { %v840_v21 = vsel %vm682_vm2, %v781_v2, 0.0  ;;  %v842_v31 = vsel %vm682_vm2, %v782_v47, 0.0  ;;  %v742_v55 = vsel %vm682_vm2, %v7113_v7, 0.0 }
 0x16f   :  { %v731_v37 = vadd.f32 %v730_v32, %v729_v26  ;;  %v831_v38 = vadd.f32 %v830_v30, %v829_v22  ;;  %v783_v22 = vmul.f32 %v7113_v7, %v7113_v7  ;;  %v784_v32 = vmul.f32 %v7121_v18, %v7121_v18 }
 0x171   :  { %v833_v45 = vadd.f32 %v832_v39, %v831_v38  ;;  %v733_v46 = vadd.f32 %v732_v29, %v731_v37  ;;  %v744_v38 = vsel %vm682_vm2, %v7121_v18, 0.0  ;;  %v844_v29 = vsel %vm682_vm2, %v783_v22, 0.0 }
 0x173   :  { %v735_v58 = vadd.f32 %v734_v51, %v733_v46  ;;  %v835_v12 = vadd.f32 %v834_v48, %v833_v45  ;;  %v846_v45 = vsel %vm682_vm2, %v784_v32, 0.0 }
 0x175   :  { %v837_v8 = vadd.f32 %v836_v62, %v835_v12  ;;  %v737_v14 = vadd.f32 %v736_v60, %v735_v58 }
 0x177   :  { %v739_v9 = vadd.f32 %v738_v15, %v737_v14  ;;  %v839_v50 = vadd.f32 %v838_v54, %v837_v8 }
 0x179   :  { %v841_v26 = vadd.f32 %v840_v21, %v839_v50  ;;  %v741_v30 = vadd.f32 %v740_v20, %v739_v9 }
 0x17b   :  { %v743_v27 = vadd.f32 %v742_v55, %v741_v30  ;;  %v843_v37 = vadd.f32 %v842_v31, %v841_v26 }
 0x17d   :  { %v745_v39 = vadd.f32 %v744_v38, %v743_v27  ;;  %v845_v40 = vadd.f32 %v844_v29, %v843_v37 }
 0x17f   :  { %v746_v46 = vrot.slane %v745_v39, 4  ;;  %v847_v24 = vadd.f32 %v846_v45, %v845_v40 }
 0x181   :  { %v747_v48 = vadd.f32 %v746_v46, %v745_v39  ;;  %v848_v11 = vrot.slane %v847_v24, 4 }
 0x183   :  { %v748_v51 = vrot.slane %v747_v48, 2  ;;  %v849_v58 = vadd.f32 %v848_v11, %v847_v24 }
 0x185   :  { %v749_v12 = vadd.f32 %v748_v51, %v747_v48  ;;  %v850_v60 = vrot.slane %v849_v58, 2 }
 0x187   :  { %v750_v62 = vrot.slane %v749_v12, 1  ;;  %v851_v2 = vadd.f32 %v850_v60, %v849_v58 }
 0x189   :  { %v751_v8 = vadd.f32 %v750_v62, %v749_v12  ;;  %v852_v14 = vrot.slane %v851_v2, 1 }
 0x18b   :  { %v7137_v54 = vmul.f32 0.00390625, %v751_v8  ;;  %v853_v47 = vadd.f32 %v852_v14, %v851_v2 }
 0x18d   :  { %v854_v15 = vmul.f32 0.00390625, %v853_v47  ;;  %v855_v9 = vmul.f32 %v7137_v54, %v7137_v54  ;;  %v888_v22 = vsub.f32 %v7113_v7, %v7137_v54  ;;  %v858_v26 = vsub.f32 %v6864_v59, %v7137_v54 }
 0x18e   :  { %v859_v30 = vsub.f32 %v6861_v57, %v7137_v54  ;;  %v860_v31 = vsub.f32 %v6881_v5, %v7137_v54  ;;  %v861_v32 = vsub.f32 %v6873_v0, %v7137_v54  ;;  %v862_v55 = vsub.f32 %v6899_v19, %v7137_v54 }
 0x18f   :  { %v856_v50 = vsub.f32 %v854_v15, %v855_v9  ;;  %v863_v27 = vsub.f32 %v6893_v13, %v7137_v54  ;;  %v864_v7 = vsub.f32 %v6917_v34, %v7137_v54  ;;  %v865_v59 = vsub.f32 %v6911_v28, %v7137_v54 }
 0x190   :  { %v866_v57 = vsub.f32 %v6935_v49, %v7137_v54  ;;  %v867_v5 = vsub.f32 %v6929_v43, %v7137_v54  ;;  %v868_v0 = vsub.f32 %v6953_v6, %v7137_v54  ;;  %v869_v19 = vsub.f32 %v6947_v61, %v7137_v54 }
 0x191   :  { %v857_v20 = vmax.f32 %v856_v50, 0.0  ;;  %v870_v13 = vsub.f32 %v6971_v25, %v7137_v54  ;;  %v871_v34 = vsub.f32 %v6965_v17, %v7137_v54  ;;  %v872_v28 = vsub.f32 %v6989_v44, %v7137_v54 }
 0x192   :  { %v873_v49 = vsub.f32 %v6983_v36, %v7137_v54  ;;  %v874_v43 = vsub.f32 %v7005_v3, %v7137_v54  ;;  %v875_v6 = vsub.f32 %v6999_v56, %v7137_v54  ;;  %v876_v61 = vsub.f32 %v7009_v4, %v7137_v54 }
 0x193   :  { %v890_v21 = vadd.f32 1e-05, %v857_v20  ;;  %v877_v25 = vsub.f32 %v7013_v10, %v7137_v54  ;;  %v878_v17 = vsub.f32 %v7029_v23, %v7137_v54  ;;  %v879_v44 = vsub.f32 %v7038_v35, %v7137_v54  ;;  %v7195_v10 = vld [vmem:[#allocation15] ss:$0 sm:$0xff] }
 0x194   :  { %v880_v36 = vsub.f32 %v7047_v42, %v7137_v54  ;;  %v881_v3 = vsub.f32 %v7056_v52, %v7137_v54  ;;  %v882_v56 = vsub.f32 %v7064_v63, %v7137_v54  ;;  %v883_v4 = vsub.f32 %v7073_v16, %v7137_v54 }
 0x195   :  { %5998 = vrsqrt.f32 %v890_v21  ;;  %v884_v23 = vsub.f32 %v7081_v1, %v7137_v54  ;;  %v885_v35 = vsub.f32 %v7089_v33, %v7137_v54  ;;  %v886_v42 = vsub.f32 %v7097_v41, %v7137_v54 }
 0x196   :  { %v887_v52 = vsub.f32 %v7105_v53, %v7137_v54  ;;  %v889_v63 = vsub.f32 %v7121_v18, %v7137_v54 }
 0x1a2   :  { %v5999_v37 = vpop.eup %5998 }
 0x1a3   :  { %v922_v38 = vmul.f32 %v5999_v37, %v888_v22  ;;  %v892_v16 = vmul.f32 %v5999_v37, %v858_v26  ;;  %v893_v29 = vmul.f32 %v5999_v37, %v859_v30  ;;  %v894_v39 = vmul.f32 %v5999_v37, %v860_v31 }
 0x1a4   :  { %v895_v40 = vmul.f32 %v5999_v37, %v861_v32  ;;  %v896_v45 = vmul.f32 %v5999_v37, %v862_v55  ;;  %v897_v46 = vmul.f32 %v5999_v37, %v863_v27  ;;  %v898_v33 = vmul.f32 %v5999_v37, %v864_v7 }
 0x1a5   :  { %v7208_v1 = vmul.f32 %v7195_v10, %v922_v38  ;;  %v899_v24 = vmul.f32 %v5999_v37, %v865_v59  ;;  %v900_v48 = vmul.f32 %v5999_v37, %v866_v57  ;;  %v901_v41 = vmul.f32 %v5999_v37, %v867_v5 }
 0x1a6   :  { %v902_v11 = vmul.f32 %v5999_v37, %v868_v0  ;;  %v903_v51 = vmul.f32 %v5999_v37, %v869_v19  ;;  %v904_v53 = vmul.f32 %v5999_v37, %v870_v13  ;;  %v905_v58 = vmul.f32 %v5999_v37, %v871_v34 }
 0x1a7   :  { %v906_v12 = vmul.f32 %v5999_v37, %v872_v28  ;;  %v907_v60 = vmul.f32 %v5999_v37, %v873_v49  ;;  %v908_v18 = vmul.f32 %v5999_v37, %v874_v43  ;;  %v909_v62 = vmul.f32 %v5999_v37, %v875_v6 }
 0x1a8   :  { %v910_v2 = vmul.f32 %v5999_v37, %v876_v61  ;;  %v911_v8 = vmul.f32 %v5999_v37, %v877_v25  ;;  %v912_v14 = vmul.f32 %v5999_v37, %v878_v17  ;;  %v913_v54 = vmul.f32 %v5999_v37, %v879_v44  ;;  %v7234_v17 = vld [vmem:[#allocation17] ss:$0 sm:$0xff] }
 0x1a9   :  { %v914_v47 = vmul.f32 %v5999_v37, %v880_v36  ;;  %v915_v15 = vmul.f32 %v5999_v37, %v881_v3  ;;  %v916_v9 = vmul.f32 %v5999_v37, %v882_v56  ;;  %v917_v50 = vmul.f32 %v5999_v37, %v883_v4 }
 0x1aa   :  { %v918_v20 = vmul.f32 %v5999_v37, %v884_v23  ;;  %v919_v21 = vmul.f32 %v5999_v37, %v885_v35  ;;  %v920_v22 = vmul.f32 %v5999_v37, %v886_v42  ;;  %v921_v26 = vmul.f32 %v5999_v37, %v887_v52 }
 0x1ab   :  { %v7210_v30 = vmul.f32 %v5999_v37, %v889_v63  ;;  %v930_v31 = vmul.f32 %v7195_v10, %v892_v16  ;;  %v931_v32 = vmul.f32 %v7195_v10, %v893_v29  ;;  %v932_v55 = vmul.f32 %v7195_v10, %v894_v39 }
 0x1ac   :  { %v933_v27 = vmul.f32 %v7195_v10, %v895_v40  ;;  %v934_v7 = vmul.f32 %v7195_v10, %v896_v45  ;;  %v935_v59 = vmul.f32 %v7195_v10, %v897_v46  ;;  %v936_v57 = vmul.f32 %v7195_v10, %v898_v33 }
 0x1ad   :  { %v937_v5 = vmul.f32 %v7195_v10, %v899_v24  ;;  %v938_v0 = vmul.f32 %v7195_v10, %v900_v48  ;;  %v939_v19 = vmul.f32 %v7195_v10, %v901_v41  ;;  %v940_v13 = vmul.f32 %v7195_v10, %v902_v11 }
 0x1ae   :  { %v941_v34 = vmul.f32 %v7195_v10, %v903_v51  ;;  %v942_v28 = vmul.f32 %v7195_v10, %v904_v53  ;;  %v943_v49 = vmul.f32 %v7195_v10, %v905_v58  ;;  %v944_v43 = vmul.f32 %v7195_v10, %v906_v12 }
 0x1af   :  { %v945_v6 = vmul.f32 %v7195_v10, %v907_v60  ;;  %v7229_v61 = vmul.f32 %v7195_v10, %v908_v18  ;;  %v7232_v25 = vmul.f32 %v7195_v10, %v909_v62  ;;  %v7237_v44 = vmul.f32 %v7195_v10, %v910_v2 }
 0x1b0   :  { %v7240_v36 = vmul.f32 %v7195_v10, %v911_v8  ;;  %v7243_v3 = vmul.f32 %v7195_v10, %v912_v14  ;;  %v7246_v56 = vmul.f32 %v7195_v10, %v913_v54  ;;  %v7249_v4 = vmul.f32 %v7195_v10, %v914_v47 }
 0x1b1   :  { %v7252_v37 = vmul.f32 %v7195_v10, %v915_v15  ;;  %v7255_v23 = vmul.f32 %v7195_v10, %v916_v9  ;;  %v7258_v35 = vmul.f32 %v7195_v10, %v917_v50  ;;  %v7261_v42 = vmul.f32 %v7195_v10, %v918_v20 }
 0x1b2   :  { %v7264_v52 = vmul.f32 %v7195_v10, %v919_v21  ;;  %v7267_v38 = vmul.f32 %v7195_v10, %v920_v22  ;;  %v7270_v63 = vmul.f32 %v7195_v10, %v921_v26  ;;  %v970_v16 = vadd.f32 %v7234_v17, %v932_v55 }
 0x1b3   :  { %v971_v29 = vadd.f32 %v7234_v17, %v933_v27  ;;  %v968_v39 = vadd.f32 %v7234_v17, %v930_v31  ;;  %v969_v40 = vadd.f32 %v7234_v17, %v931_v32  ;;  %v972_v45 = vadd.f32 %v7234_v17, %v934_v7 }
 0x1b4   :  { %v973_v46 = vadd.f32 %v7234_v17, %v935_v59  ;;  %v974_v33 = vadd.f32 %v7234_v17, %v936_v57  ;;  %v975_v24 = vadd.f32 %v7234_v17, %v937_v5  ;;  %v1002_v48 = vmax.f32 %v970_v16, 0.0 }
 0x1b5   :  { %v1003_v41 = vmax.f32 %v971_v29, 0.0  ;;  %v1000_v11 = vmax.f32 %v968_v39, 0.0  ;;  %v1001_v51 = vmax.f32 %v969_v40, 0.0  ;;  %v1004_v53 = vmax.f32 %v972_v45, 0.0 }
 0x1b6   :  { %v1005_v58 = vmax.f32 %v973_v46, 0.0  ;;  %v7280_v12 = vmax.f32 %v974_v33, 0.0  ;;  %v1007_v60 = vmax.f32 %v975_v24, 0.0  ;;  %v5761_v62 = vpack.c.bf16 %v1002_v48, %v1002_v48 }
 0x1b7   :  { %v1033_v18 = vpack.c.bf16 %v1003_v41, %v1002_v48  ;;  %v5762_v2 = vpack.c.bf16 %v1003_v41, %v1003_v41  ;;  %v1032_v8 = vpack.c.bf16 %v1001_v51, %v1000_v11  ;;  %v5759_v14 = vpack.c.bf16 %v1000_v11, %v1000_v11 }
 0x1b8   :  { %v5760_v54 = vpack.c.bf16 %v1001_v51, %v1001_v51  ;;  %v1034_v47 = vpack.c.bf16 %v1005_v58, %v1004_v53  ;;  %v5763_v15 = vpack.c.bf16 %v1004_v53, %v1004_v53  ;;  %1163 = vst.msk [vmem:[#allocation8 + $0x8] sm:$0xf] %vm1160_vm3, %v5761_v62  ;;  %v5764_v9 = vpack.c.bf16 %v1005_v58, %v1005_v58 }
 0x1b9   :  { %1164 = vst.msk [vmem:[#allocation8 + $0xc] sm:$0xf] %vm1160_vm3, %v5762_v2  ;;  %5905 = vmatprep.mubr.msk.bf16.mxu1 %vm682_vm2, %v1032_v8  ;;  %v1035_v50 = vpack.c.bf16 %v1007_v60, %v7280_v12  ;;  %v5765_v20 = vpack.c.bf16 %v7280_v12, %v7280_v12  ;;  %v5766_v21 = vpack.c.bf16 %v1007_v60, %v1007_v60  ;;  %1161 = vst.msk [vmem:[#allocation8] sm:$0xf] %vm1160_vm3, %v5759_v14 }
 0x1ba   :  { %1162 = vst.msk [vmem:[#allocation8 + $0x4] sm:$0xf] %vm1160_vm3, %v5760_v54  ;;  %5906 = vmatmul.mubr.msk.bf16.vlgmr.msra.gmra.mxu1 %vm682_vm2, %v1033_v18  ;;  %1165 = vst.msk [vmem:[#allocation8 + $0x10] sm:$0xf] %vm1160_vm3, %v5763_v15  ;;  %v976_v22 = vadd.f32 %v7234_v17, %v938_v0  ;;  %v977_v26 = vadd.f32 %v7234_v17, %v939_v19  ;;  %v978_v31 = vadd.f32 %v7234_v17, %v940_v13 }
 0x1bb   :  { %v979_v32 = vadd.f32 %v7234_v17, %v941_v34  ;;  %1166 = vst.msk [vmem:[#allocation8 + $0x14] sm:$0xf] %vm1160_vm3, %v5764_v9  ;;  %5909 = vmatprep.mubr.msk.bf16.mxu1 %vm682_vm2, %v1034_v47  ;;  %1167 = vst.msk [vmem:[#allocation8 + $0x18] sm:$0xf] %vm1160_vm3, %v5765_v20  ;;  %v980_v55 = vadd.f32 %v7234_v17, %v942_v28  ;;  %v981_v27 = vadd.f32 %v7234_v17, %v943_v49 }
 0x1bc   :  { %1168 = vst.msk [vmem:[#allocation8 + $0x1c] sm:$0xf] %vm1160_vm3, %v5766_v21  ;;  %v982_v7 = vadd.f32 %v7234_v17, %v944_v43  ;;  %v983_v59 = vadd.f32 %v7234_v17, %v945_v6  ;;  %v1008_v57 = vmax.f32 %v976_v22, 0.0  ;;  %v1009_v5 = vmax.f32 %v977_v26, 0.0 }
 0x1bd   :  { %v7304_v0 = vmax.f32 %v978_v31, 0.0  ;;  %v7306_v19 = vmax.f32 %v979_v32, 0.0  ;;  %v7308_v13 = vmax.f32 %v980_v55, 0.0  ;;  %v7310_v34 = vmax.f32 %v981_v27, 0.0 }
 0x1be   :  { %v7312_v16 = vmax.f32 %v982_v7, 0.0  ;;  %v7314_v29 = vmax.f32 %v983_v59, 0.0  ;;  %v1036_v28 = vpack.c.bf16 %v1009_v5, %v1008_v57  ;;  %v5767_v49 = vpack.c.bf16 %v1008_v57, %v1008_v57 }
 0x1bf   :  { %v5768_v39 = vpack.c.bf16 %v1009_v5, %v1009_v5  ;;  %v1037_v43 = vpack.c.bf16 %v7306_v19, %v7304_v0  ;;  %v5769_v6 = vpack.c.bf16 %v7304_v0, %v7304_v0  ;;  %v5770_v40 = vpack.c.bf16 %v7306_v19, %v7306_v19 }
 0x1c0   :  { %v1038_v45 = vpack.c.bf16 %v7310_v34, %v7308_v13  ;;  %v5771_v46 = vpack.c.bf16 %v7308_v13, %v7308_v13  ;;  %1169 = vst.msk [vmem:[#allocation8 + $0x20] sm:$0xf] %vm1160_vm3, %v5767_v49  ;;  %v5772_v33 = vpack.c.bf16 %v7310_v34, %v7310_v34  ;;  %v1039_v24 = vpack.c.bf16 %v7314_v29, %v7312_v16 }
 0x1c1   :  { %1170 = vst.msk [vmem:[#allocation8 + $0x24] sm:$0xf] %vm1160_vm3, %v5768_v39  ;;  %v5773_v48 = vpack.c.bf16 %v7312_v16, %v7312_v16  ;;  %v5774_v41 = vpack.c.bf16 %v7314_v29, %v7314_v29  ;;  %1171 = vst.msk [vmem:[#allocation8 + $0x28] sm:$0xf] %vm1160_vm3, %v5769_v6  ;;  %v984_v11 = vadd.f32 %v7234_v17, %v7229_v61  ;;  %v5976_v29 = vld [vmem:[%s9441_s9 + $0x74] ss:$8 sps:$4 sm:$0xff]  }
 0x1c2   :  { %1172 = vst.msk [vmem:[#allocation8 + $0x2c] sm:$0xf] %vm1160_vm3, %v5770_v40  ;;  %1173 = vst.msk [vmem:[#allocation8 + $0x30] sm:$0xf] %vm1160_vm3, %v5771_v46  ;;  %v985_v51 = vadd.f32 %v7234_v17, %v7232_v25  ;;  %v986_v53 = vadd.f32 %v7234_v17, %v7237_v44  ;;  %v987_v58 = vadd.f32 %v7234_v17, %v7240_v36  ;;  %5910 = vmatmul.mubr.msk.bf16.gmra.mxu1 %vm682_vm2, %v1035_v50  ;;  %v5979_v46 = vld [vmem:[%s9441_s9 + $0x64] ss:$8 sps:$4 sm:$0xff]  }
 0x1c3   :  { %1174 = vst.msk [vmem:[#allocation8 + $0x34] sm:$0xf] %vm1160_vm3, %v5772_v33  ;;  %1175 = vst.msk [vmem:[#allocation8 + $0x38] sm:$0xf] %vm1160_vm3, %v5773_v48  ;;  %v988_v61 = vadd.f32 %v7234_v17, %v7243_v3  ;;  %v989_v25 = vadd.f32 %v7234_v17, %v7246_v56  ;;  %v990_v44 = vadd.f32 %v7234_v17, %v7249_v4  ;;  %5913 = vmatprep.mubr.msk.bf16.mxu1 %vm682_vm2, %v1036_v28  ;;  %v5977_v33 = vld [vmem:[%s9441_s9 + $0x60] ss:$8 sps:$4 sm:$0xff]  }
 0x1c4   :  { %1176 = vst.msk [vmem:[#allocation8 + $0x3c] sm:$0xf] %vm1160_vm3, %v5774_v41  ;;  %v991_v36 = vadd.f32 %v7234_v17, %v7252_v37  ;;  %v7360_v12 = vmax.f32 %v984_v11, 0.0  ;;  %v7362_v60 = vmax.f32 %v985_v51, 0.0  ;;  %v7364_v18 = vmax.f32 %v986_v53, 0.0  ;;  %1852 = vmatprep.subr.bf16.mxu0 %v5976_v29 }
 0x1c5   :  { %v7366_v62 = vmax.f32 %v987_v58, 0.0  ;;  %v7368_v3 = vmax.f32 %v988_v61, 0.0  ;;  %v7370_v2 = vmax.f32 %v989_v25, 0.0  ;;  %v7372_v56 = vmax.f32 %v990_v44, 0.0  ;;  %v5980_v48 = vld [vmem:[%s9441_s9 + $0x50] ss:$8 sps:$4 sm:$0xff]  }
 0x1c6   :  { %v7374_v4 = vmax.f32 %v991_v36, 0.0  ;;  %v961_v37 = vmul.f32 %v7195_v10, %v7210_v30  ;;  %v1040_v8 = vpack.c.bf16 %v7362_v60, %v7360_v12  ;;  %v5775_v14 = vpack.c.bf16 %v7360_v12, %v7360_v12  ;;  %v5985_v41 = vld [vmem:[%s9441_s9 + $0x44] ss:$8 sps:$4 sm:$0xff]   ;;  %v5983_v11 = vld [vmem:[%s9441_s9 + $0x40] ss:$8 sps:$4 sm:$0xff]  }
 0x1c7   :  { %v5776_v54 = vpack.c.bf16 %v7362_v60, %v7362_v60  ;;  %v5777_v47 = vpack.c.bf16 %v7364_v18, %v7364_v18  ;;  %v5778_v15 = vpack.c.bf16 %v7366_v62, %v7366_v62  ;;  %v5779_v9 = vpack.c.bf16 %v7368_v3, %v7368_v3  ;;  %v5988_v51 = vld [vmem:[%s9441_s9 + $0x34] ss:$8 sps:$4 sm:$0xff]   ;;  %v5986_v53 = vld [vmem:[%s9441_s9 + $0x30] ss:$8 sps:$4 sm:$0xff]   ;;  %v5991_v58 = vld [vmem:[%s9441_s9 + $0x24] ss:$8 sps:$4 sm:$0xff]  }
 0x1c8   :  { %1177 = vst.msk [vmem:[#allocation8 + $0x40] sm:$0xf] %vm1160_vm3, %v5775_v14  ;;  %v5780_v10 = vpack.c.bf16 %v7370_v2, %v7370_v2  ;;  %v5781_v30 = vpack.c.bf16 %v7372_v56, %v7372_v56  ;;  %v5782_v50 = vpack.c.bf16 %v7374_v4, %v7374_v4  ;;  %v992_v20 = vadd.f32 %v7234_v17, %v7255_v23  ;;  %v5989_v25 = vld [vmem:[%s9441_s9 + $0x20] ss:$8 sps:$4 sm:$0xff]   ;;  %v5994_v44 = vld [vmem:[%s9441_s9 + $0x14] ss:$8 sps:$4 sm:$0xff]  }
 0x1c9   :  { %1178 = vst.msk [vmem:[#allocation8 + $0x44] sm:$0xf] %vm1160_vm3, %v5776_v54  ;;  %1179 = vst.msk [vmem:[#allocation8 + $0x48] sm:$0xf] %vm1160_vm3, %v5777_v47  ;;  %v993_v21 = vadd.f32 %v7234_v17, %v7258_v35  ;;  %v994_v22 = vadd.f32 %v7234_v17, %v7261_v42  ;;  %v995_v26 = vadd.f32 %v7234_v17, %v7264_v52  ;;  %v6549_v61 = vmov 0  }
 0x1ca   :  { %1180 = vst.msk [vmem:[#allocation8 + $0x4c] sm:$0xf] %vm1160_vm3, %v5778_v15  ;;  %1181 = vst.msk [vmem:[#allocation8 + $0x50] sm:$0xf] %vm1160_vm3, %v5779_v9  ;;  %v996_v31 = vadd.f32 %v7234_v17, %v7267_v38  ;;  %v997_v23 = vadd.f32 %v7234_v17, %v7270_v63  ;;  %v998_v35 = vadd.f32 %v7234_v17, %v7208_v1  ;;  %5914 = vmatmul.mubr.msk.bf16.gmra.mxu1 %vm682_vm2, %v1037_v43  ;;  %v5992_v12 = vld [vmem:[%s9441_s9 + $0x10] ss:$8 sps:$4 sm:$0xff]  }
 0x1cb   :  { %1182 = vst.msk [vmem:[#allocation8 + $0x54] sm:$0xf] %vm1160_vm3, %v5780_v10  ;;  %1183 = vst.msk [vmem:[#allocation8 + $0x58] sm:$0xf] %vm1160_vm3, %v5781_v30  ;;  %v999_v42 = vadd.f32 %v7234_v17, %v961_v37  ;;  %v1024_v52 = vmax.f32 %v992_v20, 0.0  ;;  %v1025_v32 = vmax.f32 %v993_v21, 0.0  ;;  %5917 = vmatprep.mubr.msk.bf16.mxu1 %vm682_vm2, %v1038_v45  ;;  %v1041_v43 = vpack.c.bf16 %v7366_v62, %v7364_v18 }
 0x1cc   :  { %1184 = vst.msk [vmem:[#allocation8 + $0x5c] sm:$0xf] %vm1160_vm3, %v5782_v50  ;;  %v1026_v55 = vmax.f32 %v994_v22, 0.0  ;;  %v1027_v27 = vmax.f32 %v995_v26, 0.0  ;;  %v1028_v38 = vmax.f32 %v996_v31, 0.0  ;;  %v1029_v7 = vmax.f32 %v997_v23, 0.0  ;;  %1884 = vmatprep.mubr.bf16.mxu0 %v6549_v61 }
 0x1cd   :  { %v1030_v59 = vmax.f32 %v998_v35, 0.0  ;;  %v1031_v63 = vmax.f32 %v999_v42, 0.0  ;;  %v1044_v57 = vpack.c.bf16 %v1025_v32, %v1024_v52  ;;  %v5783_v5 = vpack.c.bf16 %v1024_v52, %v1024_v52  ;;  %v5974_v45 = vld [vmem:[%s9441_s9 + $0x70] ss:$8 sps:$4 sm:$0xff]   ;;  %v5997_v18 = vld [vmem:[%s9441_s9 + $0x4] ss:$8 sps:$4 sm:$0xff]  }
 0x1ce   :  { %v5784_v1 = vpack.c.bf16 %v1025_v32, %v1025_v32  ;;  %v1045_v0 = vpack.c.bf16 %v1027_v27, %v1026_v55  ;;  %v5785_v17 = vpack.c.bf16 %v1026_v55, %v1026_v55  ;;  %v5786_v19 = vpack.c.bf16 %v1027_v27, %v1027_v27  ;;  %1853 = vmatpush1.bf16.msra.mxu0 %v5974_v45  ;;  %v7496_v62 = vld [vmem:[#allocation20] ss:$0 sm:$0xff] }
 0x1cf   :  { %v1046_v28 = vpack.c.bf16 %v1029_v7, %v1028_v38  ;;  %v5787_v49 = vpack.c.bf16 %v1028_v38, %v1028_v38  ;;  %1185 = vst.msk [vmem:[#allocation8 + $0x60] sm:$0xf] %vm1160_vm3, %v5783_v5  ;;  %v5788_v39 = vpack.c.bf16 %v1029_v7, %v1029_v7  ;;  %v5789_v13 = vpack.c.bf16 %v1030_v59, %v1030_v59 }
 0x1d0   :  { %1186 = vst.msk [vmem:[#allocation8 + $0x64] sm:$0xf] %vm1160_vm3, %v5784_v1  ;;  %v5790_v34 = vpack.c.bf16 %v1031_v63, %v1031_v63  ;;  %1187 = vst.msk [vmem:[#allocation8 + $0x68] sm:$0xf] %vm1160_vm3, %v5785_v17  ;;  %v1042_v6 = vpack.c.bf16 %v7370_v2, %v7368_v3  ;;  %v1043_v40 = vpack.c.bf16 %v7374_v4, %v7372_v56  ;;  %1854 = vmatprep.subr.bf16.mxu0 %v5979_v46  ;;  %v5995_v56 = vld [vmem:[%s9441_s9] ss:$8 sps:$4 sm:$0xff]  }
 0x1d1   :  { %1188 = vst.msk [vmem:[#allocation8 + $0x6c] sm:$0xf] %vm1160_vm3, %v5786_v19  ;;  %1189 = vst.msk [vmem:[#allocation8 + $0x70] sm:$0xf] %vm1160_vm3, %v5787_v49  ;;  %v1047_v16 = vpack.c.bf16 %v1031_v63, %v1030_v59 }
 0x1d2   :  { %1190 = vst.msk [vmem:[#allocation8 + $0x74] sm:$0xf] %vm1160_vm3, %v5788_v39  ;;  %1191 = vst.msk [vmem:[#allocation8 + $0x78] sm:$0xf] %vm1160_vm3, %v5789_v13  ;;  %5918 = vmatmul.mubr.msk.bf16.gmra.mxu1 %vm682_vm2, %v1039_v24  ;;  %1855 = vmatpush1.bf16.msra.mxu0 %v5977_v33  ;;  %v5982_v24 = vld [vmem:[%s9441_s9 + $0x54] ss:$8 sps:$4 sm:$0xff]  }
 0x1d3   :  { %1192 = vst.msk [vmem:[#allocation8 + $0x7c] sm:$0xf] %vm1160_vm3, %v5790_v34  ;;  %5921 = vmatprep.mubr.msk.bf16.mxu1 %vm682_vm2, %v1040_v8  ;;  %1856 = vmatprep.subr.bf16.mxu0 %v5982_v24 }
 0x1d6   :  { %1857 = vmatpush1.bf16.msra.mxu0 %v5980_v48 }
 0x1d7   :  { %1858 = vmatprep.subr.bf16.mxu0 %v5985_v41 }
 0x1da   :  { %5922 = vmatmul.mubr.msk.bf16.gmra.mxu1 %vm682_vm2, %v1041_v43  ;;  %1859 = vmatpush1.bf16.msra.mxu0 %v5983_v11 }
 0x1db   :  { %5925 = vmatprep.mubr.msk.bf16.mxu1 %vm682_vm2, %v1042_v6  ;;  %1860 = vmatprep.subr.bf16.mxu0 %v5988_v51 }
 0x1de   :  { %1861 = vmatpush1.bf16.msra.mxu0 %v5986_v53 }
 0x1df   :  { %1862 = vmatprep.subr.bf16.mxu0 %v5991_v58 }
 0x1e2   :  { %5926 = vmatmul.mubr.msk.bf16.gmra.mxu1 %vm682_vm2, %v1043_v40  ;;  %1863 = vmatpush1.bf16.msra.mxu0 %v5989_v25 }
 0x1e3   :  { %5929 = vmatprep.mubr.msk.bf16.mxu1 %vm682_vm2, %v1044_v57  ;;  %1864 = vmatprep.subr.bf16.mxu0 %v5994_v44 }
 0x1e6   :  { %1865 = vmatpush1.bf16.msra.mxu0 %v5992_v12 }
 0x1e7   :  { %1866 = vmatprep.subr.bf16.mxu0 %v5997_v18 }
 0x1ea   :  { %5930 = vmatmul.mubr.msk.bf16.gmra.mxu1 %vm682_vm2, %v1045_v0  ;;  %1867 = vmatpush1.bf16.msra.mxu0 %v5995_v56 }
 0x1eb   :  { %5933 = vmatprep.mubr.msk.bf16.mxu1 %vm682_vm2, %v1046_v28 }
 0x1f2   :  { %5934 = vmatmul.mubr.msk.bf16.gmra.mxu1 %vm682_vm2, %v1047_v16 }
 0x27a   :  { %v5907_v36 = vpop.f32.mrf.mxu1 }
 0x27b   :  { %v7505_v37 = vadd.f32 %v5907_v36, %v7496_v62 }
 0x27c   :  { %v1314_v60 = vpop.f32.mrf.mxu1 }
 0x27d   :  { %v7499_v2 = vadd.f32 %v7496_v62, %v1314_v60  ;;  %v1483_v30 = vmul.f32 %v7505_v37, %v7505_v37 }
 0x27e   :  { %v5908_v3 = vpop.f32.mrf.mxu1 }
 0x27f   :  { %v1481_v54 = vmul.f32 %v7499_v2, %v7499_v2  ;;  %v7513_v47 = vadd.f32 %v5908_v3, %v7496_v62 }
 0x280   :  { %v1317_v4 = vpop.f32.mrf.mxu1 }
 0x281   :  { %v7508_v8 = vadd.f32 %v7496_v62, %v1317_v4  ;;  %v1484_v26 = vmul.f32 %v7513_v47, %v7513_v47 }
 0x282   :  { %v5911_v14 = vpop.f32.mrf.mxu1 }
 0x283   :  { %v1443_v15 = vadd.f32 %v7508_v8, %v7499_v2  ;;  %v1482_v9 = vmul.f32 %v7508_v8, %v7508_v8  ;;  %v7529_v35 = vadd.f32 %v5911_v14, %v7496_v62 }
 0x284   :  { %v1330_v10 = vpop.f32.mrf.mxu1 }
 0x285   :  { %v1444_v50 = vadd.f32 %v1443_v15, %v7505_v37  ;;  %v1513_v20 = vadd.f32 %v1482_v9, %v1481_v54  ;;  %v7523_v21 = vadd.f32 %v7496_v62, %v1330_v10  ;;  %v1487_v1 = vmul.f32 %v7529_v35, %v7529_v35 }
 0x286   :  { %v5912_v22 = vpop.f32.mrf.mxu1 }
 0x287   :  { %v1514_v31 = vadd.f32 %v1513_v20, %v1483_v30  ;;  %v1445_v23 = vadd.f32 %v1444_v50, %v7513_v47  ;;  %v1485_v32 = vmul.f32 %v7523_v21, %v7523_v21  ;;  %v7538_v59 = vadd.f32 %v5912_v22, %v7496_v62 }
 0x288   :  { %v1333_v42 = vpop.f32.mrf.mxu1 }
 0x289   :  { %v1446_v52 = vadd.f32 %v1445_v23, %v7523_v21  ;;  %v1515_v55 = vadd.f32 %v1514_v31, %v1484_v26  ;;  %v7535_v27 = vadd.f32 %v7496_v62, %v1333_v42  ;;  %v1488_v49 = vmul.f32 %v7538_v59, %v7538_v59 }
 0x28a   :  { %v5915_v38 = vpop.f32.mrf.mxu1 }
 0x28b   :  { %v1516_v7 = vadd.f32 %v1515_v55, %v1485_v32  ;;  %v1447_v63 = vadd.f32 %v1446_v52, %v7535_v27  ;;  %v1486_v57 = vmul.f32 %v7535_v27, %v7535_v27  ;;  %v7553_v34 = vadd.f32 %v5915_v38, %v7496_v62 }
 0x28c   :  { %v1346_v5 = vpop.f32.mrf.mxu1 }
 0x28d   :  { %v1448_v0 = vadd.f32 %v1447_v63, %v7529_v35  ;;  %v1517_v17 = vadd.f32 %v1516_v7, %v1486_v57  ;;  %v7547_v19 = vadd.f32 %v7496_v62, %v1346_v5  ;;  %v1491_v11 = vmul.f32 %v7553_v34, %v7553_v34 }
 0x28e   :  { %v5916_v28 = vpop.f32.mrf.mxu1 }
 0x28f   :  { %v1518_v39 = vadd.f32 %v1517_v17, %v1487_v1  ;;  %v1449_v13 = vadd.f32 %v1448_v0, %v7538_v59  ;;  %v1489_v40 = vmul.f32 %v7547_v19, %v7547_v19  ;;  %v7562_v33 = vadd.f32 %v5916_v28, %v7496_v62 }
 0x290   :  { %v1349_v43 = vpop.f32.mrf.mxu1 }
 0x291   :  { %v1450_v6 = vadd.f32 %v1449_v13, %v7547_v19  ;;  %v1519_v16 = vadd.f32 %v1518_v39, %v1488_v49  ;;  %v7559_v29 = vadd.f32 %v7496_v62, %v1349_v43  ;;  %v1492_v44 = vmul.f32 %v7562_v33, %v7562_v33 }
 0x292   :  { %v5919_v45 = vpop.f32.mrf.mxu1 }
 0x293   :  { %v1520_v46 = vadd.f32 %v1519_v16, %v1489_v40  ;;  %v1451_v24 = vadd.f32 %v1450_v6, %v7559_v29  ;;  %v1490_v48 = vmul.f32 %v7559_v29, %v7559_v29  ;;  %v7577_v60 = vadd.f32 %v5919_v45, %v7496_v62 }
 0x294   :  { %v1362_v41 = vpop.f32.mrf.mxu1 }
 0x295   :  { %v1452_v51 = vadd.f32 %v1451_v24, %v7553_v34  ;;  %v1521_v53 = vadd.f32 %v1520_v46, %v1490_v48  ;;  %v7571_v58 = vadd.f32 %v7496_v62, %v1362_v41  ;;  %v1495_v20 = vmul.f32 %v7577_v60, %v7577_v60 }
 0x296   :  { %v5920_v25 = vpop.f32.mrf.mxu1 }
 0x297   :  { %v1522_v36 = vadd.f32 %v1521_v53, %v1491_v11  ;;  %v1453_v12 = vadd.f32 %v1452_v51, %v7562_v33  ;;  %v1493_v56 = vmul.f32 %v7571_v58, %v7571_v58  ;;  %v7586_v9 = vadd.f32 %v5920_v25, %v7496_v62 }
 0x298   :  { %v1365_v18 = vpop.f32.mrf.mxu1 }
 0x299   :  { %v1454_v3 = vadd.f32 %v1453_v12, %v7571_v58  ;;  %v1523_v4 = vadd.f32 %v1522_v36, %v1492_v44  ;;  %v7583_v14 = vadd.f32 %v7496_v62, %v1365_v18  ;;  %v1496_v42 = vmul.f32 %v7586_v9, %v7586_v9 }
 0x29a   :  { %v5923_v54 = vpop.f32.mrf.mxu1 }
 0x29b   :  { %v1524_v15 = vadd.f32 %v1523_v4, %v1493_v56  ;;  %v1455_v10 = vadd.f32 %v1454_v3, %v7583_v14  ;;  %v1494_v30 = vmul.f32 %v7583_v14, %v7583_v14  ;;  %v7601_v55 = vadd.f32 %v5923_v54, %v7496_v62 }
 0x29c   :  { %v1378_v50 = vpop.f32.mrf.mxu1 }
 0x29d   :  { %v1456_v22 = vadd.f32 %v1455_v10, %v7577_v60  ;;  %v1525_v26 = vadd.f32 %v1524_v15, %v1494_v30  ;;  %v7595_v31 = vadd.f32 %v7496_v62, %v1378_v50  ;;  %v1499_v13 = vmul.f32 %v7601_v55, %v7601_v55 }
 0x29e   :  { %v5924_v23 = vpop.f32.mrf.mxu1 }
 0x29f   :  { %v1526_v52 = vadd.f32 %v1525_v26, %v1495_v20  ;;  %v1457_v32 = vadd.f32 %v1456_v22, %v7586_v9  ;;  %v1497_v63 = vmul.f32 %v7595_v31, %v7595_v31  ;;  %v7610_v17 = vadd.f32 %v5924_v23, %v7496_v62 }
 0x2a0   :  { %v1381_v38 = vpop.f32.mrf.mxu1 }
 0x2a1   :  { %v1458_v7 = vadd.f32 %v1457_v32, %v7595_v31  ;;  %v1527_v57 = vadd.f32 %v1526_v52, %v1496_v42  ;;  %v7607_v5 = vadd.f32 %v7496_v62, %v1381_v38  ;;  %v1500_v45 = vmul.f32 %v7610_v17, %v7610_v17 }
 0x2a2   :  { %v5927_v1 = vpop.f32.mrf.mxu1 }
 0x2a3   :  { %v1528_v0 = vadd.f32 %v1527_v57, %v1497_v63  ;;  %v1459_v28 = vadd.f32 %v1458_v7, %v7607_v5  ;;  %v1498_v49 = vmul.f32 %v7607_v5, %v7607_v5  ;;  %v7625_v48 = vadd.f32 %v5927_v1, %v7496_v62 }
 0x2a4   :  { %v1394_v39 = vpop.f32.mrf.mxu1 }
 0x2a5   :  { %v1460_v43 = vadd.f32 %v1459_v28, %v7601_v55  ;;  %v1529_v6 = vadd.f32 %v1528_v0, %v1498_v49  ;;  %v7619_v40 = vadd.f32 %v7496_v62, %v1394_v39  ;;  %v1503_v4 = vmul.f32 %v7625_v48, %v7625_v48 }
 0x2a6   :  { %v5928_v16 = vpop.f32.mrf.mxu1 }
 0x2a7   :  { %v1530_v46 = vadd.f32 %v1529_v6, %v1499_v13  ;;  %v1461_v24 = vadd.f32 %v1460_v43, %v7610_v17  ;;  %v1501_v51 = vmul.f32 %v7619_v40, %v7619_v40  ;;  %v7634_v12 = vadd.f32 %v5928_v16, %v7496_v62 }
 0x2a8   :  { %v1397_v41 = vpop.f32.mrf.mxu1 }
 0x2a9   :  { %v1462_v11 = vadd.f32 %v1461_v24, %v7619_v40  ;;  %v1531_v53 = vadd.f32 %v1530_v46, %v1500_v45  ;;  %v7631_v25 = vadd.f32 %v7496_v62, %v1397_v41  ;;  %v1504_v50 = vmul.f32 %v7634_v12, %v7634_v12 }
 0x2aa   :  { %v5931_v44 = vpop.f32.mrf.mxu1 }
 0x2ab   :  { %v1532_v36 = vadd.f32 %v1531_v53, %v1501_v51  ;;  %v1463_v18 = vadd.f32 %v1462_v11, %v7631_v25  ;;  %v1502_v3 = vmul.f32 %v7631_v25, %v7631_v25  ;;  %v7649_v26 = vadd.f32 %v5931_v44, %v7496_v62 }
 0x2ac   :  { %v1410_v56 = vpop.f32.mrf.mxu1 }
 0x2ad   :  { %v1464_v54 = vadd.f32 %v1463_v18, %v7625_v48  ;;  %v1533_v15 = vadd.f32 %v1532_v36, %v1502_v3  ;;  %v7643_v10 = vadd.f32 %v7496_v62, %v1410_v56  ;;  %v1507_v49 = vmul.f32 %v7649_v26, %v7649_v26 }
 0x2ae   :  { %v5932_v30 = vpop.f32.mrf.mxu1 }
 0x2af   :  { %v1534_v20 = vadd.f32 %v1533_v15, %v1503_v4  ;;  %v1465_v22 = vadd.f32 %v1464_v54, %v7634_v12  ;;  %v1505_v52 = vmul.f32 %v7643_v10, %v7643_v10  ;;  %v7658_v57 = vadd.f32 %v5932_v30, %v7496_v62 }
 0x2b0   :  { %v1413_v23 = vpop.f32.mrf.mxu1 }
 0x2b1   :  { %v1466_v42 = vadd.f32 %v1465_v22, %v7643_v10  ;;  %v1535_v32 = vadd.f32 %v1534_v20, %v1504_v50  ;;  %v7655_v38 = vadd.f32 %v7496_v62, %v1413_v23  ;;  %v1508_v16 = vmul.f32 %v7658_v57, %v7658_v57 }
 0x2b2   :  { %v5935_v7 = vpop.f32.mrf.mxu1 }
 0x2b3   :  { %v1536_v63 = vadd.f32 %v1535_v32, %v1505_v52  ;;  %v1467_v1 = vadd.f32 %v1466_v42, %v7655_v38  ;;  %v1506_v0 = vmul.f32 %v7655_v38, %v7655_v38  ;;  %v7673_v24 = vadd.f32 %v5935_v7, %v7496_v62 }
 0x2b4   :  { %v1426_v28 = vpop.f32.mrf.mxu1 }
 0x2b5   :  { %v1468_v39 = vadd.f32 %v1467_v1, %v7649_v26  ;;  %v1537_v13 = vadd.f32 %v1536_v63, %v1506_v0  ;;  %v7667_v43 = vadd.f32 %v7496_v62, %v1426_v28  ;;  %v1511_v4 = vmul.f32 %v7673_v24, %v7673_v24 }
 0x2b6   :  { %v5936_v6 = vpop.f32.mrf.mxu1 }
 0x2b7   :  { %v1538_v45 = vadd.f32 %v1537_v13, %v1507_v49  ;;  %v1469_v46 = vadd.f32 %v1468_v39, %v7658_v57  ;;  %v1509_v51 = vmul.f32 %v7667_v43, %v7667_v43  ;;  %v7680_v18 = vadd.f32 %v5936_v6, %v7496_v62 }
 0x2b8   :  { %v1429_v41 = vpop.f32.mrf.mxu1 }
 0x2b9   :  { %v1470_v11 = vadd.f32 %v1469_v46, %v7667_v43  ;;  %v1539_v53 = vadd.f32 %v1538_v45, %v1508_v16  ;;  %v1430_v44 = vadd.f32 %v7496_v62, %v1429_v41  ;;  %v1512_v30 = vmul.f32 %v7680_v18, %v7680_v18 }
 0x2bb   :  { %v1540_v36 = vadd.f32 %v1539_v53, %v1509_v51  ;;  %v1471_v3 = vadd.f32 %v1470_v11, %v1430_v44  ;;  %v1510_v56 = vmul.f32 %v1430_v44, %v1430_v44 }
 0x2bd   :  { %v1472_v54 = vadd.f32 %v1471_v3, %v7673_v24  ;;  %v1541_v15 = vadd.f32 %v1540_v36, %v1510_v56 }
 0x2bf   :  { %v1473_v50 = vadd.f32 %v1472_v54, %v7680_v18  ;;  %v1542_v20 = vadd.f32 %v1541_v15, %v1511_v4 }
 0x2c1   :  { %v1474_v22 = vrot.slane %v1473_v50, 4  ;;  %v1543_v23 = vadd.f32 %v1542_v20, %v1512_v30 }
 0x2c3   :  { %v1475_v42 = vadd.f32 %v1474_v22, %v1473_v50  ;;  %v1544_v52 = vrot.slane %v1543_v23, 4 }
 0x2c5   :  { %v1476_v62 = vrot.slane %v1475_v42, 2  ;;  %v1545_v32 = vadd.f32 %v1544_v52, %v1543_v23 }
 0x2c7   :  { %v1477_v7 = vadd.f32 %v1476_v62, %v1475_v42  ;;  %v1546_v63 = vrot.slane %v1545_v32, 2 }
 0x2c9   :  { %v1478_v1 = vrot.slane %v1477_v7, 1  ;;  %v1547_v0 = vadd.f32 %v1546_v63, %v1545_v32  ;;  %v7769_v32 = vld [vmem:[#allocation21] ss:$0 sm:$0xff] }
 0x2cb   :  { %v1479_v28 = vadd.f32 %v1478_v1, %v1477_v7  ;;  %v1548_v49 = vrot.slane %v1547_v0, 1 }
 0x2cd   :  { %v7688_v39 = vmul.f32 0.00390625, %v1479_v28  ;;  %v1549_v13 = vadd.f32 %v1548_v49, %v1547_v0 }
 0x2cf   :  { %v1550_v6 = vmul.f32 0.00390625, %v1549_v13  ;;  %v1551_v16 = vmul.f32 %v7688_v39, %v7688_v39  ;;  %v1583_v45 = vsub.f32 %v1430_v44, %v7688_v39  ;;  %v1566_v11 = vsub.f32 %v7571_v58, %v7688_v39 }
 0x2d0   :  { %v1567_v51 = vsub.f32 %v7583_v14, %v7688_v39  ;;  %v1568_v53 = vsub.f32 %v7577_v60, %v7688_v39  ;;  %v1569_v36 = vsub.f32 %v7586_v9, %v7688_v39  ;;  %v1570_v3 = vsub.f32 %v7595_v31, %v7688_v39 }
 0x2d1   :  { %v1552_v46 = vsub.f32 %v1550_v6, %v1551_v16  ;;  %v1571_v44 = vsub.f32 %v7607_v5, %v7688_v39  ;;  %v1572_v56 = vsub.f32 %v7601_v55, %v7688_v39  ;;  %v1573_v54 = vsub.f32 %v7610_v17, %v7688_v39  ;;  %v7798_v16 = vld [vmem:[%s9440_s8] ss:$0 sm:$0xff] }
 0x2d2   :  { %v1574_v15 = vsub.f32 %v7619_v40, %v7688_v39  ;;  %v1575_v60 = vsub.f32 %v7631_v25, %v7688_v39  ;;  %v1576_v9 = vsub.f32 %v7625_v48, %v7688_v39  ;;  %v1577_v31 = vsub.f32 %v7634_v12, %v7688_v39 }
 0x2d3   :  { %v1553_v41 = vmax.f32 %v1552_v46, 0.0  ;;  %v1578_v5 = vsub.f32 %v7643_v10, %v7688_v39  ;;  %v1579_v55 = vsub.f32 %v7655_v38, %v7688_v39  ;;  %v1580_v17 = vsub.f32 %v7649_v26, %v7688_v39 }
 0x2d4   :  { %v1581_v40 = vsub.f32 %v7658_v57, %v7688_v39  ;;  %v1582_v25 = vsub.f32 %v7667_v43, %v7688_v39  ;;  %v1584_v48 = vsub.f32 %v7673_v24, %v7688_v39  ;;  %v1585_v12 = vsub.f32 %v7680_v18, %v7688_v39 }
 0x2d5   :  { %v1586_v4 = vadd.f32 1e-05, %v1553_v41  ;;  %v1554_v38 = vsub.f32 %v7499_v2, %v7688_v39  ;;  %v1555_v26 = vsub.f32 %v7508_v8, %v7688_v39  ;;  %v1556_v57 = vsub.f32 %v7505_v37, %v7688_v39 }
 0x2d6   :  { %v1557_v43 = vsub.f32 %v7513_v47, %v7688_v39  ;;  %v1558_v24 = vsub.f32 %v7523_v21, %v7688_v39  ;;  %v1559_v18 = vsub.f32 %v7535_v27, %v7688_v39  ;;  %v1560_v2 = vsub.f32 %v7529_v35, %v7688_v39 }
 0x2d7   :  { %6000 = vrsqrt.f32 %v1586_v4  ;;  %v1561_v8 = vsub.f32 %v7538_v59, %v7688_v39  ;;  %v1563_v14 = vsub.f32 %v7559_v29, %v7688_v39 }
 0x2e4   :  { %v7731_v10 = vpop.eup %6000 }
 0x2e5   :  { %v7738_v30 = vmul.f32 %v7731_v10, %v1583_v45  ;;  %v1588_v50 = vmul.f32 %v7731_v10, %v1554_v38  ;;  %v1589_v20 = vmul.f32 %v7731_v10, %v1555_v26  ;;  %v1590_v37 = vmul.f32 %v7731_v10, %v1556_v57 }
 0x2e6   :  { %v1591_v47 = vmul.f32 %v7731_v10, %v1557_v43  ;;  %v1592_v22 = vmul.f32 %v7731_v10, %v1558_v24  ;;  %v1593_v21 = vmul.f32 %v7731_v10, %v1559_v18  ;;  %v1594_v27 = vmul.f32 %v7731_v10, %v1560_v2 }
 0x2e7   :  { %v1595_v23 = vmul.f32 %v7731_v10, %v1561_v8  ;;  %v1602_v35 = vmul.f32 %v7731_v10, %v1568_v53  ;;  %v1603_v59 = vmul.f32 %v7731_v10, %v1569_v36  ;;  %v1604_v42 = vmul.f32 %v7731_v10, %v1570_v3 }
 0x2e8   :  { %v7764_v52 = vmul.f32 %v7731_v10, %v1571_v44  ;;  %v7767_v62 = vmul.f32 %v7731_v10, %v1572_v56  ;;  %v7772_v7 = vmul.f32 %v7731_v10, %v1573_v54  ;;  %v7775_v63 = vmul.f32 %v7731_v10, %v1574_v15 }
 0x2e9   :  { %v7778_v1 = vmul.f32 %v7731_v10, %v1575_v60  ;;  %v7781_v0 = vmul.f32 %v7731_v10, %v1576_v9  ;;  %v7784_v28 = vmul.f32 %v7731_v10, %v1577_v31  ;;  %v7787_v49 = vmul.f32 %v7731_v10, %v1578_v5 }
 0x2ea   :  { %v7790_v13 = vmul.f32 %v7731_v10, %v1579_v55  ;;  %v7793_v6 = vmul.f32 %v7731_v10, %v1580_v17  ;;  %v7801_v45 = vmul.f32 %v7731_v10, %v1581_v40  ;;  %v7804_v46 = vmul.f32 %v7731_v10, %v1582_v25 }
 0x2eb   :  { %v7807_v41 = vmul.f32 %v7731_v10, %v1584_v48  ;;  %v7810_v53 = vmul.f32 %v7731_v10, %v1585_v12  ;;  %v1626_v36 = vmul.f32 %v7769_v32, %v1588_v50  ;;  %v1627_v3 = vmul.f32 %v7769_v32, %v1589_v20 }
 0x2ec   :  { %v1628_v44 = vmul.f32 %v7769_v32, %v1590_v37  ;;  %v1629_v56 = vmul.f32 %v7769_v32, %v1591_v47  ;;  %v1630_v4 = vmul.f32 %v7769_v32, %v1592_v22  ;;  %v1631_v54 = vmul.f32 %v7769_v32, %v1593_v21 }
 0x2ed   :  { %v1664_v15 = vadd.f32 %v7798_v16, %v1626_v36  ;;  %v1665_v60 = vadd.f32 %v7798_v16, %v1627_v3  ;;  %v1632_v9 = vmul.f32 %v7769_v32, %v1594_v27  ;;  %v1633_v55 = vmul.f32 %v7769_v32, %v1595_v23 }
 0x2ee   :  { %v1666_v31 = vadd.f32 %v7798_v16, %v1628_v44  ;;  %v1667_v5 = vadd.f32 %v7798_v16, %v1629_v56  ;;  %v1600_v17 = vmul.f32 %v7731_v10, %v1566_v11  ;;  %v1601_v40 = vmul.f32 %v7731_v10, %v1567_v51 }
 0x2ef   :  { %v1696_v25 = vmax.f32 %v1664_v15, 0.0  ;;  %v1697_v48 = vmax.f32 %v1665_v60, 0.0  ;;  %v1668_v12 = vadd.f32 %v7798_v16, %v1630_v4  ;;  %v1669_v38 = vadd.f32 %v7798_v16, %v1631_v54 }
 0x2f0   :  { %v1562_v26 = vsub.f32 %v7547_v19, %v7688_v39  ;;  %v7837_v43 = vadd.f32 %v7798_v16, %v1632_v9  ;;  %v1698_v58 = vmax.f32 %v1666_v31, 0.0  ;;  %v1699_v11 = vmax.f32 %v1667_v5, 0.0 }
 0x2f1   :  { %v1728_v57 = vpack.c.bf16 %v1697_v48, %v1696_v25  ;;  %v7840_v24 = vadd.f32 %v7798_v16, %v1633_v55  ;;  %v1638_v18 = vmul.f32 %v7769_v32, %v1600_v17  ;;  %v1639_v2 = vmul.f32 %v7769_v32, %v1601_v40 }
 0x2f2   :  { %v1596_v51 = vmul.f32 %v7731_v10, %v1562_v26  ;;  %v1700_v19 = vmax.f32 %v1668_v12, 0.0  ;;  %v1701_v8 = vmax.f32 %v1669_v38, 0.0  ;;  %v1640_v50 = vmul.f32 %v7769_v32, %v1602_v35 }
 0x2f3   :  { %1885 = vmatmul.mubr.bf16.vlgmr.msra.gmra.mxu0 %v1728_v57  ;;  %v1641_v20 = vmul.f32 %v7769_v32, %v1603_v59  ;;  %v7851_v37 = vmul.f32 %v7731_v10, %v1563_v14  ;;  %v1702_v29 = vmax.f32 %v7837_v43, 0.0  ;;  %v1676_v47 = vadd.f32 %v7798_v16, %v1638_v18 }
 0x2f4   :  { %1894 = vmatprep.mubr.bf16.mxu0 %v6549_v61  ;;  %v1677_v22 = vadd.f32 %v7798_v16, %v1639_v2  ;;  %v1729_v21 = vpack.c.bf16 %v1699_v11, %v1698_v58  ;;  %v1703_v27 = vmax.f32 %v7840_v24, 0.0  ;;  %v1678_v23 = vadd.f32 %v7798_v16, %v1640_v50 }
 0x2f5   :  { %v1679_v36 = vadd.f32 %v7798_v16, %v1641_v20  ;;  %v7860_v35 = vmul.f32 %v7769_v32, %v1596_v51  ;;  %v1708_v59 = vmax.f32 %v1676_v47, 0.0  ;;  %v1642_v44 = vmul.f32 %v7769_v32, %v1604_v42 }
 0x2f6   :  { %v1709_v3 = vmax.f32 %v1677_v22, 0.0  ;;  %v1730_v56 = vpack.c.bf16 %v1701_v8, %v1700_v19  ;;  %v1710_v4 = vmax.f32 %v1678_v23, 0.0  ;;  %v1643_v15 = vmul.f32 %v7769_v32, %v7764_v52 }
 0x2f7   :  { %v1711_v54 = vmax.f32 %v1679_v36, 0.0  ;;  %v1680_v9 = vadd.f32 %v7798_v16, %v1642_v44  ;;  %v1644_v31 = vmul.f32 %v7769_v32, %v7767_v62  ;;  %v1645_v5 = vmul.f32 %v7769_v32, %v7772_v7 }
 0x2f8   :  { %v7865_v60 = vpack.c.bf16 %v1709_v3, %v1708_v59  ;;  %v1681_v42 = vadd.f32 %v7798_v16, %v1643_v15  ;;  %v1646_v17 = vmul.f32 %v7769_v32, %v7775_v63  ;;  %v1647_v52 = vmul.f32 %v7769_v32, %v7778_v1 }
 0x2f9   :  { %v7872_v55 = vpack.c.bf16 %v1711_v54, %v1710_v4  ;;  %v1712_v40 = vmax.f32 %v1680_v9, 0.0  ;;  %v1682_v25 = vadd.f32 %v7798_v16, %v1644_v31  ;;  %v1683_v48 = vadd.f32 %v7798_v16, %v1645_v5 }
 0x2fa   :  { %v1648_v62 = vmul.f32 %v7769_v32, %v7781_v0  ;;  %v1713_v7 = vmax.f32 %v1681_v42, 0.0  ;;  %v1684_v12 = vadd.f32 %v7798_v16, %v1646_v17  ;;  %v1685_v38 = vadd.f32 %v7798_v16, %v1647_v52 }
 0x2fb   :  { %1895 = vmatmul.mubr.bf16.gmra.mxu0 %v1729_v21  ;;  %v1649_v63 = vmul.f32 %v7769_v32, %v7784_v28  ;;  %v1714_v1 = vmax.f32 %v1682_v25, 0.0  ;;  %v1715_v26 = vmax.f32 %v1683_v48, 0.0  ;;  %v1650_v58 = vmul.f32 %v7769_v32, %v7787_v49 }
 0x2fc   :  { %1904 = vmatprep.mubr.bf16.mxu0 %v6549_v61  ;;  %v1686_v57 = vadd.f32 %v7798_v16, %v1648_v62  ;;  %v7891_v11 = vpack.c.bf16 %v1713_v7, %v1712_v40  ;;  %v1716_v0 = vmax.f32 %v1684_v12, 0.0  ;;  %v1717_v14 = vmax.f32 %v1685_v38, 0.0 }
 0x2fd   :  { %v1687_v51 = vadd.f32 %v7798_v16, %v1649_v63  ;;  %v7894_v18 = vpack.c.bf16 %v1715_v26, %v1714_v1  ;;  %v1651_v19 = vmul.f32 %v7769_v32, %v7790_v13  ;;  %v1688_v28 = vadd.f32 %v7798_v16, %v1650_v58 }
 0x2fe   :  { %v1718_v2 = vmax.f32 %v1686_v57, 0.0  ;;  %v1738_v8 = vpack.c.bf16 %v1717_v14, %v1716_v0  ;;  %v1652_v20 = vmul.f32 %v7769_v32, %v7793_v6  ;;  %v1653_v49 = vmul.f32 %v7769_v32, %v7801_v45 }
 0x2ff   :  { %v1719_v50 = vmax.f32 %v1687_v51, 0.0  ;;  %v1689_v47 = vadd.f32 %v7798_v16, %v1651_v19  ;;  %v1720_v22 = vmax.f32 %v1688_v28, 0.0  ;;  %v1654_v21 = vmul.f32 %v7769_v32, %v7804_v46 }
 0x300   :  { %v1655_v23 = vmul.f32 %v7769_v32, %v7738_v30  ;;  %v1690_v36 = vadd.f32 %v7798_v16, %v1652_v20  ;;  %v1691_v59 = vadd.f32 %v7798_v16, %v1653_v49  ;;  %v1656_v6 = vmul.f32 %v7769_v32, %v7807_v41 }
 0x301   :  { %v1739_v13 = vpack.c.bf16 %v1719_v50, %v1718_v2  ;;  %v1721_v3 = vmax.f32 %v1689_v47, 0.0  ;;  %v1692_v45 = vadd.f32 %v7798_v16, %v1654_v21  ;;  %v1657_v46 = vmul.f32 %v7769_v32, %v7810_v53 }
 0x302   :  { %v1693_v44 = vadd.f32 %v7798_v16, %v1655_v23  ;;  %v1635_v30 = vmul.f32 %v7769_v32, %v7851_v37  ;;  %v1722_v4 = vmax.f32 %v1690_v36, 0.0  ;;  %v1723_v54 = vmax.f32 %v1691_v59, 0.0 }
 0x303   :  { %1905 = vmatmul.mubr.bf16.gmra.mxu0 %v1730_v56  ;;  %v1694_v15 = vadd.f32 %v7798_v16, %v1656_v6  ;;  %v1740_v9 = vpack.c.bf16 %v1721_v3, %v1720_v22  ;;  %v1724_v41 = vmax.f32 %v1692_v45, 0.0  ;;  %v1695_v31 = vadd.f32 %v7798_v16, %v1657_v46  ;;  %v1760_v3 = vld [vmem:[%s9442_s10] sm:$0x3] }
 0x304   :  { %1914 = vmatprep.mubr.bf16.mxu0 %v6549_v61  ;;  %v1725_v56 = vmax.f32 %v1693_v44, 0.0  ;;  %v1564_v5 = vsub.f32 %v7553_v34, %v7688_v39  ;;  %v1565_v53 = vsub.f32 %v7562_v33, %v7688_v39  ;;  %v1741_v42 = vpack.c.bf16 %v1723_v54, %v1722_v4 }
 0x305   :  { %v1726_v17 = vmax.f32 %v1694_v15, 0.0  ;;  %v1727_v40 = vmax.f32 %v1695_v31, 0.0  ;;  %v1731_v48 = vpack.c.bf16 %v1703_v27, %v1702_v29  ;;  %v1672_v62 = vadd.f32 %v7798_v16, %v7860_v35 }
 0x306   :  { %v1742_v52 = vpack.c.bf16 %v1725_v56, %v1724_v41  ;;  %v1598_v37 = vmul.f32 %v7731_v10, %v1564_v5  ;;  %v1599_v25 = vmul.f32 %v7731_v10, %v1565_v53  ;;  %v1673_v34 = vadd.f32 %v7798_v16, %v1635_v30 }
 0x307   :  { %v1743_v7 = vpack.c.bf16 %v1727_v40, %v1726_v17  ;;  %v1704_v33 = vmax.f32 %v1672_v62, 0.0  ;;  %v9452_v22 = vlaneseq }
 0x308   :  { %v1705_v39 = vmax.f32 %v1673_v34, 0.0  ;;  %v1636_v12 = vmul.f32 %v7769_v32, %v1598_v37  ;;  %v1637_v10 = vmul.f32 %v7769_v32, %v1599_v25 }
 0x30a   :  { %v1732_v38 = vpack.c.bf16 %v1705_v39, %v1704_v33  ;;  %v1674_v43 = vadd.f32 %v7798_v16, %v1636_v12  ;;  %v1675_v24 = vadd.f32 %v7798_v16, %v1637_v10 }
 0x30b   :  { %1915 = vmatmul.mubr.bf16.gmra.mxu0 %v1731_v48 }
 0x30c   :  { %1924 = vmatprep.mubr.bf16.mxu0 %v6549_v61  ;;  %v1706_v29 = vmax.f32 %v1674_v43, 0.0  ;;  %v1707_v27 = vmax.f32 %v1675_v24, 0.0 }
 0x30e   :  { %v1733_v35 = vpack.c.bf16 %v1707_v27, %v1706_v29 }
 0x313   :  { %1925 = vmatmul.mubr.bf16.gmra.mxu0 %v1732_v38 }
 0x314   :  { %1934 = vmatprep.mubr.bf16.mxu0 %v6549_v61 }
 0x31b   :  { %1935 = vmatmul.mubr.bf16.gmra.mxu0 %v1733_v35 }
 0x31c   :  { %1944 = vmatprep.mubr.bf16.mxu0 %v6549_v61 }
 0x323   :  { %1945 = vmatmul.mubr.bf16.gmra.mxu0 %v7865_v60 }
 0x324   :  { %1954 = vmatprep.mubr.bf16.mxu0 %v6549_v61 }
 0x32b   :  { %1955 = vmatmul.mubr.bf16.gmra.mxu0 %v7872_v55 }
 0x32c   :  { %1964 = vmatprep.mubr.bf16.mxu0 %v6549_v61 }
 0x333   :  { %1965 = vmatmul.mubr.bf16.gmra.mxu0 %v7891_v11 }
 0x334   :  { %1974 = vmatprep.mubr.bf16.mxu0 %v6549_v61 }
 0x33b   :  { %1975 = vmatmul.mubr.bf16.gmra.mxu0 %v7894_v18 }
 0x33c   :  { %1984 = vmatprep.mubr.bf16.mxu0 %v6549_v61 }
 0x343   :  { %1985 = vmatmul.mubr.bf16.gmra.mxu0 %v1738_v8 }
 0x344   :  { %1994 = vmatprep.mubr.bf16.mxu0 %v6549_v61 }
 0x34b   :  { %1995 = vmatmul.mubr.bf16.gmra.mxu0 %v1739_v13  ;;  %v7977_v13 = vshrl.u32 %v9452_v22, 7 }
 0x34c   :  { %2004 = vmatprep.mubr.bf16.mxu0 %v6549_v61 }
 0x34d   :  { %9522 = vst [vmem:[#allocation43_spill] sm:$0xff] %v7977_v13  ;;  %v7984_v6 = vsub.s32 0, %v7977_v13  ;;  %v7990_v45 = vsub.s32 1, %v7977_v13 }
 0x34f   :  { %9523 = vst [vmem:[#allocation44_spill] sm:$0xff] %v7984_v6  ;;  %9524 = vst [vmem:[#allocation45_spill] sm:$0xff] %v7990_v45  ;;  %v7997_v30 = vrot.slane %v1760_v3, %v7984_v6  ;;  %v8000_v4 = vrot.slane %v1760_v3, %v7990_v45 }
 0x353   :  { %2005 = vmatmul.mubr.bf16.gmra.mxu0 %v1740_v9 }
 0x354   :  { %2014 = vmatprep.mubr.bf16.mxu0 %v6549_v61 }
 0x35b   :  { %2015 = vmatmul.mubr.bf16.gmra.mxu0 %v1741_v42 }
 0x35c   :  { %2024 = vmatprep.mubr.bf16.mxu0 %v6549_v61 }
 0x363   :  { %2025 = vmatmul.mubr.bf16.gmra.mxu0 %v1742_v52 }
 0x364   :  { %2034 = vmatprep.mubr.bf16.mxu0 %v6549_v61 }
 0x36b   :  { %2035 = vmatmul.mubr.bf16.gmra.mxu0 %v1743_v7 }
 0x3b3   :  { %v1886_v32 = vpop.f32.mrf.mxu0 }
 0x3b4   :  { %v8013_v56 = vadd.f32 %v1886_v32, %v7997_v30 }
 0x3b5   :  { %v1888_v16 = vpop.f32.mrf.mxu0 }
 0x3b6   :  { %v8019_v5 = vadd.f32 %v1888_v16, %v8000_v4  ;;  %v2123_v48 = vmul.f32 %v8013_v56, %v8013_v56 }
 0x3b7   :  { %v1890_v60 = vpop.f32.mrf.mxu0 }
 0x3b8   :  { %v8005_v15 = vadd.f32 %v1890_v60, %v7997_v30  ;;  %v2124_v7 = vmul.f32 %v8019_v5, %v8019_v5 }
 0x3b9   :  { %v1892_v55 = vpop.f32.mrf.mxu0 }
 0x3ba   :  { %v8008_v9 = vadd.f32 %v1892_v55, %v8000_v4  ;;  %v2125_v17 = vmul.f32 %v8005_v15, %v8005_v15  ;;  %v2047_v33 = vadd.f32 %v8005_v15, %v8013_v56 }
 0x3bb   :  { %v1896_v63 = vpop.f32.mrf.mxu0 }
 0x3bc   :  { %v8016_v31 = vadd.f32 %v1896_v63, %v7997_v30  ;;  %v2126_v40 = vmul.f32 %v8008_v9, %v8008_v9  ;;  %v2187_v38 = vadd.f32 %v2125_v17, %v2123_v48  ;;  %v2084_v43 = vadd.f32 %v8008_v9, %v8019_v5 }
 0x3bd   :  { %v1898_v1 = vpop.f32.mrf.mxu0 }
 0x3be   :  { %v8022_v53 = vadd.f32 %v1898_v1, %v8000_v4  ;;  %v2127_v62 = vmul.f32 %v8016_v31, %v8016_v31  ;;  %v2224_v27 = vadd.f32 %v2126_v40, %v2124_v7  ;;  %v2048_v35 = vadd.f32 %v2047_v33, %v8016_v31 }
 0x3bf   :  { %v1900_v26 = vpop.f32.mrf.mxu0 }
 0x3c0   :  { %v8029_v52 = vadd.f32 %v1900_v26, %v7997_v30  ;;  %v2128_v39 = vmul.f32 %v8022_v53, %v8022_v53  ;;  %v2188_v55 = vadd.f32 %v2187_v38, %v2127_v62  ;;  %v2085_v63 = vadd.f32 %v2084_v43, %v8022_v53 }
 0x3c1   :  { %v1902_v57 = vpop.f32.mrf.mxu0 }
 0x3c2   :  { %v8034_v37 = vadd.f32 %v1902_v57, %v8000_v4  ;;  %v2129_v24 = vmul.f32 %v8029_v52, %v8029_v52  ;;  %v2225_v57 = vadd.f32 %v2224_v27, %v2128_v39 }
 0x3c3   :  { %v1906_v58 = vpop.f32.mrf.mxu0 }
 0x3c4   :  { %v8043_v34 = vadd.f32 %v1906_v58, %v7997_v30  ;;  %v2130_v32 = vmul.f32 %v8034_v37, %v8034_v37  ;;  %v2049_v58 = vadd.f32 %v2048_v35, %v8029_v52  ;;  %v2189_v3 = vadd.f32 %v2188_v55, %v2129_v24 }
 0x3c5   :  { %v1908_v11 = vpop.f32.mrf.mxu0  ;;  %v2086_v17 = vadd.f32 %v2085_v63, %v8034_v37 }
 0x3c6   :  { %v8052_v12 = vadd.f32 %v1908_v11, %v8000_v4  ;;  %v2131_v1 = vmul.f32 %v8043_v34, %v8043_v34  ;;  %v2226_v48 = vadd.f32 %v2225_v57, %v2130_v32  ;;  %v2050_v62 = vadd.f32 %v2049_v58, %v8043_v34 }
 0x3c7   :  { %v1910_v0 = vpop.f32.mrf.mxu0 }
 0x3c8   :  { %9525 = vst [vmem:[#allocation46_spill] sm:$0xff] %v8052_v12  ;;  %v8061_v29 = vadd.f32 %v1910_v0, %v7997_v30  ;;  %v2132_v11 = vmul.f32 %v8052_v12, %v8052_v12  ;;  %v2190_v39 = vadd.f32 %v2189_v3, %v2131_v1  ;;  %v2087_v38 = vadd.f32 %v2086_v17, %v8052_v12 }
 0x3c9   :  { %v1912_v14 = vpop.f32.mrf.mxu0 }
 0x3ca   :  { %v8067_v16 = vadd.f32 %v1912_v14, %v8000_v4  ;;  %v2133_v40 = vmul.f32 %v8061_v29, %v8061_v29  ;;  %v2227_v24 = vadd.f32 %v2226_v48, %v2132_v11  ;;  %v2051_v27 = vadd.f32 %v2050_v62, %v8061_v29 }
 0x3cb   :  { %v1916_v51 = vpop.f32.mrf.mxu0 }
 0x3cc   :  { %9526 = vst [vmem:[#allocation47_spill] sm:$0xff] %v8067_v16  ;;  %v8075_v26 = vadd.f32 %v1916_v51, %v7997_v30  ;;  %v2134_v7 = vmul.f32 %v8067_v16, %v8067_v16  ;;  %v2191_v55 = vadd.f32 %v2190_v39, %v2133_v40  ;;  %v2088_v63 = vadd.f32 %v2087_v38, %v8067_v16 }
 0x3cd   :  { %v1918_v18 = vpop.f32.mrf.mxu0 }
 0x3ce   :  { %v8081_v0 = vadd.f32 %v1918_v18, %v8000_v4  ;;  %v2135_v43 = vmul.f32 %v8075_v26, %v8075_v26  ;;  %v2228_v57 = vadd.f32 %v2227_v24, %v2134_v7  ;;  %v2052_v58 = vadd.f32 %v2051_v27, %v8075_v26 }
 0x3cf   :  { %v7954_v2 = vpop.f32.mrf.mxu0 }
 0x3d0   :  { %9527 = vst [vmem:[#allocation48_spill] sm:$0xff] %v8081_v0  ;;  %v8090_v51 = vadd.f32 %v7954_v2, %v7997_v30  ;;  %v2136_v35 = vmul.f32 %v8081_v0, %v8081_v0  ;;  %v2192_v17 = vadd.f32 %v2191_v55, %v2135_v43  ;;  %v2089_v40 = vadd.f32 %v2088_v63, %v8081_v0 }
 0x3d1   :  { %v7956_v19 = vpop.f32.mrf.mxu0 }
 0x3d2   :  { %v8097_v18 = vadd.f32 %v7956_v19, %v8000_v4  ;;  %v2137_v1 = vmul.f32 %v8090_v51, %v8090_v51  ;;  %v2229_v62 = vadd.f32 %v2228_v57, %v2136_v35  ;;  %v2053_v7 = vadd.f32 %v2052_v58, %v8090_v51 }
 0x3d3   :  { %v7958_v61 = vpop.f32.mrf.mxu0 }
 0x3d4   :  { %9528 = vst [vmem:[#allocation49_spill] sm:$0xff] %v8097_v18  ;;  %v8106_v2 = vadd.f32 %v7958_v61, %v7997_v30  ;;  %v2138_v11 = vmul.f32 %v8097_v18, %v8097_v18  ;;  %v2193_v43 = vadd.f32 %v2192_v17, %v2137_v1  ;;  %v2090_v24 = vadd.f32 %v2089_v40, %v8097_v18 }
 0x3d5   :  { %v7960_v28 = vpop.f32.mrf.mxu0 }
 0x3d6   :  { %v8113_v19 = vadd.f32 %v7960_v28, %v8000_v4  ;;  %v2139_v48 = vmul.f32 %v8106_v2, %v8106_v2  ;;  %v2230_v35 = vadd.f32 %v2229_v62, %v2138_v11  ;;  %v2054_v55 = vadd.f32 %v2053_v7, %v8106_v2 }
 0x3d7   :  { %v7962_v8 = vpop.f32.mrf.mxu0 }
 0x3d8   :  { %9529 = vst [vmem:[#allocation50_spill] sm:$0xff] %v8113_v19  ;;  %v8122_v61 = vadd.f32 %v7962_v8, %v7997_v30  ;;  %v2140_v39 = vmul.f32 %v8113_v19, %v8113_v19  ;;  %v2194_v57 = vadd.f32 %v2193_v43, %v2139_v48  ;;  %v2091_v58 = vadd.f32 %v2090_v24, %v8113_v19 }
 0x3d9   :  { %v7964_v50 = vpop.f32.mrf.mxu0 }
 0x3da   :  { %v8129_v28 = vadd.f32 %v7964_v50, %v8000_v4  ;;  %v2141_v27 = vmul.f32 %v8122_v61, %v8122_v61  ;;  %v2231_v11 = vadd.f32 %v2230_v35, %v2140_v39  ;;  %v2055_v40 = vadd.f32 %v2054_v55, %v8122_v61 }
 0x3db   :  { %v7966_v20 = vpop.f32.mrf.mxu0 }
 0x3dc   :  { %9530 = vst [vmem:[#allocation51_spill] sm:$0xff] %v8129_v28  ;;  %v8138_v8 = vadd.f32 %v7966_v20, %v7997_v30  ;;  %v2142_v63 = vmul.f32 %v8129_v28, %v8129_v28  ;;  %v2195_v7 = vadd.f32 %v2194_v57, %v2141_v27  ;;  %v2092_v43 = vadd.f32 %v2091_v58, %v8129_v28 }
 0x3dd   :  { %v7968_v49 = vpop.f32.mrf.mxu0 }
 0x3de   :  { %v8145_v50 = vadd.f32 %v7968_v49, %v8000_v4  ;;  %v2143_v17 = vmul.f32 %v8138_v8, %v8138_v8  ;;  %v2232_v39 = vadd.f32 %v2231_v11, %v2142_v63  ;;  %v2056_v35 = vadd.f32 %v2055_v40, %v8138_v8 }
 0x3df   :  { %v7970_v47 = vpop.f32.mrf.mxu0 }
 0x3e0   :  { %9531 = vst [vmem:[#allocation52_spill] sm:$0xff] %v8145_v50  ;;  %v8154_v20 = vadd.f32 %v7970_v47, %v7997_v30  ;;  %v2144_v62 = vmul.f32 %v8145_v50, %v8145_v50  ;;  %v2196_v57 = vadd.f32 %v2195_v7, %v2143_v17  ;;  %v2093_v58 = vadd.f32 %v2092_v43, %v8145_v50 }
 0x3e1   :  { %v7972_v21 = vpop.f32.mrf.mxu0 }
 0x3e2   :  { %v8161_v49 = vadd.f32 %v7972_v21, %v8000_v4  ;;  %v2145_v24 = vmul.f32 %v8154_v20, %v8154_v20  ;;  %v2233_v63 = vadd.f32 %v2232_v39, %v2144_v62  ;;  %v2057_v11 = vadd.f32 %v2056_v35, %v8154_v20 }
 0x3e3   :  { %v7974_v23 = vpop.f32.mrf.mxu0 }
 0x3e4   :  { %9532 = vst [vmem:[#allocation53_spill] sm:$0xff] %v8161_v49  ;;  %v8170_v47 = vadd.f32 %v7974_v23, %v7997_v30  ;;  %v2146_v55 = vmul.f32 %v8161_v49, %v8161_v49  ;;  %v2197_v7 = vadd.f32 %v2196_v57, %v2145_v24  ;;  %v2094_v43 = vadd.f32 %v2093_v58, %v8161_v49 }
 0x3e5   :  { %v7979_v36 = vpop.f32.mrf.mxu0 }
 0x3e6   :  { %v8177_v21 = vadd.f32 %v7979_v36, %v8000_v4  ;;  %v2147_v22 = vmul.f32 %v8170_v47, %v8170_v47  ;;  %v2234_v62 = vadd.f32 %v2233_v63, %v2146_v55  ;;  %v2058_v39 = vadd.f32 %v2057_v11, %v8170_v47 }
 0x3e7   :  { %v7981_v59 = vpop.f32.mrf.mxu0 }
 0x3e8   :  { %9533 = vst [vmem:[#allocation54_spill] sm:$0xff] %v8177_v21  ;;  %v8186_v23 = vadd.f32 %v7981_v59, %v7997_v30  ;;  %v2148_v40 = vmul.f32 %v8177_v21, %v8177_v21  ;;  %v2198_v57 = vadd.f32 %v2197_v7, %v2147_v22  ;;  %v2095_v58 = vadd.f32 %v2094_v43, %v8177_v21 }
 0x3e9   :  { %v7992_v44 = vpop.f32.mrf.mxu0 }
 0x3ea   :  { %v8193_v36 = vadd.f32 %v7992_v44, %v8000_v4  ;;  %v2149_v13 = vmul.f32 %v8186_v23, %v8186_v23  ;;  %v2235_v55 = vadd.f32 %v2234_v62, %v2148_v40  ;;  %v2059_v63 = vadd.f32 %v2058_v39, %v8186_v23 }
 0x3eb   :  { %v7994_v46 = vpop.f32.mrf.mxu0 }
 0x3ec   :  { %9534 = vst [vmem:[#allocation55_spill] sm:$0xff] %v8193_v36  ;;  %v8202_v59 = vadd.f32 %v7994_v46, %v7997_v30  ;;  %v2150_v35 = vmul.f32 %v8193_v36, %v8193_v36  ;;  %v2199_v7 = vadd.f32 %v2198_v57, %v2149_v13  ;;  %v2096_v43 = vadd.f32 %v2095_v58, %v8193_v36 }
 0x3ed   :  { %v8002_v54 = vpop.f32.mrf.mxu0 }
 0x3ee   :  { %v8209_v44 = vadd.f32 %v8002_v54, %v8000_v4  ;;  %v2151_v49 = vmul.f32 %v8202_v59, %v8202_v59  ;;  %v2236_v40 = vadd.f32 %v2235_v55, %v2150_v35  ;;  %v2060_v62 = vadd.f32 %v2059_v63, %v8202_v59 }
 0x3ef   :  { %v8010_v41 = vpop.f32.mrf.mxu0 }
 0x3f0   :  { %9535 = vst [vmem:[#allocation56_spill] sm:$0xff] %v8209_v44  ;;  %v8216_v46 = vadd.f32 %v8010_v41, %v7997_v30  ;;  %v2152_v11 = vmul.f32 %v8209_v44, %v8209_v44  ;;  %v2200_v57 = vadd.f32 %v2199_v7, %v2151_v49  ;;  %v2097_v58 = vadd.f32 %v2096_v43, %v8209_v44 }
 0x3f1   :  { %v8024_v42 = vpop.f32.mrf.mxu0 }
 0x3f2   :  { %v8223_v54 = vadd.f32 %v8024_v42, %v8000_v4  ;;  %v2153_v21 = vmul.f32 %v8216_v46, %v8216_v46  ;;  %v2237_v35 = vadd.f32 %v2236_v40, %v2152_v11  ;;  %v2061_v55 = vadd.f32 %v2060_v62, %v8216_v46 }
 0x3f3   :  { %v8036_v25 = vpop.f32.mrf.mxu0 }
 0x3f4   :  { %9536 = vst [vmem:[#allocation57_spill] sm:$0xff] %v8223_v54  ;;  %v8230_v41 = vadd.f32 %v8036_v25, %v7997_v30  ;;  %v2154_v39 = vmul.f32 %v8223_v54, %v8223_v54  ;;  %v2201_v7 = vadd.f32 %v2200_v57, %v2153_v21  ;;  %v2098_v43 = vadd.f32 %v2097_v58, %v8223_v54 }
 0x3f5   :  { %v8054_v10 = vpop.f32.mrf.mxu0 }
 0x3f6   :  { %v8237_v42 = vadd.f32 %v8054_v10, %v8000_v4  ;;  %v2155_v36 = vmul.f32 %v8230_v41, %v8230_v41  ;;  %v2238_v11 = vadd.f32 %v2237_v35, %v2154_v39  ;;  %v2062_v40 = vadd.f32 %v2061_v55, %v8230_v41 }
 0x3f7   :  { %v8069_v60 = vpop.f32.mrf.mxu0 }
 0x3f8   :  { %9537 = vst [vmem:[#allocation58_spill] sm:$0xff] %v8237_v42  ;;  %v8244_v25 = vadd.f32 %v8069_v60, %v7997_v30  ;;  %v2156_v63 = vmul.f32 %v8237_v42, %v8237_v42  ;;  %v2202_v57 = vadd.f32 %v2201_v7, %v2155_v36  ;;  %v2099_v58 = vadd.f32 %v2098_v43, %v8237_v42 }
 0x3f9   :  { %v8083_v14 = vpop.f32.mrf.mxu0 }
 0x3fa   :  { %v8251_v10 = vadd.f32 %v8083_v14, %v8000_v4  ;;  %v2157_v44 = vmul.f32 %v8244_v25, %v8244_v25  ;;  %v2239_v39 = vadd.f32 %v2238_v11, %v2156_v63  ;;  %v2063_v35 = vadd.f32 %v2062_v40, %v8244_v25 }
 0x3fb   :  { %v8099_v33 = vpop.f32.mrf.mxu0 }
 0x3fc   :  { %9538 = vst [vmem:[#allocation59_spill] sm:$0xff] %v8251_v10  ;;  %v8258_v60 = vadd.f32 %v8099_v33, %v7997_v30  ;;  %v2158_v62 = vmul.f32 %v8251_v10, %v8251_v10  ;;  %v2203_v7 = vadd.f32 %v2202_v57, %v2157_v44  ;;  %v2100_v43 = vadd.f32 %v2099_v58, %v8251_v10 }
 0x3fd   :  { %v8115_v32 = vpop.f32.mrf.mxu0 }
 0x3fe   :  { %v8265_v14 = vadd.f32 %v8115_v32, %v8000_v4  ;;  %v2159_v54 = vmul.f32 %v8258_v60, %v8258_v60  ;;  %v2240_v63 = vadd.f32 %v2239_v39, %v2158_v62  ;;  %v2064_v11 = vadd.f32 %v2063_v35, %v8258_v60 }
 0x3ff   :  { %v8131_v3 = vpop.f32.mrf.mxu0 }
 0x400   :  { %9539 = vst [vmem:[#allocation60_spill] sm:$0xff] %v8265_v14  ;;  %v8272_v33 = vadd.f32 %v8131_v3, %v7997_v30  ;;  %v2160_v55 = vmul.f32 %v8265_v14, %v8265_v14  ;;  %v2204_v44 = vadd.f32 %v2203_v7, %v2159_v54 }
 0x401   :  { %v8147_v38 = vpop.f32.mrf.mxu0 }
 0x402   :  { %v8279_v32 = vadd.f32 %v8147_v38, %v8000_v4  ;;  %v2161_v42 = vmul.f32 %v8272_v33, %v8272_v33  ;;  %v2241_v10 = vadd.f32 %v2240_v63, %v2160_v55  ;;  %v2065_v62 = vadd.f32 %v2064_v11, %v8272_v33 }
 0x403   :  { %v8163_v1 = vpop.f32.mrf.mxu0 }
 0x404   :  { %9540 = vst [vmem:[#allocation61_spill] sm:$0xff] %v8279_v32  ;;  %v8286_v3 = vadd.f32 %v8163_v1, %v7997_v30  ;;  %v2162_v40 = vmul.f32 %v8279_v32, %v8279_v32  ;;  %v2205_v28 = vadd.f32 %v2204_v44, %v2161_v42 }
 0x405   :  { %v8179_v48 = vpop.f32.mrf.mxu0 }
 0x406   :  { %v8293_v38 = vadd.f32 %v8179_v48, %v8000_v4  ;;  %v2163_v57 = vmul.f32 %v8286_v3, %v8286_v3  ;;  %v2066_v55 = vadd.f32 %v2065_v62, %v8286_v3 }
 0x407   :  { %v8195_v27 = vpop.f32.mrf.mxu0 }
 0x408   :  { %9541 = vst [vmem:[#allocation62_spill] sm:$0xff] %v8293_v38  ;;  %v8300_v1 = vadd.f32 %v8195_v27, %v7997_v30  ;;  %v2101_v27 = vadd.f32 %v2100_v43, %v8265_v14  ;;  %v2164_v39 = vmul.f32 %v8293_v38, %v8293_v38  ;;  %v2242_v43 = vadd.f32 %v2241_v10, %v2162_v40 }
 0x409   :  { %v1992_v17 = vpop.f32.mrf.mxu0  ;;  %v2206_v14 = vadd.f32 %v2205_v28, %v2163_v57 }
 0x40a   :  { %v8306_v48 = vadd.f32 %v1992_v17, %v8000_v4  ;;  %v2165_v17 = vmul.f32 %v8300_v1, %v8300_v1  ;;  %v2067_v10 = vadd.f32 %v2066_v55, %v8300_v1 }
 0x40b   :  { %v1996_v24 = vpop.f32.mrf.mxu0 }
 0x40c   :  { %9542 = vst [vmem:[#allocation63_spill] sm:$0xff] %v8306_v48  ;;  %v8311_v58 = vadd.f32 %v1996_v24, %v7997_v30  ;;  %v2102_v24 = vadd.f32 %v2101_v27, %v8279_v32  ;;  %v2166_v63 = vmul.f32 %v8306_v48, %v8306_v48  ;;  %v2243_v27 = vadd.f32 %v2242_v43, %v2164_v39 }
 0x40d   :  { %v1998_v22 = vpop.f32.mrf.mxu0  ;;  %v2207_v62 = vadd.f32 %v2206_v14, %v2165_v17 }
 0x40e   :  { %v8320_v54 = vadd.f32 %v1998_v22, %v8000_v4  ;;  %v2167_v42 = vmul.f32 %v8311_v58, %v8311_v58 }
 0x40f   :  { %v2000_v13 = vpop.f32.mrf.mxu0 }
 0x410   :  { %9543 = vst [vmem:[#allocation64_spill] sm:$0xff] %v8320_v54  ;;  %v8323_v7 = vadd.f32 %v2000_v13, %v7997_v30  ;;  %v2103_v13 = vadd.f32 %v2102_v24, %v8293_v38  ;;  %v2168_v32 = vmul.f32 %v8320_v54, %v8320_v54  ;;  %v2068_v24 = vadd.f32 %v2067_v10, %v8311_v58 }
 0x411   :  { %v2002_v49 = vpop.f32.mrf.mxu0  ;;  %v2208_v43 = vadd.f32 %v2207_v62, %v2167_v42 }
 0x412   :  { %v8332_v44 = vadd.f32 %v2002_v49, %v8000_v4  ;;  %v2169_v28 = vmul.f32 %v8323_v7, %v8323_v7  ;;  %v2104_v49 = vadd.f32 %v2103_v13, %v8306_v48 }
 0x413   :  { %v2006_v21 = vpop.f32.mrf.mxu0 }
 0x414   :  { %9544 = vst [vmem:[#allocation65_spill] sm:$0xff] %v8332_v44  ;;  %v8335_v22 = vadd.f32 %v2006_v21, %v7997_v30  ;;  %v2244_v21 = vadd.f32 %v2243_v27, %v2166_v63  ;;  %v2170_v14 = vmul.f32 %v8332_v44, %v8332_v44  ;;  %v2105_v55 = vadd.f32 %v2104_v49, %v8320_v54 }
 0x415   :  { %v2008_v36 = vpop.f32.mrf.mxu0  ;;  %v2069_v27 = vadd.f32 %v2068_v24, %v8323_v7  ;;  %v2209_v10 = vadd.f32 %v2208_v43, %v2169_v28 }
 0x416   :  { %v8344_v57 = vadd.f32 %v2008_v36, %v8000_v4  ;;  %v2171_v17 = vmul.f32 %v8335_v22, %v8335_v22  ;;  %v2245_v13 = vadd.f32 %v2244_v21, %v2168_v32 }
 0x417   :  { %v2010_v50 = vpop.f32.mrf.mxu0  ;;  %v2070_v32 = vadd.f32 %v2069_v27, %v8335_v22 }
 0x418   :  { %9545 = vst [vmem:[#allocation66_spill] sm:$0xff] %v8344_v57  ;;  %v8348_v19 = vadd.f32 %v2010_v50, %v7997_v30  ;;  %v2172_v42 = vmul.f32 %v8344_v57, %v8344_v57  ;;  %v2246_v54 = vadd.f32 %v2245_v13, %v2170_v14  ;;  %v2210_v21 = vadd.f32 %v2209_v10, %v2171_v17 }
 0x419   :  { %v2012_v35 = vpop.f32.mrf.mxu0 }
 0x41a   :  { %v8357_v36 = vadd.f32 %v2012_v35, %v8000_v4  ;;  %v2173_v62 = vmul.f32 %v8348_v19, %v8348_v19  ;;  %v2071_v14 = vadd.f32 %v2070_v32, %v8348_v19 }
 0x41b   :  { %v2016_v11 = vpop.f32.mrf.mxu0 }
 0x41c   :  { %9546 = vst [vmem:[#allocation67_spill] sm:$0xff] %v8357_v36  ;;  %v8360_v63 = vadd.f32 %v2016_v11, %v7997_v30  ;;  %v2106_v11 = vadd.f32 %v2105_v55, %v8332_v44  ;;  %v2174_v28 = vmul.f32 %v8357_v36, %v8357_v36  ;;  %v2247_v55 = vadd.f32 %v2246_v54, %v2172_v42 }
 0x41d   :  { %v2018_v40 = vpop.f32.mrf.mxu0  ;;  %v2211_v13 = vadd.f32 %v2210_v21, %v2173_v62 }
 0x41e   :  { %v8368_v48 = vadd.f32 %v2018_v40, %v8000_v4  ;;  %v2175_v24 = vmul.f32 %v8360_v63, %v8360_v63  ;;  %v2107_v38 = vadd.f32 %v2106_v11, %v8344_v57  ;;  %v2072_v44 = vadd.f32 %v2071_v14, %v8360_v63 }
 0x41f   :  { %v2020_v39 = vpop.f32.mrf.mxu0  ;;  %v2248_v54 = vadd.f32 %v2247_v55, %v2174_v28 }
 0x420   :  { %9547 = vst [vmem:[#allocation68_spill] sm:$0xff] %v8368_v48  ;;  %v8371_v35 = vadd.f32 %v2020_v39, %v7997_v30  ;;  %v2176_v17 = vmul.f32 %v8368_v48, %v8368_v48  ;;  %v2212_v42 = vadd.f32 %v2211_v13, %v2175_v24 }
 0x421   :  { %v2022_v50 = vpop.f32.mrf.mxu0 }
 0x422   :  { %v8380_v43 = vadd.f32 %v2022_v50, %v8000_v4  ;;  %v2177_v27 = vmul.f32 %v8371_v35, %v8371_v35  ;;  %v2073_v57 = vadd.f32 %v2072_v44, %v8371_v35  ;;  %v2249_v14 = vadd.f32 %v2248_v54, %v2176_v17 }
 0x423   :  { %v2026_v49 = vpop.f32.mrf.mxu0 }
 0x424   :  { %9548 = vst [vmem:[#allocation69_spill] sm:$0xff] %v8380_v43  ;;  %v8383_v40 = vadd.f32 %v2026_v49, %v7997_v30  ;;  %v2108_v49 = vadd.f32 %v2107_v38, %v8357_v36  ;;  %v2178_v62 = vmul.f32 %v8380_v43, %v8380_v43  ;;  %v2213_v36 = vadd.f32 %v2212_v42, %v2177_v27 }
 0x425   :  { %v2028_v39 = vpop.f32.mrf.mxu0 }
 0x426   :  { %v8392_v10 = vadd.f32 %v2028_v39, %v8000_v4  ;;  %v2179_v32 = vmul.f32 %v8383_v40, %v8383_v40  ;;  %v2109_v39 = vadd.f32 %v2108_v49, %v8368_v48  ;;  %v2250_v44 = vadd.f32 %v2249_v14, %v2178_v62 }
 0x427   :  { %v2030_v50 = vpop.f32.mrf.mxu0 }
 0x428   :  { %9549 = vst [vmem:[#allocation70_spill] sm:$0xff] %v8392_v10  ;;  %v8397_v11 = vadd.f32 %v2030_v50, %v7997_v30  ;;  %v2180_v28 = vmul.f32 %v8392_v10, %v8392_v10  ;;  %v2110_v13 = vadd.f32 %v2109_v39, %v8380_v43  ;;  %v2074_v50 = vadd.f32 %v2073_v57, %v8383_v40 }
 0x429   :  { %v2032_v21 = vpop.f32.mrf.mxu0  ;;  %v2214_v48 = vadd.f32 %v2213_v36, %v2179_v32 }
 0x42a   :  { %v8406_v38 = vadd.f32 %v2032_v21, %v8000_v4  ;;  %v2181_v24 = vmul.f32 %v8397_v11, %v8397_v11  ;;  %v2111_v54 = vadd.f32 %v2110_v13, %v8392_v10  ;;  %v2075_v42 = vadd.f32 %v2074_v50, %v8397_v11 }
 0x42b   :  { %v2036_v55 = vpop.f32.mrf.mxu0  ;;  %v2251_v57 = vadd.f32 %v2250_v44, %v2180_v28 }
 0x42c   :  { %9550 = vst [vmem:[#allocation71_spill] sm:$0xff] %v8406_v38  ;;  %v8415_v49 = vadd.f32 %v2036_v55, %v7997_v30  ;;  %v2182_v17 = vmul.f32 %v8406_v38, %v8406_v38  ;;  %v2215_v43 = vadd.f32 %v2214_v48, %v2181_v24  ;;  %v2112_v62 = vadd.f32 %v2111_v54, %v8406_v38 }
 0x42d   :  { %v2038_v27 = vpop.f32.mrf.mxu0 }
 0x42e   :  { %v2183_v21 = vmul.f32 %v8415_v49, %v8415_v49  ;;  %v8424_v39 = vadd.f32 %v2038_v27, %v8000_v4  ;;  %v2076_v36 = vadd.f32 %v2075_v42, %v8415_v49  ;;  %v2252_v13 = vadd.f32 %v2251_v57, %v2182_v17 }
 0x42f   :  { %v2040_v55 = vpop.f32.mrf.mxu0 }
 0x430   :  { %9551 = vst [vmem:[#allocation72_spill] sm:$0xff] %v8424_v39  ;;  %v2184_v32 = vmul.f32 %v8424_v39, %v8424_v39  ;;  %v8431_v14 = vadd.f32 %v2040_v55, %v7997_v30  ;;  %v2216_v50 = vadd.f32 %v2215_v43, %v2183_v21  ;;  %v2113_v18 = vadd.f32 %v2112_v62, %v8424_v39 }
 0x431   :  { %v2042_v10 = vpop.f32.mrf.mxu0 }
 0x432   :  { %v2077_v27 = vadd.f32 %v2076_v36, %v8431_v14  ;;  %v2185_v48 = vmul.f32 %v8431_v14, %v8431_v14  ;;  %v8438_v28 = vadd.f32 %v2042_v10, %v8000_v4  ;;  %v2253_v24 = vadd.f32 %v2252_v13, %v2184_v32 }
 0x434   :  { %9552 = vst [vmem:[#allocation73_spill] sm:$0xff] %v8438_v28  ;;  %v2078_v44 = vrot.slane %v2077_v27, 4  ;;  %v2217_v54 = vadd.f32 %v2216_v50, %v2185_v48  ;;  %v2114_v42 = vadd.f32 %v2113_v18, %v8438_v28  ;;  %v2186_v30 = vmul.f32 %v8438_v28, %v8438_v28 }
 0x436   :  { %v2079_v43 = vadd.f32 %v2078_v44, %v2077_v27  ;;  %v2218_v17 = vrot.slane %v2217_v54, 4  ;;  %v2115_v21 = vrot.slane %v2114_v42, 4  ;;  %v2254_v57 = vadd.f32 %v2253_v24, %v2186_v30 }
 0x438   :  { %v2080_v55 = vrot.slane %v2079_v43, 2  ;;  %v2219_v62 = vadd.f32 %v2218_v17, %v2217_v54  ;;  %v2116_v36 = vadd.f32 %v2115_v21, %v2114_v42  ;;  %v2255_v39 = vrot.slane %v2254_v57, 4  ;;  %v2045_v54 = vld [vmem:[%s9443_s11] sm:$0x3]  ;;  %s9023_s11 = smov 0  }
 0x43a   :  { %v2081_v38 = vadd.f32 %v2080_v55, %v2079_v43  ;;  %v2220_v0 = vrot.slane %v2219_v62, 2  ;;  %v2117_v4 = vrot.slane %v2116_v36, 2  ;;  %v2256_v10 = vadd.f32 %v2255_v39, %v2254_v57 }
 0x43b   :  { %v8454_v39 = vrot.slane %v2045_v54, %v7984_v6 }
 0x43c   :  { %v2082_v32 = vrot.slane %v2081_v38, 1  ;;  %v2221_v13 = vadd.f32 %v2220_v0, %v2219_v62  ;;  %v2118_v18 = vadd.f32 %v2117_v4, %v2116_v36  ;;  %v2257_v16 = vrot.slane %v2256_v10, 2  ;;  %v2046_v0 = vld [vmem:[%s9444_s12] sm:$0x3] }
 0x43d   :  { %v8457_v17 = vrot.slane %v2046_v0, %v7984_v6  ;;  %v8464_v62 = vrot.slane %v2045_v54, %v7990_v45  ;;  %v8467_v36 = vrot.slane %v2046_v0, %v7990_v45  ;;  %v9577_v0 = vld [vmem:[#allocation68_spill] sm:$0xff] }
 0x43e   :  { %v2083_v50 = vadd.f32 %v2082_v32, %v2081_v38  ;;  %v2222_v48 = vrot.slane %v2221_v13, 1  ;;  %v2119_v42 = vrot.slane %v2118_v18, 1  ;;  %v2258_v30 = vadd.f32 %v2257_v16, %v2256_v10 }
 0x43f   :  { %9553 = vst [vmem:[#allocation74_spill] sm:$0xff] %v8464_v62  ;;  %9554 = vst [vmem:[#allocation75_spill] sm:$0xff] %v8467_v36  ;;  %v9575_v62 = vld [vmem:[#allocation66_spill] sm:$0xff] }
 0x440   :  { %v8443_v12 = vmul.f32 0.00390625, %v2083_v50  ;;  %v2223_v27 = vadd.f32 %v2222_v48, %v2221_v13  ;;  %v2120_v21 = vadd.f32 %v2119_v42, %v2118_v18  ;;  %v2259_v57 = vrot.slane %v2258_v30, 1  ;;  %v9558_v48 = vld [vmem:[#allocation49_spill] sm:$0xff]  ;;  %v9559_v18 = vld [vmem:[#allocation50_spill] sm:$0xff] }
 0x442   :  { %v2261_v44 = vmul.f32 0.00390625, %v2223_v27  ;;  %v2263_v24 = vmul.f32 %v8443_v12, %v8443_v12  ;;  %v8487_v54 = vmul.f32 0.00390625, %v2120_v21  ;;  %v2260_v42 = vadd.f32 %v2259_v57, %v2258_v30  ;;  %v9560_v27 = vld [vmem:[#allocation51_spill] sm:$0xff] }
 0x443   :  { %v9582_v4 = vsub.f32 %v8013_v56, %v8443_v12  ;;  %v9583_v16 = vsub.f32 %v8005_v15, %v8443_v12  ;;  %v9584_v55 = vsub.f32 %v8016_v31, %v8443_v12  ;;  %v9585_v45 = vsub.f32 %v8029_v52, %v8443_v12 }
 0x444   :  { %v2265_v38 = vsub.f32 %v2261_v44, %v2263_v24  ;;  %v2264_v30 = vmul.f32 %v8487_v54, %v8487_v54  ;;  %v9586_v32 = vsub.f32 %v8043_v34, %v8443_v12  ;;  %v9587_v56 = vsub.f32 %v8061_v29, %v8443_v12 }
 0x445   :  { %v9588_v15 = vsub.f32 %v8075_v26, %v8443_v12  ;;  %v9589_v31 = vsub.f32 %v8090_v51, %v8443_v12  ;;  %v9590_v52 = vsub.f32 %v8106_v2, %v8443_v12  ;;  %v9591_v34 = vsub.f32 %v8122_v61, %v8443_v12 }
 0x446   :  { %v2267_v43 = vmax.f32 %v2265_v38, 0.0  ;;  %v9592_v29 = vsub.f32 %v8138_v8, %v8443_v12  ;;  %v9593_v26 = vsub.f32 %v8154_v20, %v8443_v12  ;;  %v9594_v51 = vsub.f32 %v8170_v47, %v8443_v12 }
 0x447   :  { %v9595_v2 = vsub.f32 %v8186_v23, %v8443_v12  ;;  %v9596_v61 = vsub.f32 %v8202_v59, %v8443_v12  ;;  %v9597_v8 = vsub.f32 %v8216_v46, %v8443_v12  ;;  %v9598_v20 = vsub.f32 %v8230_v41, %v8443_v12 }
 0x448   :  { %v2333_v24 = vadd.f32 1e-05, %v2267_v43  ;;  %v2262_v43 = vmul.f32 0.00390625, %v2260_v42  ;;  %v9576_v42 = vld [vmem:[#allocation67_spill] sm:$0xff]  ;;  %v9599_v47 = vsub.f32 %v8244_v25, %v8443_v12  ;;  %v9600_v23 = vsub.f32 %v8258_v60, %v8443_v12 }
 0x449   :  { %v9601_v59 = vsub.f32 %v8272_v33, %v8443_v12  ;;  %v9602_v46 = vsub.f32 %v8286_v3, %v8443_v12  ;;  %v9603_v41 = vsub.f32 %v8300_v1, %v8443_v12  ;;  %v9604_v25 = vsub.f32 %v8311_v58, %v8443_v12 }
 0x44a   :  { %6002 = vrsqrt.f32 %v2333_v24  ;;  %v2266_v38 = vsub.f32 %v2262_v43, %v2264_v30  ;;  %v9555_v43 = vld [vmem:[#allocation46_spill] sm:$0xff]  ;;  %v9556_v30 = vld [vmem:[#allocation47_spill] sm:$0xff]  ;;  %v9561_v24 = vld [vmem:[#allocation52_spill] sm:$0xff]  ;;  %v9605_v60 = vsub.f32 %v8323_v7, %v8443_v12  ;;  %v9606_v33 = vsub.f32 %v8335_v22, %v8443_v12 }
 0x44b   :  { %v9607_v3 = vsub.f32 %v8348_v19, %v8443_v12  ;;  %v9608_v1 = vsub.f32 %v8360_v63, %v8443_v12  ;;  %v9609_v58 = vsub.f32 %v8371_v35, %v8443_v12  ;;  %v9610_v7 = vsub.f32 %v8383_v40, %v8443_v12 }
 0x44c   :  { %v2268_v21 = vmax.f32 %v2266_v38, 0.0  ;;  %v9557_v38 = vld [vmem:[#allocation48_spill] sm:$0xff]  ;;  %v9611_v22 = vsub.f32 %v8397_v11, %v8443_v12  ;;  %v9612_v19 = vsub.f32 %v8415_v49, %v8443_v12  ;;  %v9613_v63 = vsub.f32 %v8431_v14, %v8443_v12 }
 0x44e   :  { %v2334_v36 = vadd.f32 1e-05, %v2268_v21 }
 0x450   :  { %6004 = vrsqrt.f32 %v2334_v36 }
 0x457   :  { %v6003_v13 = vpop.eup %6002 }
 0x458   :  { %v2337_v10 = vmul.f32 %v6003_v13, %v9582_v4  ;;  %v2339_v57 = vmul.f32 %v6003_v13, %v9583_v16  ;;  %v2341_v44 = vmul.f32 %v6003_v13, %v9584_v55  ;;  %v2343_v21 = vmul.f32 %v6003_v13, %v9585_v45 }
 0x459   :  { %v2345_v36 = vmul.f32 %v6003_v13, %v9586_v32  ;;  %v2347_v4 = vmul.f32 %v6003_v13, %v9587_v56  ;;  %v2349_v16 = vmul.f32 %v6003_v13, %v9588_v15  ;;  %v2351_v55 = vmul.f32 %v6003_v13, %v9589_v31 }
 0x45a   :  { %v2353_v45 = vmul.f32 %v6003_v13, %v9590_v52  ;;  %v2355_v32 = vmul.f32 %v6003_v13, %v9591_v34  ;;  %v2357_v56 = vmul.f32 %v6003_v13, %v9592_v29  ;;  %v2359_v15 = vmul.f32 %v6003_v13, %v9593_v26 }
 0x45b   :  { %v2361_v31 = vmul.f32 %v6003_v13, %v9594_v51  ;;  %v2363_v52 = vmul.f32 %v6003_v13, %v9595_v2  ;;  %v2365_v34 = vmul.f32 %v6003_v13, %v9596_v61  ;;  %v2367_v29 = vmul.f32 %v6003_v13, %v9597_v8 }
 0x45c   :  { %v2369_v26 = vmul.f32 %v6003_v13, %v9598_v20  ;;  %v2371_v51 = vmul.f32 %v6003_v13, %v9599_v47  ;;  %v2373_v2 = vmul.f32 %v6003_v13, %v9600_v23  ;;  %v2375_v61 = vmul.f32 %v6003_v13, %v9601_v59 }
 0x45d   :  { %v2377_v8 = vmul.f32 %v6003_v13, %v9602_v46  ;;  %v2379_v20 = vmul.f32 %v6003_v13, %v9603_v41  ;;  %v2381_v47 = vmul.f32 %v6003_v13, %v9604_v25  ;;  %v2383_v23 = vmul.f32 %v6003_v13, %v9605_v60 }
 0x45e   :  { %v2385_v59 = vmul.f32 %v6003_v13, %v9606_v33  ;;  %v2387_v46 = vmul.f32 %v6003_v13, %v9607_v3  ;;  %v2389_v41 = vmul.f32 %v6003_v13, %v9608_v1  ;;  %v2391_v25 = vmul.f32 %v6003_v13, %v9609_v58 }
 0x45f   :  { %v2393_v60 = vmul.f32 %v6003_v13, %v9610_v7  ;;  %v2395_v33 = vmul.f32 %v6003_v13, %v9611_v22  ;;  %v2397_v3 = vmul.f32 %v6003_v13, %v9612_v19  ;;  %v2399_v1 = vmul.f32 %v6003_v13, %v9613_v63 }
 0x460   :  { %v2412_v28 = vmul.f32 %v8454_v39, %v2337_v10  ;;  %v2414_v35 = vmul.f32 %v8454_v39, %v2339_v57  ;;  %v2416_v58 = vmul.f32 %v8454_v39, %v2341_v44  ;;  %v2418_v40 = vmul.f32 %v8454_v39, %v2343_v21 }
 0x461   :  { %v2420_v7 = vmul.f32 %v8454_v39, %v2345_v36  ;;  %v2422_v11 = vmul.f32 %v8454_v39, %v2347_v4  ;;  %v2424_v22 = vmul.f32 %v8454_v39, %v2349_v16  ;;  %v2426_v49 = vmul.f32 %v8454_v39, %v2351_v55  ;;  %v8709_v36 = vpop.eup %6004 }
 0x462   :  { %v2428_v19 = vmul.f32 %v8454_v39, %v2353_v45  ;;  %v2430_v12 = vmul.f32 %v8454_v39, %v2355_v32  ;;  %v2432_v14 = vmul.f32 %v8454_v39, %v2357_v56  ;;  %v2434_v10 = vmul.f32 %v8454_v39, %v2359_v15 }
 0x463   :  { %v2436_v13 = vmul.f32 %v8454_v39, %v2361_v31  ;;  %v2438_v44 = vmul.f32 %v8454_v39, %v2363_v52  ;;  %v2440_v57 = vmul.f32 %v8454_v39, %v2365_v34  ;;  %v2442_v21 = vmul.f32 %v8454_v39, %v2367_v29 }
 0x464   :  { %v2444_v4 = vmul.f32 %v8454_v39, %v2369_v26  ;;  %v2446_v16 = vmul.f32 %v8454_v39, %v2371_v51  ;;  %v2448_v55 = vmul.f32 %v8454_v39, %v2373_v2  ;;  %v2450_v45 = vmul.f32 %v8454_v39, %v2375_v61 }
 0x465   :  { %v2452_v32 = vmul.f32 %v8454_v39, %v2377_v8  ;;  %v2454_v56 = vmul.f32 %v8454_v39, %v2379_v20  ;;  %v2456_v15 = vmul.f32 %v8454_v39, %v2381_v47  ;;  %v2458_v31 = vmul.f32 %v8454_v39, %v2383_v23 }
 0x466   :  { %v2460_v52 = vmul.f32 %v8454_v39, %v2385_v59  ;;  %v2462_v34 = vmul.f32 %v8454_v39, %v2387_v46  ;;  %v2464_v29 = vmul.f32 %v8454_v39, %v2389_v41  ;;  %v2466_v26 = vmul.f32 %v8454_v39, %v2391_v25 }
 0x467   :  { %v2468_v51 = vmul.f32 %v8454_v39, %v2393_v60  ;;  %v2470_v2 = vmul.f32 %v8454_v39, %v2395_v33  ;;  %v2472_v61 = vmul.f32 %v8454_v39, %v2397_v3  ;;  %v2474_v8 = vmul.f32 %v8454_v39, %v2399_v1 }
 0x468   :  { %v2487_v20 = vadd.f32 %v8457_v17, %v2412_v28  ;;  %v2489_v47 = vadd.f32 %v8457_v17, %v2414_v35  ;;  %v2491_v23 = vadd.f32 %v8457_v17, %v2416_v58  ;;  %v2493_v59 = vadd.f32 %v8457_v17, %v2418_v40 }
 0x469   :  { %v2495_v46 = vadd.f32 %v8457_v17, %v2420_v7  ;;  %v2497_v41 = vadd.f32 %v8457_v17, %v2422_v11  ;;  %v2499_v25 = vadd.f32 %v8457_v17, %v2424_v22  ;;  %v2501_v60 = vadd.f32 %v8457_v17, %v2426_v49 }
 0x46a   :  { %v2503_v33 = vadd.f32 %v8457_v17, %v2428_v19  ;;  %v2505_v39 = vadd.f32 %v8457_v17, %v2430_v12  ;;  %v2507_v28 = vadd.f32 %v8457_v17, %v2432_v14  ;;  %v2509_v3 = vadd.f32 %v8457_v17, %v2434_v10 }
 0x46b   :  { %v2511_v63 = vadd.f32 %v8457_v17, %v2436_v13  ;;  %v2513_v1 = vadd.f32 %v8457_v17, %v2438_v44  ;;  %v2515_v35 = vadd.f32 %v8457_v17, %v2440_v57  ;;  %v2517_v58 = vadd.f32 %v8457_v17, %v2442_v21 }
 0x46c   :  { %v2519_v40 = vadd.f32 %v8457_v17, %v2444_v4  ;;  %v2521_v7 = vadd.f32 %v8457_v17, %v2446_v16  ;;  %v2523_v11 = vadd.f32 %v8457_v17, %v2448_v55  ;;  %v2525_v22 = vadd.f32 %v8457_v17, %v2450_v45 }
 0x46d   :  { %v8748_v49 = vadd.f32 %v8457_v17, %v2452_v32  ;;  %v8751_v19 = vadd.f32 %v8457_v17, %v2454_v56  ;;  %v8754_v12 = vadd.f32 %v8457_v17, %v2456_v15  ;;  %v8757_v14 = vadd.f32 %v8457_v17, %v2458_v31 }
 0x46e   :  { %v8760_v10 = vadd.f32 %v8457_v17, %v2460_v52  ;;  %v8763_v13 = vadd.f32 %v8457_v17, %v2462_v34  ;;  %v8766_v44 = vadd.f32 %v8457_v17, %v2464_v29  ;;  %v8769_v57 = vadd.f32 %v8457_v17, %v2466_v26 }
 0x46f   :  { %v8772_v21 = vadd.f32 %v8457_v17, %v2468_v51  ;;  %v8775_v4 = vadd.f32 %v8457_v17, %v2470_v2  ;;  %v8778_v16 = vadd.f32 %v8457_v17, %v2472_v61  ;;  %v8781_v55 = vadd.f32 %v8457_v17, %v2474_v8 }
 0x470   :  { %v2551_v45 = vmax.f32 %v2487_v20, 0.0  ;;  %v2553_v32 = vmax.f32 %v2489_v47, 0.0  ;;  %v2555_v56 = vmax.f32 %v2491_v23, 0.0  ;;  %v2557_v15 = vmax.f32 %v2493_v59, 0.0 }
 0x471   :  { %v2559_v31 = vmax.f32 %v2495_v46, 0.0  ;;  %v2561_v52 = vmax.f32 %v2497_v41, 0.0  ;;  %v2563_v34 = vmax.f32 %v2499_v25, 0.0  ;;  %v2565_v29 = vmax.f32 %v2501_v60, 0.0 }
 0x472   :  { %v2567_v26 = vmax.f32 %v2503_v33, 0.0  ;;  %v2569_v51 = vmax.f32 %v2505_v39, 0.0  ;;  %v2571_v6 = vmax.f32 %v2507_v28, 0.0  ;;  %v2573_v50 = vmax.f32 %v2509_v3, 0.0  ;;  %2615 = vst [vmem:[#allocation9] sm:$0xff] %v2551_v45  ;;  %2617 = vst [vmem:[#allocation9 + $0x10] sm:$0xff] %v2553_v32 }
 0x473   :  { %2619 = vst [vmem:[#allocation9 + $0x20] sm:$0xff] %v2555_v56  ;;  %2621 = vst [vmem:[#allocation9 + $0x30] sm:$0xff] %v2557_v15  ;;  %v2575_v2 = vmax.f32 %v2511_v63, 0.0  ;;  %v2577_v61 = vmax.f32 %v2513_v1, 0.0  ;;  %v2579_v17 = vmax.f32 %v2515_v35, 0.0  ;;  %v2581_v8 = vmax.f32 %v2517_v58, 0.0 }
 0x474   :  { %2623 = vst [vmem:[#allocation9 + $0x40] sm:$0xff] %v2559_v31  ;;  %2625 = vst [vmem:[#allocation9 + $0x50] sm:$0xff] %v2561_v52  ;;  %v2583_v20 = vmax.f32 %v2519_v40, 0.0  ;;  %v2585_v47 = vmax.f32 %v2521_v7, 0.0  ;;  %v2587_v23 = vmax.f32 %v2523_v11, 0.0  ;;  %v2589_v59 = vmax.f32 %v2525_v22, 0.0 }
 0x475   :  { %2627 = vst [vmem:[#allocation9 + $0x60] sm:$0xff] %v2563_v34  ;;  %2629 = vst [vmem:[#allocation9 + $0x70] sm:$0xff] %v2565_v29  ;;  %v2591_v46 = vmax.f32 %v8748_v49, 0.0  ;;  %v2593_v41 = vmax.f32 %v8751_v19, 0.0  ;;  %v2595_v25 = vmax.f32 %v8754_v12, 0.0  ;;  %v2597_v60 = vmax.f32 %v8757_v14, 0.0 }
 0x476   :  { %2631 = vst [vmem:[#allocation9 + $0x80] sm:$0xff] %v2567_v26  ;;  %2633 = vst [vmem:[#allocation9 + $0x90] sm:$0xff] %v2569_v51  ;;  %v2599_v33 = vmax.f32 %v8760_v10, 0.0  ;;  %v2601_v39 = vmax.f32 %v8763_v13, 0.0  ;;  %v2603_v28 = vmax.f32 %v8766_v44, 0.0  ;;  %v2609_v3 = vmax.f32 %v8775_v4, 0.0 }
 0x477   :  { %2635 = vst [vmem:[#allocation9 + $0xa0] sm:$0xff] %v2571_v6  ;;  %2637 = vst [vmem:[#allocation9 + $0xb0] sm:$0xff] %v2573_v50  ;;  %v2605_v6 = vmax.f32 %v8769_v57, 0.0  ;;  %v2607_v50 = vmax.f32 %v8772_v21, 0.0  ;;  %v2611_v63 = vmax.f32 %v8778_v16, 0.0  ;;  %v2613_v1 = vmax.f32 %v8781_v55, 0.0 }
 0x478   :  { %2639 = vst [vmem:[#allocation9 + $0xc0] sm:$0xff] %v2575_v2  ;;  %2641 = vst [vmem:[#allocation9 + $0xd0] sm:$0xff] %v2577_v61  ;;  %v9614_v35 = vsub.f32 %v8019_v5, %v8487_v54  ;;  %v9615_v40 = vsub.f32 %v8008_v9, %v8487_v54  ;;  %v9616_v11 = vsub.f32 %v8022_v53, %v8487_v54  ;;  %v9625_v4 = vld [vmem:[#allocation53_spill] sm:$0xff]  ;;  %v9627_v55 = vld [vmem:[#allocation54_spill] sm:$0xff] }
 0x479   :  { %2643 = vst [vmem:[#allocation9 + $0xe0] sm:$0xff] %v2579_v17  ;;  %2645 = vst [vmem:[#allocation9 + $0xf0] sm:$0xff] %v2581_v8  ;;  %v9617_v49 = vsub.f32 %v8034_v37, %v8487_v54  ;;  %v9618_v5 = vsub.f32 %v9555_v43, %v8487_v54  ;;  %v9619_v12 = vsub.f32 %v9556_v30, %v8487_v54  ;;  %v9629_v32 = vld [vmem:[#allocation55_spill] sm:$0xff]  ;;  %v9631_v15 = vld [vmem:[#allocation56_spill] sm:$0xff] }
 0x47a   :  { %2647 = vst [vmem:[#allocation9 + $0x100] sm:$0xff] %v2583_v20  ;;  %2649 = vst [vmem:[#allocation9 + $0x110] sm:$0xff] %v2585_v47  ;;  %v2338_v58 = vmul.f32 %v8709_v36, %v9614_v35  ;;  %v2340_v7 = vmul.f32 %v8709_v36, %v9615_v40  ;;  %v2342_v22 = vmul.f32 %v8709_v36, %v9616_v11  ;;  %v9633_v52 = vld [vmem:[#allocation57_spill] sm:$0xff]  ;;  %v9635_v26 = vld [vmem:[#allocation58_spill] sm:$0xff] }
 0x47b   :  { %2651 = vst [vmem:[#allocation9 + $0x120] sm:$0xff] %v2587_v23  ;;  %2653 = vst [vmem:[#allocation9 + $0x130] sm:$0xff] %v2589_v59  ;;  %v2344_v19 = vmul.f32 %v8709_v36, %v9617_v49  ;;  %v2346_v9 = vmul.f32 %v8709_v36, %v9618_v5  ;;  %v2348_v53 = vmul.f32 %v8709_v36, %v9619_v12  ;;  %v9637_v61 = vld [vmem:[#allocation59_spill] sm:$0xff]  ;;  %v9639_v20 = vld [vmem:[#allocation60_spill] sm:$0xff] }
 0x47c   :  { %2655 = vst [vmem:[#allocation9 + $0x140] sm:$0xff] %v2591_v46  ;;  %2657 = vst [vmem:[#allocation9 + $0x150] sm:$0xff] %v2593_v41  ;;  %v9620_v14 = vsub.f32 %v9557_v38, %v8487_v54  ;;  %v9621_v10 = vsub.f32 %v9558_v48, %v8487_v54  ;;  %v9622_v43 = vsub.f32 %v9559_v18, %v8487_v54  ;;  %v9641_v59 = vld [vmem:[#allocation61_spill] sm:$0xff] }
 0x47d   :  { %2659 = vst [vmem:[#allocation9 + $0x160] sm:$0xff] %v2595_v25  ;;  %2661 = vst [vmem:[#allocation9 + $0x170] sm:$0xff] %v2597_v60  ;;  %v9623_v30 = vsub.f32 %v9560_v27, %v8487_v54  ;;  %v9624_v38 = vsub.f32 %v9561_v24, %v8487_v54  ;;  %v9626_v48 = vsub.f32 %v9625_v4, %v8487_v54  ;;  %v9643_v25 = vld [vmem:[#allocation62_spill] sm:$0xff] }
 0x47e   :  { %2663 = vst [vmem:[#allocation9 + $0x180] sm:$0xff] %v2599_v33  ;;  %2665 = vst [vmem:[#allocation9 + $0x190] sm:$0xff] %v2601_v39  ;;  %v2350_v37 = vmul.f32 %v8709_v36, %v9620_v14  ;;  %v2352_v13 = vmul.f32 %v8709_v36, %v9621_v10  ;;  %v2354_v44 = vmul.f32 %v8709_v36, %v9622_v43  ;;  %v9645_v39 = vld [vmem:[#allocation63_spill] sm:$0xff]  ;;  %v9654_v43 = vld [vmem:[#allocation69_spill] sm:$0xff] }
 0x47f   :  { %2667 = vst [vmem:[#allocation9 + $0x1a0] sm:$0xff] %v2603_v28  ;;  %2669 = vst [vmem:[#allocation9 + $0x1b0] sm:$0xff] %v2605_v6  ;;  %v2356_v57 = vmul.f32 %v8709_v36, %v9623_v30  ;;  %v2358_v21 = vmul.f32 %v8709_v36, %v9624_v38  ;;  %v2360_v16 = vmul.f32 %v8709_v36, %v9626_v48  ;;  %v9656_v4 = vld [vmem:[#allocation70_spill] sm:$0xff] }
 0x480   :  { %2671 = vst [vmem:[#allocation9 + $0x1c0] sm:$0xff] %v2607_v50  ;;  %2673 = vst [vmem:[#allocation9 + $0x1d0] sm:$0xff] %v2609_v3  ;;  %v9628_v18 = vsub.f32 %v9627_v55, %v8487_v54  ;;  %v9630_v27 = vsub.f32 %v9629_v32, %v8487_v54  ;;  %v9632_v24 = vsub.f32 %v9631_v15, %v8487_v54  ;;  %v9647_v50 = vld [vmem:[#allocation64_spill] sm:$0xff]  ;;  %v9658_v55 = vld [vmem:[#allocation71_spill] sm:$0xff] }
 0x481   :  { %2675 = vst [vmem:[#allocation9 + $0x1e0] sm:$0xff] %v2611_v63  ;;  %2677 = vst [vmem:[#allocation9 + $0x1f0] sm:$0xff] %v2613_v1  ;;  %v9634_v34 = vsub.f32 %v9633_v52, %v8487_v54  ;;  %v9636_v51 = vsub.f32 %v9635_v26, %v8487_v54  ;;  %v9638_v17 = vsub.f32 %v9637_v61, %v8487_v54  ;;  %v9649_v1 = vld [vmem:[#allocation65_spill] sm:$0xff]  ;;  %v9660_v32 = vld [vmem:[#allocation72_spill] sm:$0xff] }
 0x482   :  { %v2362_v45 = vmul.f32 %v8709_v36, %v9628_v18  ;;  %v2364_v56 = vmul.f32 %v8709_v36, %v9630_v27  ;;  %v2366_v31 = vmul.f32 %v8709_v36, %v9632_v24  ;;  %v9640_v47 = vsub.f32 %v9639_v20, %v8487_v54  ;;  %v9662_v15 = vld [vmem:[#allocation73_spill] sm:$0xff] }
 0x483   :  { %v2368_v29 = vmul.f32 %v8709_v36, %v9634_v34  ;;  %v2370_v2 = vmul.f32 %v8709_v36, %v9636_v51  ;;  %v2372_v8 = vmul.f32 %v8709_v36, %v9638_v17  ;;  %v9642_v46 = vsub.f32 %v9641_v59, %v8487_v54  ;;  %v9664_v34 = vld [vmem:[#allocation74_spill] sm:$0xff] }
 0x484   :  { %v2374_v23 = vmul.f32 %v8709_v36, %v9640_v47  ;;  %v9644_v60 = vsub.f32 %v9643_v25, %v8487_v54  ;;  %v9646_v28 = vsub.f32 %v9645_v39, %v8487_v54  ;;  %v9648_v3 = vsub.f32 %v9647_v50, %v8487_v54 }
 0x485   :  { %v2376_v41 = vmul.f32 %v8709_v36, %v9642_v46  ;;  %v9650_v35 = vsub.f32 %v9649_v1, %v8487_v54  ;;  %v9651_v11 = vsub.f32 %v9575_v62, %v8487_v54  ;;  %v9652_v5 = vsub.f32 %v9576_v42, %v8487_v54 }
 0x486   :  { %v2378_v33 = vmul.f32 %v8709_v36, %v9644_v60  ;;  %v2380_v6 = vmul.f32 %v8709_v36, %v9646_v28  ;;  %v2382_v63 = vmul.f32 %v8709_v36, %v9648_v3  ;;  %v9653_v14 = vsub.f32 %v9577_v0, %v8487_v54 }
 0x487   :  { %v2384_v40 = vmul.f32 %v8709_v36, %v9650_v35  ;;  %v2386_v49 = vmul.f32 %v8709_v36, %v9651_v11  ;;  %v2388_v12 = vmul.f32 %v8709_v36, %v9652_v5  ;;  %v9655_v30 = vsub.f32 %v9654_v43, %v8487_v54 }
 0x488   :  { %v2390_v10 = vmul.f32 %v8709_v36, %v9653_v14  ;;  %v9657_v62 = vsub.f32 %v9656_v4, %v8487_v54  ;;  %v9659_v42 = vsub.f32 %v9658_v55, %v8487_v54  ;;  %v9661_v0 = vsub.f32 %v9660_v32, %v8487_v54 }
 0x489   :  { %v2392_v38 = vmul.f32 %v8709_v36, %v9655_v30  ;;  %v9663_v24 = vsub.f32 %v9662_v15, %v8487_v54  ;;  %v2413_v26 = vmul.f32 %v9664_v34, %v2338_v58  ;;  %v2415_v51 = vmul.f32 %v9664_v34, %v2340_v7 }
 0x48a   :  { %v2394_v48 = vmul.f32 %v8709_v36, %v9657_v62  ;;  %v2396_v18 = vmul.f32 %v8709_v36, %v9659_v42  ;;  %v2398_v27 = vmul.f32 %v8709_v36, %v9661_v0  ;;  %v2417_v61 = vmul.f32 %v9664_v34, %v2342_v22 }
 0x48b   :  { %v2400_v52 = vmul.f32 %v8709_v36, %v9663_v24  ;;  %v2419_v17 = vmul.f32 %v9664_v34, %v2344_v19  ;;  %v2421_v20 = vmul.f32 %v9664_v34, %v2346_v9  ;;  %v2423_v47 = vmul.f32 %v9664_v34, %v2348_v53 }
 0x48c   :  { %v2425_v59 = vmul.f32 %v9664_v34, %v2350_v37  ;;  %v2427_v46 = vmul.f32 %v9664_v34, %v2352_v13  ;;  %v2429_v54 = vmul.f32 %v9664_v34, %v2354_v44  ;;  %v2431_v36 = vmul.f32 %v9664_v34, %v2356_v57 }
 0x48d   :  { %v2433_v58 = vmul.f32 %v9664_v34, %v2358_v21  ;;  %v2435_v7 = vmul.f32 %v9664_v34, %v2360_v16  ;;  %v2437_v22 = vmul.f32 %v9664_v34, %v2362_v45  ;;  %v2439_v19 = vmul.f32 %v9664_v34, %v2364_v56 }
 0x48e   :  { %v2441_v9 = vmul.f32 %v9664_v34, %v2366_v31  ;;  %v2443_v53 = vmul.f32 %v9664_v34, %v2368_v29  ;;  %v2445_v37 = vmul.f32 %v9664_v34, %v2370_v2  ;;  %v2447_v13 = vmul.f32 %v9664_v34, %v2372_v8 }
 0x48f   :  { %v2449_v44 = vmul.f32 %v9664_v34, %v2374_v23  ;;  %v2451_v57 = vmul.f32 %v9664_v34, %v2376_v41  ;;  %v2453_v21 = vmul.f32 %v9664_v34, %v2378_v33  ;;  %v2455_v16 = vmul.f32 %v9664_v34, %v2380_v6  ;;  %v9665_v33 = vld [vmem:[#allocation75_spill] sm:$0xff] }
 0x490   :  { %v2457_v45 = vmul.f32 %v9664_v34, %v2382_v63  ;;  %v2459_v56 = vmul.f32 %v9664_v34, %v2384_v40  ;;  %v2461_v31 = vmul.f32 %v9664_v34, %v2386_v49  ;;  %v2463_v29 = vmul.f32 %v9664_v34, %v2388_v12 }
 0x491   :  { %v2465_v2 = vmul.f32 %v9664_v34, %v2390_v10  ;;  %v2467_v8 = vmul.f32 %v9664_v34, %v2392_v38  ;;  %v2469_v23 = vmul.f32 %v9664_v34, %v2394_v48  ;;  %v2471_v41 = vmul.f32 %v9664_v34, %v2396_v18 }
 0x492   :  { %v2473_v25 = vmul.f32 %v9664_v34, %v2398_v27  ;;  %v2475_v60 = vmul.f32 %v9664_v34, %v2400_v52  ;;  %v2488_v39 = vadd.f32 %v9665_v33, %v2413_v26  ;;  %v2490_v28 = vadd.f32 %v9665_v33, %v2415_v51 }
 0x493   :  { %v2492_v6 = vadd.f32 %v9665_v33, %v2417_v61  ;;  %v2494_v50 = vadd.f32 %v9665_v33, %v2419_v17  ;;  %v2496_v3 = vadd.f32 %v9665_v33, %v2421_v20  ;;  %v2498_v63 = vadd.f32 %v9665_v33, %v2423_v47 }
 0x494   :  { %v2500_v1 = vadd.f32 %v9665_v33, %v2425_v59  ;;  %v2502_v35 = vadd.f32 %v9665_v33, %v2427_v46  ;;  %v2504_v40 = vadd.f32 %v9665_v33, %v2429_v54  ;;  %v2506_v11 = vadd.f32 %v9665_v33, %v2431_v36 }
 0x495   :  { %v2508_v49 = vadd.f32 %v9665_v33, %v2433_v58  ;;  %v2510_v5 = vadd.f32 %v9665_v33, %v2435_v7  ;;  %v2512_v12 = vadd.f32 %v9665_v33, %v2437_v22  ;;  %v2514_v14 = vadd.f32 %v9665_v33, %v2439_v19 }
 0x496   :  { %v2516_v10 = vadd.f32 %v9665_v33, %v2441_v9  ;;  %v2518_v43 = vadd.f32 %v9665_v33, %v2443_v53  ;;  %v2520_v30 = vadd.f32 %v9665_v33, %v2445_v37  ;;  %v2522_v38 = vadd.f32 %v9665_v33, %v2447_v13 }
 0x497   :  { %v2524_v4 = vadd.f32 %v9665_v33, %v2449_v44  ;;  %v2526_v62 = vadd.f32 %v9665_v33, %v2451_v57  ;;  %v8976_v48 = vadd.f32 %v9665_v33, %v2453_v21  ;;  %v8979_v55 = vadd.f32 %v9665_v33, %v2455_v16 }
 0x498   :  { %v8982_v42 = vadd.f32 %v9665_v33, %v2457_v45  ;;  %v8985_v18 = vadd.f32 %v9665_v33, %v2459_v56  ;;  %v8988_v32 = vadd.f32 %v9665_v33, %v2461_v31  ;;  %v8991_v0 = vadd.f32 %v9665_v33, %v2463_v29 }
 0x499   :  { %v8994_v27 = vadd.f32 %v9665_v33, %v2465_v2  ;;  %v8997_v15 = vadd.f32 %v9665_v33, %v2467_v8  ;;  %v9000_v24 = vadd.f32 %v9665_v33, %v2469_v23  ;;  %v9003_v52 = vadd.f32 %v9665_v33, %v2471_v41 }
 0x49a   :  { %v9006_v34 = vadd.f32 %v9665_v33, %v2473_v25  ;;  %v9009_v26 = vadd.f32 %v9665_v33, %v2475_v60  ;;  %v2552_v51 = vmax.f32 %v2488_v39, 0.0  ;;  %v2554_v61 = vmax.f32 %v2490_v28, 0.0 }
 0x49b   :  { %v2556_v17 = vmax.f32 %v2492_v6, 0.0  ;;  %v2558_v20 = vmax.f32 %v2494_v50, 0.0  ;;  %v2560_v47 = vmax.f32 %v2496_v3, 0.0  ;;  %v2562_v59 = vmax.f32 %v2498_v63, 0.0 }
 0x49c   :  { %v2564_v46 = vmax.f32 %v2500_v1, 0.0  ;;  %v2566_v54 = vmax.f32 %v2502_v35, 0.0  ;;  %v2568_v36 = vmax.f32 %v2504_v40, 0.0  ;;  %v2570_v58 = vmax.f32 %v2506_v11, 0.0  ;;  %2616 = vst [vmem:[#allocation9 + $0x8] sm:$0xff] %v2552_v51  ;;  %2618 = vst [vmem:[#allocation9 + $0x18] sm:$0xff] %v2554_v61 }
 0x49d   :  { %v2572_v7 = vmax.f32 %v2508_v49, 0.0  ;;  %v2574_v22 = vmax.f32 %v2510_v5, 0.0  ;;  %2620 = vst [vmem:[#allocation9 + $0x28] sm:$0xff] %v2556_v17  ;;  %2622 = vst [vmem:[#allocation9 + $0x38] sm:$0xff] %v2558_v20  ;;  %v2576_v19 = vmax.f32 %v2512_v12, 0.0  ;;  %v2578_v9 = vmax.f32 %v2514_v14, 0.0 }
 0x49e   :  { %v2580_v53 = vmax.f32 %v2516_v10, 0.0  ;;  %v2582_v37 = vmax.f32 %v2518_v43, 0.0  ;;  %2624 = vst [vmem:[#allocation9 + $0x48] sm:$0xff] %v2560_v47  ;;  %2626 = vst [vmem:[#allocation9 + $0x58] sm:$0xff] %v2562_v59  ;;  %v2584_v13 = vmax.f32 %v2520_v30, 0.0  ;;  %v2586_v44 = vmax.f32 %v2522_v38, 0.0 }
 0x49f   :  { %2628 = vst [vmem:[#allocation9 + $0x68] sm:$0xff] %v2564_v46  ;;  %2630 = vst [vmem:[#allocation9 + $0x78] sm:$0xff] %v2566_v54  ;;  %v2588_v57 = vmax.f32 %v2524_v4, 0.0  ;;  %v2590_v21 = vmax.f32 %v2526_v62, 0.0  ;;  %v2592_v16 = vmax.f32 %v8976_v48, 0.0  ;;  %v2594_v45 = vmax.f32 %v8979_v55, 0.0 }
 0x4a0   :  { %2632 = vst [vmem:[#allocation9 + $0x88] sm:$0xff] %v2568_v36  ;;  %2634 = vst [vmem:[#allocation9 + $0x98] sm:$0xff] %v2570_v58  ;;  %v2596_v56 = vmax.f32 %v8982_v42, 0.0  ;;  %v2598_v31 = vmax.f32 %v8985_v18, 0.0  ;;  %v2600_v29 = vmax.f32 %v8988_v32, 0.0  ;;  %v2602_v2 = vmax.f32 %v8991_v0, 0.0 }
 0x4a1   :  { %2636 = vst [vmem:[#allocation9 + $0xa8] sm:$0xff] %v2572_v7  ;;  %2638 = vst [vmem:[#allocation9 + $0xb8] sm:$0xff] %v2574_v22  ;;  %v2604_v8 = vmax.f32 %v8994_v27, 0.0  ;;  %v2606_v23 = vmax.f32 %v8997_v15, 0.0  ;;  %v2608_v41 = vmax.f32 %v9000_v24, 0.0  ;;  %v2610_v25 = vmax.f32 %v9003_v52, 0.0 }
 0x4a2   :  { %2640 = vst [vmem:[#allocation9 + $0xc8] sm:$0xff] %v2576_v19  ;;  %2642 = vst [vmem:[#allocation9 + $0xd8] sm:$0xff] %v2578_v9  ;;  %v2612_v60 = vmax.f32 %v9006_v34, 0.0  ;;  %v2614_v33 = vmax.f32 %v9009_v26, 0.0 }
 0x4a3   :  { %2644 = vst [vmem:[#allocation9 + $0xe8] sm:$0xff] %v2580_v53  ;;  %2646 = vst [vmem:[#allocation9 + $0xf8] sm:$0xff] %v2582_v37 }
 0x4a4   :  { %2648 = vst [vmem:[#allocation9 + $0x108] sm:$0xff] %v2584_v13  ;;  %2650 = vst [vmem:[#allocation9 + $0x118] sm:$0xff] %v2586_v44 }
 0x4a5   :  { %2652 = vst [vmem:[#allocation9 + $0x128] sm:$0xff] %v2588_v57  ;;  %2654 = vst [vmem:[#allocation9 + $0x138] sm:$0xff] %v2590_v21 }
 0x4a6   :  { %2656 = vst [vmem:[#allocation9 + $0x148] sm:$0xff] %v2592_v16  ;;  %2658 = vst [vmem:[#allocation9 + $0x158] sm:$0xff] %v2594_v45 }
 0x4a7   :  { %2660 = vst [vmem:[#allocation9 + $0x168] sm:$0xff] %v2596_v56  ;;  %2662 = vst [vmem:[#allocation9 + $0x178] sm:$0xff] %v2598_v31 }
 0x4a8   :  { %2664 = vst [vmem:[#allocation9 + $0x188] sm:$0xff] %v2600_v29  ;;  %2666 = vst [vmem:[#allocation9 + $0x198] sm:$0xff] %v2602_v2 }
 0x4a9   :  { %2668 = vst [vmem:[#allocation9 + $0x1a8] sm:$0xff] %v2604_v8  ;;  %2670 = vst [vmem:[#allocation9 + $0x1b8] sm:$0xff] %v2606_v23 }
 0x4aa   :  { %2672 = vst [vmem:[#allocation9 + $0x1c8] sm:$0xff] %v2608_v41  ;;  %2674 = vst [vmem:[#allocation9 + $0x1d8] sm:$0xff] %v2610_v25 }
 0x4ab   :  { %2676 = vst [vmem:[#allocation9 + $0x1e8] sm:$0xff] %v2612_v60  ;;  %2678 = vst [vmem:[#allocation9 + $0x1f8] sm:$0xff] %v2614_v33 }
 0x4ac LB: > { %s5512_s12 = sshll.u32 %s6533_s11, 7  ;;  %s2787_s16 = sshra.s32 %s6533_s11, 1  ;;  %s6533_s11 = sphi %s9023_s11, %s2684_s11  }
 0x4ad   : > { %s2686_s2 = sshra.s32 %s5512_s12, 3  ;;  %s2790_s25 = sand.u32 1, %s6533_s11 }
 0x4ae   : > { %s5791_s23 = sshll.u32 %s2686_s2, 4  ;;  %s5792_s26 = sshll.u32 %s2787_s16, 2 }
 0x4af   : > { %s9029_s24 = scalar_lea.vmem [#allocation9], %s5791_s23  ;;  %s2793_s27 = sadd.s32 %s5792_s26, %s2790_s25 }
 0x4b0   : > { %s2794_s3 = scalar_lea.vmem [#allocation10], %s2793_s27  ;;  %s2684_s11 = sadd.s32 1, %s6533_s11  }
 0x4b1   : > { %p2681_p12 = scmp.ge.s32.totalorder %s2684_s11, 2  }
 0x4b2   : > { %v2691_v39 = vld [vmem:[%s9029_s24] sm:$0xff]  ;;  %v2692_v28 = vld [vmem:[%s9029_s24 + $0x8] sm:$0xff]  ;;  %v2693_v6 = vld [vmem:[%s9029_s24 + $0x10] sm:$0xff] }
 0x4b3   : > { %v2694_v50 = vld [vmem:[%s9029_s24 + $0x18] sm:$0xff]  ;;  %v2695_v3 = vld [vmem:[%s9029_s24 + $0x20] sm:$0xff]  ;;  %v2696_v63 = vld [vmem:[%s9029_s24 + $0x28] sm:$0xff] }
 0x4b4   : > { %v2697_v1 = vld [vmem:[%s9029_s24 + $0x30] sm:$0xff]  ;;  %v2698_v35 = vld [vmem:[%s9029_s24 + $0x38] sm:$0xff]  ;;  %v2699_v40 = vld [vmem:[%s9029_s24 + $0x40] sm:$0xff]  ;;  %v2723_v11 = vmax.f32 %v2691_v39, %v2695_v3  ;;  %v2744_v49 = vmax.f32 %v2692_v28, %v2696_v63 }
 0x4b5   : > { %v2700_v5 = vld [vmem:[%s9029_s24 + $0x48] sm:$0xff]  ;;  %v2701_v12 = vld [vmem:[%s9029_s24 + $0x50] sm:$0xff]  ;;  %v2702_v14 = vld [vmem:[%s9029_s24 + $0x58] sm:$0xff]  ;;  %v2724_v10 = vmax.f32 %v2693_v6, %v2697_v1  ;;  %v2745_v43 = vmax.f32 %v2694_v50, %v2698_v35  ;;  %v6550_v6 = vmov 1966171168  }
 0x4b6   : > { %v2703_v30 = vld [vmem:[%s9029_s24 + $0x60] sm:$0xff]  ;;  %v2704_v38 = vld [vmem:[%s9029_s24 + $0x68] sm:$0xff]  ;;  %v2705_v4 = vld [vmem:[%s9029_s24 + $0x70] sm:$0xff]  ;;  %v2725_v62 = vmax.f32 %v2723_v11, %v2699_v40  ;;  %v2746_v48 = vmax.f32 %v2744_v49, %v2700_v5  ;;  %v2769_v50 = vunpack.c.l.s4 %v6550_v6 }
 0x4b7   : > { %v2706_v55 = vld [vmem:[%s9029_s24 + $0x78] sm:$0xff]  ;;  %v2707_v42 = vld [vmem:[%s9029_s24 + $0x80] sm:$0xff]  ;;  %v2708_v18 = vld [vmem:[%s9029_s24 + $0x88] sm:$0xff]  ;;  %v2726_v32 = vmax.f32 %v2724_v10, %v2701_v12  ;;  %v2747_v0 = vmax.f32 %v2745_v43, %v2702_v14 }
 0x4b8   : > { %v2709_v27 = vld [vmem:[%s9029_s24 + $0x90] sm:$0xff]  ;;  %v2710_v15 = vld [vmem:[%s9029_s24 + $0x98] sm:$0xff]  ;;  %v2727_v24 = vmax.f32 %v2725_v62, %v2703_v30  ;;  %v2748_v52 = vmax.f32 %v2746_v48, %v2704_v38  ;;  %v2711_v34 = vld [vmem:[%s9029_s24 + $0xa0] sm:$0xff]  ;;  %v2770_v40 = vunpack.c.0.s8 %v2769_v50  ;;  %v9667_v38 = vlaneseq }
 0x4b9   : > { %v2712_v26 = vld [vmem:[%s9029_s24 + $0xa8] sm:$0xff]  ;;  %v2728_v51 = vmax.f32 %v2726_v32, %v2705_v4  ;;  %v2749_v61 = vmax.f32 %v2747_v0, %v2706_v55  ;;  %v2713_v17 = vld [vmem:[%s9029_s24 + $0xb0] sm:$0xff]  ;;  %v2714_v20 = vld [vmem:[%s9029_s24 + $0xb8] sm:$0xff] }
 0x4ba   : > { %v2729_v47 = vmax.f32 %v2727_v24, %v2707_v42  ;;  %v2750_v59 = vmax.f32 %v2748_v52, %v2708_v18  ;;  %v2715_v46 = vld [vmem:[%s9029_s24 + $0xc0] sm:$0xff]  ;;  %v2716_v54 = vld [vmem:[%s9029_s24 + $0xc8] sm:$0xff]  ;;  %v2717_v7 = vld [vmem:[%s9029_s24 + $0xd0] sm:$0xff]  ;;  %vm2785_vm4 = vcmp.lt.s32.totalorder %v9667_v38, 256 }
 0x4bb   : > { %v2730_v36 = vmax.f32 %v2728_v51, %v2709_v27  ;;  %v2751_v58 = vmax.f32 %v2749_v61, %v2710_v15  ;;  %v2718_v22 = vld [vmem:[%s9029_s24 + $0xd8] sm:$0xff]  ;;  %v2719_v53 = vld [vmem:[%s9029_s24 + $0xe0] sm:$0xff]  ;;  %v2720_v37 = vld [vmem:[%s9029_s24 + $0xe8] sm:$0xff] }
 0x4bc   : > { %v2731_v19 = vmax.f32 %v2729_v47, %v2711_v34  ;;  %v2752_v9 = vmax.f32 %v2750_v59, %v2712_v26  ;;  %v2721_v57 = vld [vmem:[%s9029_s24 + $0xf0] sm:$0xff]  ;;  %v2722_v21 = vld [vmem:[%s9029_s24 + $0xf8] sm:$0xff]  ;;  %v9666_v14 = vld [vmem:[#allocation43_spill] sm:$0xff] }
 0x4bd   : > { %v2732_v13 = vmax.f32 %v2730_v36, %v2713_v17  ;;  %v2753_v44 = vmax.f32 %v2751_v58, %v2714_v20  ;;  %v9066_v10 = vsub.s32 %v2770_v40, %v9666_v14 }
 0x4be   : > { %v2733_v16 = vmax.f32 %v2731_v19, %v2715_v46  ;;  %v2754_v45 = vmax.f32 %v2752_v9, %v2716_v54 }
 0x4bf   : > { %v2734_v56 = vmax.f32 %v2732_v13, %v2717_v7  ;;  %v2755_v31 = vmax.f32 %v2753_v44, %v2718_v22 }
 0x4c0   : > { %v2735_v29 = vmax.f32 %v2733_v16, %v2719_v53  ;;  %v2756_v2 = vmax.f32 %v2754_v45, %v2720_v37 }
 0x4c1   : > { %v2736_v8 = vmax.f32 %v2734_v56, %v2721_v57  ;;  %v2757_v23 = vmax.f32 %v2755_v31, %v2722_v21 }
 0x4c3   : > { %v2737_v41 = vmax.f32 %v2735_v29, %v2736_v8  ;;  %v2758_v25 = vmax.f32 %v2756_v2, %v2757_v23 }
 0x4c5   : > { %v2738_v60 = vrot.slane %v2737_v41, 4  ;;  %v2759_v33 = vrot.slane %v2758_v25, 4 }
 0x4c7   : > { %v2739_v39 = vmax.f32 %v2737_v41, %v2738_v60  ;;  %v2760_v28 = vmax.f32 %v2758_v25, %v2759_v33 }
 0x4c9   : > { %v2740_v3 = vrot.slane %v2739_v39, 2  ;;  %v2761_v63 = vrot.slane %v2760_v28, 2 }
 0x4cb   : > { %v2741_v1 = vmax.f32 %v2739_v39, %v2740_v3  ;;  %v2762_v35 = vmax.f32 %v2760_v28, %v2761_v63 }
 0x4cd   : > { %v2742_v11 = vrot.slane %v2741_v1, 1  ;;  %v2763_v49 = vrot.slane %v2762_v35, 1 }
 0x4cf   : > { %v2743_v5 = vmax.f32 %v2741_v1, %v2742_v11  ;;  %v2764_v12 = vmax.f32 %v2762_v35, %v2763_v49 }
 0x4d1   : > { %v2767_v43 = vcombine.low %v2743_v5, %v2764_v12 }
 0x4d3   : > { %v2774_v30 = vrot.slane %v2767_v43, %v9066_v10  ;;  %2683 = sbr.rel (!%p2681_p12) target bundleno = 1196 (0x4ac), region = 253 }
 0x4d5   : > { %v2781_v4 = vrot.slane %v2774_v30, %v9066_v10 }
 0x4d7   : > { %2795 = vst.msk [vmem:[%s2794_s3] ss:$2 sm:$0x3] %vm2785_vm4, %v2781_v4 }
 0x4d8   :  { %6519 = dma.done.wait [#allocation7 + $0x1], 8192 }
 0x4d9   :  { %6520 = vsyncadd [#allocation7 + $0x1], 4294959104 }
 0x4da   :  { %6521 = dma.done.wait [#allocation7 + $0x2], 64 }
 0x4db   :  { %6522 = vsyncadd [#allocation7 + $0x2], 4294967232  ;;  %v6006_v62 = vld [vmem:[#allocation3 + $0xe4] ss:$16 sps:$4 sm:$0xff]   ;;  %v6008_v48 = vld [vmem:[#allocation3 + $0xe0] ss:$16 sps:$4 sm:$0xff]  }
 0x4dc   :  { %3223 = vmatprep.subr.bf16.mxu1 %v6006_v62  ;;  %v6009_v55 = vld [vmem:[#allocation3 + $0xc4] ss:$16 sps:$4 sm:$0xff]   ;;  %v6011_v42 = vld [vmem:[#allocation3 + $0xc0] ss:$16 sps:$4 sm:$0xff]   ;;  %v6056_v56 = vld [vmem:[#allocation3 + $0xec] ss:$16 sps:$4 sm:$0xff]  }
 0x4dd   :  { %3224 = vmatpush1.bf16.msra.mxu1 %v6008_v48  ;;  %v6012_v18 = vld [vmem:[#allocation3 + $0xa4] ss:$16 sps:$4 sm:$0xff]   ;;  %v6014_v32 = vld [vmem:[#allocation3 + $0xa0] ss:$16 sps:$4 sm:$0xff]   ;;  %v6054_v29 = vld [vmem:[#allocation3 + $0xe8] ss:$16 sps:$4 sm:$0xff]  }
 0x4de   :  { %3225 = vmatprep.subr.bf16.mxu1 %v6009_v55  ;;  %v6015_v0 = vld [vmem:[#allocation3 + $0x84] ss:$16 sps:$4 sm:$0xff]   ;;  %v6017_v27 = vld [vmem:[#allocation3 + $0x80] ss:$16 sps:$4 sm:$0xff]   ;;  %v6059_v2 = vld [vmem:[#allocation3 + $0xcc] ss:$16 sps:$4 sm:$0xff]  }
 0x4df   :  { %v6018_v15 = vld [vmem:[#allocation3 + $0x64] ss:$16 sps:$4 sm:$0xff]   ;;  %v6020_v24 = vld [vmem:[#allocation3 + $0x60] ss:$16 sps:$4 sm:$0xff]   ;;  %v6057_v8 = vld [vmem:[#allocation3 + $0xc8] ss:$16 sps:$4 sm:$0xff]  }
 0x4e0   :  { %v6021_v52 = vld [vmem:[#allocation3 + $0x44] ss:$16 sps:$4 sm:$0xff]   ;;  %v6023_v34 = vld [vmem:[#allocation3 + $0x40] ss:$16 sps:$4 sm:$0xff]   ;;  %v6062_v23 = vld [vmem:[#allocation3 + $0xac] ss:$16 sps:$4 sm:$0xff]  }
 0x4e1   :  { %3226 = vmatpush1.bf16.msra.mxu1 %v6011_v42  ;;  %v6024_v26 = vld [vmem:[#allocation3 + $0x24] ss:$16 sps:$4 sm:$0xff]   ;;  %v5517_v51 = vld.sshfl [vmem:[#allocation10] sm:$0x33 pattern:$0x76325410] }
 0x4e2   :  { %3227 = vmatprep.subr.bf16.mxu1 %v6012_v18  ;;  %v2812_v61 = vcombine.high %v5517_v51, %v5517_v51  ;;  %v6026_v17 = vld [vmem:[#allocation3 + $0x20] ss:$16 sps:$4 sm:$0xff]   ;;  %v6027_v20 = vld [vmem:[#allocation3 + $0x4] ss:$16 sps:$4 sm:$0xff]   ;;  %v9074_v31 = vpack.c.bf16 %v5517_v51, %v5517_v51  ;;  %v6060_v41 = vld [vmem:[#allocation3 + $0xa8] ss:$16 sps:$4 sm:$0xff]  }
 0x4e3   :  { %v6029_v59 = vld [vmem:[#allocation3] ss:$16 sps:$4 sm:$0xff]   ;;  %v6030_v46 = vld [vmem:[#allocation3 + $0x1e4] ss:$16 sps:$4 sm:$0xff]   ;;  %v6065_v25 = vld [vmem:[#allocation3 + $0x8c] ss:$16 sps:$4 sm:$0xff]  }
 0x4e4   :  { %v2816_v47 = vpack.c.bf16 %v2812_v61, %v2812_v61  ;;  %v6032_v54 = vld [vmem:[#allocation3 + $0x1e0] ss:$16 sps:$4 sm:$0xff]   ;;  %v6033_v36 = vld [vmem:[#allocation3 + $0x1c4] ss:$16 sps:$4 sm:$0xff]   ;;  %v6063_v60 = vld [vmem:[#allocation3 + $0x88] ss:$16 sps:$4 sm:$0xff]  }
 0x4e5   :  { %3228 = vmatpush1.bf16.msra.mxu1 %v6014_v32  ;;  %v6035_v58 = vld [vmem:[#allocation3 + $0x1c0] ss:$16 sps:$4 sm:$0xff]   ;;  %v6036_v7 = vld [vmem:[#allocation3 + $0x1a4] ss:$16 sps:$4 sm:$0xff]   ;;  %v6068_v33 = vld [vmem:[#allocation3 + $0x6c] ss:$16 sps:$4 sm:$0xff]  }
 0x4e6   :  { %3229 = vmatprep.subr.bf16.mxu1 %v6015_v0  ;;  %3255 = vmatprep.mubr.bf16.mxu1 %v2816_v47  ;;  %v6038_v22 = vld [vmem:[#allocation3 + $0x1a0] ss:$16 sps:$4 sm:$0xff]   ;;  %v6039_v19 = vld [vmem:[#allocation3 + $0x184] ss:$16 sps:$4 sm:$0xff]   ;;  %v6066_v39 = vld [vmem:[#allocation3 + $0x68] ss:$16 sps:$4 sm:$0xff]  }
 0x4e7   :  { %v6041_v9 = vld [vmem:[#allocation3 + $0x180] ss:$16 sps:$4 sm:$0xff]   ;;  %v6042_v53 = vld [vmem:[#allocation3 + $0x164] ss:$16 sps:$4 sm:$0xff]   ;;  %v6071_v28 = vld [vmem:[#allocation3 + $0x4c] ss:$16 sps:$4 sm:$0xff]  }
 0x4e8   :  { %v6044_v37 = vld [vmem:[#allocation3 + $0x160] ss:$16 sps:$4 sm:$0xff]   ;;  %v6045_v13 = vld [vmem:[#allocation3 + $0x144] ss:$16 sps:$4 sm:$0xff]   ;;  %v6069_v6 = vld [vmem:[#allocation3 + $0x48] ss:$16 sps:$4 sm:$0xff]  }
 0x4e9   :  { %3230 = vmatpush1.bf16.msra.mxu1 %v6017_v27  ;;  %v6047_v44 = vld [vmem:[#allocation3 + $0x140] ss:$16 sps:$4 sm:$0xff]   ;;  %v6048_v57 = vld [vmem:[#allocation3 + $0x124] ss:$16 sps:$4 sm:$0xff]   ;;  %v6074_v50 = vld [vmem:[#allocation3 + $0x2c] ss:$16 sps:$4 sm:$0xff]  }
 0x4ea   :  { %3231 = vmatprep.subr.bf16.mxu1 %v6018_v15  ;;  %v6050_v21 = vld [vmem:[#allocation3 + $0x120] ss:$16 sps:$4 sm:$0xff]   ;;  %v6051_v16 = vld [vmem:[#allocation3 + $0x104] ss:$16 sps:$4 sm:$0xff]   ;;  %v6072_v3 = vld [vmem:[#allocation3 + $0x28] ss:$16 sps:$4 sm:$0xff]  }
 0x4eb   :  { %v6053_v45 = vld [vmem:[#allocation3 + $0x100] ss:$16 sps:$4 sm:$0xff]   ;;  %v6077_v63 = vld [vmem:[#allocation3 + $0xc] ss:$16 sps:$4 sm:$0xff]   ;;  %v6075_v1 = vld [vmem:[#allocation3 + $0x8] ss:$16 sps:$4 sm:$0xff]  }
 0x4ec   :  { %v6080_v35 = vld [vmem:[#allocation3 + $0x1ec] ss:$16 sps:$4 sm:$0xff]   ;;  %v6078_v40 = vld [vmem:[#allocation3 + $0x1e8] ss:$16 sps:$4 sm:$0xff]   ;;  %v2881_v32 = vld [vmem:[#allocation4] sm:$0xf] }
 0x4ed   :  { %3232 = vmatpush1.bf16.msra.mxu1 %v6020_v24  ;;  %v6083_v11 = vld [vmem:[#allocation3 + $0x1cc] ss:$16 sps:$4 sm:$0xff]   ;;  %v6081_v49 = vld [vmem:[#allocation3 + $0x1c8] ss:$16 sps:$4 sm:$0xff]  }
 0x4ee   :  { %3233 = vmatprep.subr.bf16.mxu1 %v6021_v52  ;;  %v6086_v5 = vld [vmem:[#allocation3 + $0x1ac] ss:$16 sps:$4 sm:$0xff]   ;;  %v6084_v12 = vld [vmem:[#allocation3 + $0x1a8] ss:$16 sps:$4 sm:$0xff]  }
 0x4ef   :  { %v6089_v14 = vld [vmem:[#allocation3 + $0x18c] ss:$16 sps:$4 sm:$0xff]   ;;  %v6087_v43 = vld [vmem:[#allocation3 + $0x188] ss:$16 sps:$4 sm:$0xff]  }
 0x4f0   :  { %v6092_v30 = vld [vmem:[#allocation3 + $0x16c] ss:$16 sps:$4 sm:$0xff]   ;;  %v6090_v38 = vld [vmem:[#allocation3 + $0x168] ss:$16 sps:$4 sm:$0xff]  }
 0x4f1   :  { %3234 = vmatpush1.bf16.msra.mxu1 %v6023_v34  ;;  %v6095_v4 = vld [vmem:[#allocation3 + $0x14c] ss:$16 sps:$4 sm:$0xff]   ;;  %v6093_v62 = vld [vmem:[#allocation3 + $0x148] ss:$16 sps:$4 sm:$0xff]  }
 0x4f2   :  { %3235 = vmatprep.subr.bf16.mxu1 %v6024_v26  ;;  %v6098_v48 = vld [vmem:[#allocation3 + $0x12c] ss:$16 sps:$4 sm:$0xff]   ;;  %v6096_v55 = vld [vmem:[#allocation3 + $0x128] ss:$16 sps:$4 sm:$0xff]  }
 0x4f3   :  { %v6101_v42 = vld [vmem:[#allocation3 + $0x10c] ss:$16 sps:$4 sm:$0xff]   ;;  %v6099_v18 = vld [vmem:[#allocation3 + $0x108] ss:$16 sps:$4 sm:$0xff]  }
 0x4f4   :  { %v9668_v0 = vld [vmem:[#allocation44_spill] sm:$0xff]  ;;  %v9669_v15 = vld [vmem:[#allocation45_spill] sm:$0xff] }
 0x4f5   :  { %3236 = vmatpush1.bf16.msra.mxu1 %v6026_v17  ;;  %v2886_v27 = vrot.slane %v2881_v32, %v9668_v0  ;;  %v2890_v24 = vrot.slane %v2881_v32, %v9669_v15 }
 0x4f6   :  { %3237 = vmatprep.subr.bf16.mxu1 %v6027_v20 }
 0x4f9   :  { %3238 = vmatpush1.bf16.msra.mxu1 %v6029_v59 }
 0x4fa   :  { %3239 = vmatprep.subr.bf16.mxu1 %v6030_v46  ;;  %v9670_v46 = vld [vmem:[#allocation43_spill] sm:$0xff] }
 0x4fd   :  { %3240 = vmatpush2.bf16.msra.mxu1 %v6032_v54  ;;  %v9081_v54 = vsub.s32 2, %v9670_v46 }
 0x4fe   :  { %3241 = vmatprep.subr.bf16.mxu1 %v6033_v36  ;;  %v9084_v36 = vsub.s32 3, %v9670_v46 }
 0x501   :  { %3242 = vmatpush2.bf16.msra.mxu1 %v6035_v58 }
 0x502   :  { %3243 = vmatprep.subr.bf16.mxu1 %v6036_v7  ;;  %v2894_v7 = vrot.slane %v2881_v32, %v9081_v54 }
 0x505   :  { %3244 = vmatpush2.bf16.msra.mxu1 %v6038_v22  ;;  %v2898_v22 = vrot.slane %v2881_v32, %v9084_v36 }
 0x506   :  { %3245 = vmatprep.subr.bf16.mxu1 %v6039_v19 }
 0x509   :  { %3246 = vmatpush2.bf16.msra.mxu1 %v6041_v9 }
 0x50a   :  { %3247 = vmatprep.subr.bf16.mxu1 %v6042_v53 }
 0x50d   :  { %3248 = vmatpush2.bf16.msra.mxu1 %v6044_v37 }
 0x50e   :  { %3249 = vmatprep.subr.bf16.mxu1 %v6045_v13 }
 0x511   :  { %3250 = vmatpush2.bf16.msra.mxu1 %v6047_v44 }
 0x512   :  { %3251 = vmatprep.subr.bf16.mxu1 %v6048_v57 }
 0x515   :  { %3252 = vmatpush2.bf16.msra.mxu1 %v6050_v21 }
 0x516   :  { %3253 = vmatprep.subr.bf16.mxu1 %v6051_v16 }
 0x519   :  { %3254 = vmatpush2.bf16.msra.mxu1 %v6053_v45 }
 0x51a   :  { %3264 = vmatprep.subr.bf16.mxu1 %v6056_v56 }
 0x51c   :  { %3256 = vmatmul.mubr.bf16.vlgmr.msra.gmra.mxu1 %v9074_v31 }
 0x51d   :  { %3265 = vmatpush1.bf16.msra.mxu1 %v6054_v29  ;;  %3296 = vmatprep.mubr.bf16.mxu1 %v2816_v47  ;;  %v6551_v47 = vmov 1983009808  }
 0x51e   :  { %3266 = vmatprep.subr.bf16.mxu1 %v6059_v2  ;;  %v3312_v59 = vunpack.c.l.s4 %v6551_v47 }
 0x520   :  { %v3313_v58 = vunpack.c.0.s8 %v3312_v59 }
 0x521   :  { %3267 = vmatpush1.bf16.msra.mxu1 %v6057_v8 }
 0x522   :  { %3268 = vmatprep.subr.bf16.mxu1 %v6062_v23  ;;  %v3316_v53 = vsub.s32 %v3313_v58, %v9670_v46 }
 0x525   :  { %3269 = vmatpush1.bf16.msra.mxu1 %v6060_v41 }
 0x526   :  { %3270 = vmatprep.subr.bf16.mxu1 %v6065_v25 }
 0x529   :  { %3271 = vmatpush1.bf16.msra.mxu1 %v6063_v60 }
 0x52a   :  { %3272 = vmatprep.subr.bf16.mxu1 %v6068_v33 }
 0x52d   :  { %3273 = vmatpush1.bf16.msra.mxu1 %v6066_v39 }
 0x52e   :  { %3274 = vmatprep.subr.bf16.mxu1 %v6071_v28 }
 0x531   :  { %3275 = vmatpush1.bf16.msra.mxu1 %v6069_v6 }
 0x532   :  { %3276 = vmatprep.subr.bf16.mxu1 %v6074_v50 }
 0x535   :  { %3277 = vmatpush1.bf16.msra.mxu1 %v6072_v3 }
 0x536   :  { %3278 = vmatprep.subr.bf16.mxu1 %v6077_v63 }
 0x539   :  { %3279 = vmatpush1.bf16.msra.mxu1 %v6075_v1 }
 0x53a   :  { %3280 = vmatprep.subr.bf16.mxu1 %v6080_v35 }
 0x53d   :  { %3281 = vmatpush2.bf16.msra.mxu1 %v6078_v40 }
 0x53e   :  { %3282 = vmatprep.subr.bf16.mxu1 %v6083_v11 }
 0x541   :  { %3283 = vmatpush2.bf16.msra.mxu1 %v6081_v49 }
 0x542   :  { %3284 = vmatprep.subr.bf16.mxu1 %v6086_v5 }
 0x545   :  { %3285 = vmatpush2.bf16.msra.mxu1 %v6084_v12 }
 0x546   :  { %3286 = vmatprep.subr.bf16.mxu1 %v6089_v14 }
 0x549   :  { %3287 = vmatpush2.bf16.msra.mxu1 %v6087_v43 }
 0x54a   :  { %3288 = vmatprep.subr.bf16.mxu1 %v6092_v30 }
 0x54d   :  { %3289 = vmatpush2.bf16.msra.mxu1 %v6090_v38 }
 0x54e   :  { %3290 = vmatprep.subr.bf16.mxu1 %v6095_v4 }
 0x551   :  { %3291 = vmatpush2.bf16.msra.mxu1 %v6093_v62 }
 0x552   :  { %3292 = vmatprep.subr.bf16.mxu1 %v6098_v48 }
 0x555   :  { %3293 = vmatpush2.bf16.msra.mxu1 %v6096_v55 }
 0x556   :  { %3294 = vmatprep.subr.bf16.mxu1 %v6101_v42 }
 0x559   :  { %3295 = vmatpush2.bf16.msra.mxu1 %v6099_v18 }
 0x55c   :  { %3297 = vmatmul.mubr.bf16.vlgmr.msra.gmra.mxu1 %v9074_v31 }
 0x5dc   :  { %v3257_v52 = vpop.f32.mrf.mxu1 }
 0x5dd   :  { %v3258_v34 = vadd.f32 %v3257_v52, %v2886_v27 }
 0x5de   :  { %v3259_v26 = vpop.f32.mrf.mxu1 }
 0x5df   :  { %v3260_v51 = vadd.f32 %v3259_v26, %v2890_v24 }
 0x5e0   :  { %v3261_v61 = vpop.f32.mrf.mxu1 }
 0x5e1   :  { %v3309_v17 = vcombine.low %v3258_v34, %v3260_v51 }
 0x5e2   :  { %v3262_v20 = vpop.f32.mrf.mxu1 }
 0x5e3   :  { %v3317_v16 = vrot.slane %v3309_v17, %v3316_v53 }
 0x61c   :  { %v3298_v19 = vpop.f32.mrf.mxu1 }
 0x61d   :  { %v3299_v37 = vadd.f32 %v3298_v19, %v2894_v7 }
 0x61e   :  { %v3300_v9 = vpop.f32.mrf.mxu1 }
 0x61f   :  { %v3301_v13 = vadd.f32 %v3300_v9, %v2898_v22 }
 0x620   :  { %v3302_v44 = vpop.f32.mrf.mxu1 }
 0x621   :  { %v3310_v57 = vcombine.low %v3299_v37, %v3301_v13 }
 0x622   :  { %v3303_v21 = vpop.f32.mrf.mxu1 }
 0x623   :  { %v3324_v45 = vrot.slane %v3310_v57, %v3316_v53 }
 0x625   :  { %v3325_v56 = vcombine.low %v3317_v16, %v3324_v45 }
 0x627   :  { %3327 = vst [vmem:[#allocation11] sm:$0xff] %v3325_v56 }
 0x628   :  { %6523 = dma.done.wait [#allocation7], 2048 }
 0x629   :  { %6524 = vsyncadd [#allocation7], 4294965248 }
 0x62a   :  { %6525 = dma.done.wait [#allocation7 + $0x3], 16384 }
 0x62b   :  { %6526 = vsyncadd [#allocation7 + $0x3], 4294950912 }
 0x62c   :  { %6527 = dma.done.wait [#allocation7 + $0x4], 64 }
 0x62d   :  { %6528 = vsyncadd [#allocation7 + $0x4], 4294967232  ;;  %s9089_s28 = smov 0  }
 0x62e LB: > { %v6102_v31 = vld [vmem:[#allocation2 + $0x64] ss:$24 sps:$4 sm:$0xff]   ;;  %v6104_v29 = vld [vmem:[#allocation2 + $0x74] ss:$-72 sps:$4 sm:$0xff]   ;;  %v6552_v2 = vmov 0   ;;  %s5582_s4 = sshll.u32 %s6537_s28, 7  ;;  %s6537_s28 = sphi %s9089_s28, %s3343_s28  }
 0x62f   : > { %3587 = vmatprep.mubr.bf16.mxu0 %v6552_v2  ;;  %3700 = vmatprep.mubr.bf16.mxu1 %v6552_v2  ;;  %v6106_v8 = vld [vmem:[#allocation2 + $0x60] ss:$24 sps:$4 sm:$0xff]   ;;  %v6107_v23 = vld [vmem:[#allocation2 + $0x70] ss:$-72 sps:$4 sm:$0xff]   ;;  %v6108_v41 = vld [vmem:[#allocation2 + $0x44] ss:$-48 sps:$4 sm:$0xff]  }
 0x630   : > { %3563 = vmatprep.subr.bf16.mxu0 %v6102_v31  ;;  %3676 = vmatprep.subr.bf16.mxu1 %v6104_v29  ;;  %s3345_s29 = sshra.s32 %s5582_s4, 3  ;;  %v6110_v25 = vld [vmem:[#allocation2 + $0x24] ss:$24 sps:$4 sm:$0xff]   ;;  %v6112_v60 = vld [vmem:[#allocation2 + $0x40] ss:$-48 sps:$4 sm:$0xff]   ;;  %v3370_v28 = vld [vmem:[#allocation2 + $0x68] sm:$0xff] }
 0x631   : > { %3564 = vmatpush1.bf16.msra.mxu0 %v6106_v8  ;;  %3677 = vmatpush1.bf16.msra.mxu1 %v6107_v23  ;;  %v6113_v33 = vld [vmem:[#allocation2 + $0x20] ss:$24 sps:$4 sm:$0xff]   ;;  %v6114_v39 = vld [vmem:[#allocation2 + $0x54] ss:$-72 sps:$4 sm:$0xff]   ;;  %s5583_s13 = sshll.u32 %s3345_s29, 2  ;;  %s3381_s21 = sshra.s32 %s6537_s28, 1 }
 0x632   : > { %3565 = vmatprep.subr.bf16.mxu0 %v6108_v41  ;;  %3678 = vmatprep.subr.bf16.mxu1 %v6110_v25  ;;  %v3372_v6 = vld [vmem:[#allocation2 + $0x48] sm:$0xff]  ;;  %v6117_v1 = vld [vmem:[#allocation2 + $0x34] ss:$40 sps:$4 sm:$0xff]   ;;  %s9097_s0 = scalar_lea.vmem [#allocation8], %s5583_s13  ;;  %v6121_v40 = vld [vmem:[#allocation2 + $0x30] ss:$40 sps:$4 sm:$0xff]  }
 0x633   : > { %v5601_v50 = vcombine.high %v3370_v28, %v3372_v6  ;;  %v6116_v3 = vld [vmem:[#allocation2 + $0x50] ss:$-72 sps:$4 sm:$0xff]   ;;  %v5600_v63 = vcombine.low %v3370_v28, %v3372_v6  ;;  %v6119_v35 = vld [vmem:[#allocation2 + $0x4] ss:$24 sps:$4 sm:$0xff]   ;;  %v6122_v11 = vld [vmem:[#allocation2] ss:$24 sps:$4 sm:$0xff]  }
 0x634   : > { %v6123_v49 = vld [vmem:[%s9097_s0] sm:$0xff]   ;;  %v6133_v12 = vld [vmem:[#allocation5 + $0xe4] ss:$16 sps:$4 sm:$0xff]   ;;  %v6125_v24 = vld [vmem:[%s9097_s0 + $0x10] sm:$0xff]   ;;  %s3384_s15 = sand.u32 1, %s6537_s28  ;;  %s5793_s6 = sshll.u32 %s3381_s21, 3 }
 0x635   : > { %3566 = vmatpush1.bf16.msra.mxu0 %v6112_v60  ;;  %3679 = vmatpush1.bf16.msra.mxu1 %v6113_v33  ;;  %v6131_v5 = vld [vmem:[#allocation5 + $0xe0] ss:$16 sps:$4 sm:$0xff]   ;;  %v6136_v43 = vld [vmem:[#allocation5 + $0x2e4] ss:$16 sps:$4 sm:$0xff]   ;;  %s9139_s19 = sadd.s32 %s5793_s6, %s3384_s15  ;;  %s3343_s28 = sadd.s32 1, %s6537_s28  }
 0x636   : > { %3567 = vmatprep.subr.bf16.mxu0 %v6114_v39  ;;  %3680 = vmatprep.subr.bf16.mxu1 %v5601_v50  ;;  %v6134_v14 = vld [vmem:[#allocation5 + $0x2e0] ss:$16 sps:$4 sm:$0xff]   ;;  %v6139_v38 = vld [vmem:[#allocation5 + $0xc4] ss:$16 sps:$4 sm:$0xff]   ;;  %s3388_s1 = scalar_lea.vmem [#allocation11], %s9139_s19  ;;  %s5300_s20 = scalar_lea.vmem [#allocation23], %s9139_s19 }
 0x637   : > { %v6137_v30 = vld [vmem:[#allocation5 + $0xc0] ss:$16 sps:$4 sm:$0xff]   ;;  %v6124_v4 = vld [vmem:[%s9097_s0 + $0x8] sm:$0xff]   ;;  %v6126_v59 = vld [vmem:[%s9097_s0 + $0x18] sm:$0xff]   ;;  %p3340_p13 = scmp.ge.s32.totalorder %s3343_s28, 2  }
 0x638   : > { %v6142_v62 = vld [vmem:[#allocation5 + $0x2c4] ss:$16 sps:$4 sm:$0xff]   ;;  %v6140_v48 = vld [vmem:[#allocation5 + $0x2c0] ss:$16 sps:$4 sm:$0xff]   ;;  %s6553_s14 = smov (%p3340_p13), [#allocation23]  }
 0x639   : > { %3568 = vmatpush1.bf16.msra.mxu0 %v6116_v3  ;;  %3681 = vmatpush1.bf16.msra.mxu1 %v5600_v63  ;;  %v6143_v55 = vld [vmem:[#allocation5 + $0xa0] ss:$16 sps:$4 sm:$0xff]   ;;  %v6145_v42 = vld [vmem:[#allocation5 + $0xa4] ss:$16 sps:$4 sm:$0xff]   ;;  %s5308_s9 = sshll.u32 (%p3340_p13), %s6553_s14, 4  ;;  %s5309_s9 = int_to_ptr.vmem [resolvable:$true] %s5308_s9 }
 0x63a   : > { %3569 = vmatprep.subr.bf16.mxu0 %v6117_v1  ;;  %3682 = vmatprep.subr.bf16.mxu1 %v6119_v35  ;;  %v6148_v18 = vld [vmem:[#allocation5 + $0x2a4] ss:$16 sps:$4 sm:$0xff]   ;;  %v6146_v0 = vld [vmem:[#allocation5 + $0x2a0] ss:$16 sps:$4 sm:$0xff]   ;;  %s6483_s5 = scalar_lea.vmem (%p3340_p13), %s5309_s9, 128  ;;  %p6488_p1 = scmp.lt.s32.totalorder (%p3340_p13), %s5309_s9, %s5309_s9 }
 0x63b   : > { %v6151_v32 = vld [vmem:[#allocation5 + $0x84] ss:$16 sps:$4 sm:$0xff]   ;;  %v6149_v27 = vld [vmem:[#allocation5 + $0x80] ss:$16 sps:$4 sm:$0xff]   ;;  %p6484_p0 = scmp.ne.s32.totalorder (%p3340_p13), %s5309_s9, %s6483_s5  ;;  %p6489_p2 = scmp.lt.s32.totalorder (%p3340_p13), %s6483_s5, %s6483_s5 }
 0x63c   : > { %v6154_v15 = vld [vmem:[#allocation5 + $0x284] ss:$16 sps:$4 sm:$0xff]   ;;  %v6152_v52 = vld [vmem:[#allocation5 + $0x280] ss:$16 sps:$4 sm:$0xff]  }
 0x63d   : > { %3570 = vmatpush1.bf16.msra.mxu0 %v6121_v40  ;;  %3683 = vmatpush1.bf16.msra.mxu1 %v6122_v11  ;;  %v6155_v34 = vld [vmem:[#allocation5 + $0x60] ss:$16 sps:$4 sm:$0xff]   ;;  %v6157_v26 = vld [vmem:[#allocation5 + $0x64] ss:$16 sps:$4 sm:$0xff]   ;;  %p6490_p3 = por (%p3340_p13), %p6489_p2, %p6488_p1 }
 0x63e   : > { %4667 = vmatprep.subr.bf16.mxu0 %v6133_v12  ;;  %4780 = vmatprep.subr.bf16.mxu1 %v6136_v43  ;;  %v6160_v51 = vld [vmem:[#allocation5 + $0x264] ss:$16 sps:$4 sm:$0xff]   ;;  %v6158_v17 = vld [vmem:[#allocation5 + $0x260] ss:$16 sps:$4 sm:$0xff]  }
 0x63f   : > { %v6163_v61 = vld [vmem:[#allocation5 + $0x44] ss:$16 sps:$4 sm:$0xff]   ;;  %v6161_v20 = vld [vmem:[#allocation5 + $0x40] ss:$16 sps:$4 sm:$0xff]   ;;  %p6491_p4 = pnand (%p3340_p13), %p6490_p3, %p6484_p0 }
 0x640   : > { %5610 = vmatmul.mubr.msk.bf16.vlgmr.msra.gmra.mxu0 %vm682_vm2, %v6123_v49  ;;  %5618 = vmatmul.mubr.msk.bf16.vlgmr.msra.gmra.mxu1 %vm682_vm2, %v6123_v49  ;;  %v6166_v47 = vld [vmem:[#allocation5 + $0x244] ss:$16 sps:$4 sm:$0xff]   ;;  %v6164_v46 = vld [vmem:[#allocation5 + $0x240] ss:$16 sps:$4 sm:$0xff]  }
 0x641   : > { %3597 = vmatprep.mubr.bf16.mxu0 %v6552_v2  ;;  %3710 = vmatprep.mubr.bf16.mxu1 %v6552_v2  ;;  %v6167_v58 = vld [vmem:[#allocation5 + $0x20] ss:$16 sps:$4 sm:$0xff]   ;;  %v6169_v7 = vld [vmem:[#allocation5 + $0x24] ss:$16 sps:$4 sm:$0xff]  }
 0x642   : > { %4668 = vmatpush1.bf16.msra.mxu0 %v6131_v5  ;;  %4781 = vmatpush1.bf16.msra.mxu1 %v6134_v14  ;;  %v6172_v22 = vld [vmem:[#allocation5 + $0x224] ss:$16 sps:$4 sm:$0xff]   ;;  %v6170_v9 = vld [vmem:[#allocation5 + $0x220] ss:$16 sps:$4 sm:$0xff]  }
 0x643   : > { %4669 = vmatprep.subr.bf16.mxu0 %v6139_v38  ;;  %4782 = vmatprep.subr.bf16.mxu1 %v6142_v62  ;;  %v6175_v19 = vld [vmem:[#allocation5 + $0x4] ss:$16 sps:$4 sm:$0xff]   ;;  %v6173_v53 = vld [vmem:[#allocation5] ss:$16 sps:$4 sm:$0xff]  }
 0x644   : > { %v6178_v37 = vld [vmem:[#allocation5 + $0x204] ss:$16 sps:$4 sm:$0xff]   ;;  %v6127_v13 = vld [vmem:[%s9097_s0 + $0x20] sm:$0xff]   ;;  %v6129_v50 = vld [vmem:[%s9097_s0 + $0x30] sm:$0xff]  }
 0x645   : > { %v6176_v44 = vld [vmem:[#allocation5 + $0x200] ss:$16 sps:$4 sm:$0xff]   ;;  %v6181_v21 = vld [vmem:[#allocation5 + $0x1e4] ss:$16 sps:$4 sm:$0xff]  }
 0x646   : > { %4670 = vmatpush1.bf16.msra.mxu0 %v6137_v30  ;;  %4783 = vmatpush1.bf16.msra.mxu1 %v6140_v48  ;;  %v6179_v57 = vld [vmem:[#allocation5 + $0x1e0] ss:$16 sps:$4 sm:$0xff]   ;;  %v6184_v16 = vld [vmem:[#allocation5 + $0x3e4] ss:$16 sps:$4 sm:$0xff]  }
 0x647   : > { %4671 = vmatprep.subr.bf16.mxu0 %v6145_v42  ;;  %4784 = vmatprep.subr.bf16.mxu1 %v6148_v18  ;;  %v6182_v45 = vld [vmem:[#allocation5 + $0x3e0] ss:$16 sps:$4 sm:$0xff]   ;;  %v6187_v56 = vld [vmem:[#allocation5 + $0x1c4] ss:$16 sps:$4 sm:$0xff]   ;;  %v6229_v42 = vld [vmem:[#allocation5 + $0xec] ss:$16 sps:$4 sm:$0xff]  }
 0x648   : > { %5611 = vmatmul.mubr.msk.bf16.gmra.mxu0 %vm682_vm2, %v6124_v4  ;;  %5619 = vmatmul.mubr.msk.bf16.gmra.mxu1 %vm682_vm2, %v6124_v4  ;;  %v6185_v31 = vld [vmem:[#allocation5 + $0x1c0] ss:$16 sps:$4 sm:$0xff]   ;;  %v6190_v29 = vld [vmem:[#allocation5 + $0x3c4] ss:$16 sps:$4 sm:$0xff]   ;;  %v6232_v18 = vld [vmem:[#allocation5 + $0x2ec] ss:$16 sps:$4 sm:$0xff]  }
 0x649   : > { %3607 = vmatprep.mubr.bf16.mxu0 %v6552_v2  ;;  %3720 = vmatprep.mubr.bf16.mxu1 %v6552_v2  ;;  %v6128_v8 = vld [vmem:[%s9097_s0 + $0x28] sm:$0xff]   ;;  %v6188_v23 = vld [vmem:[#allocation5 + $0x3c0] ss:$16 sps:$4 sm:$0xff]   ;;  %v6130_v11 = vld [vmem:[%s9097_s0 + $0x38] sm:$0xff]  }
 0x64a   : > { %4672 = vmatpush1.bf16.msra.mxu0 %v6143_v55  ;;  %4785 = vmatpush1.bf16.msra.mxu1 %v6146_v0  ;;  %v6193_v41 = vld [vmem:[#allocation5 + $0x1a4] ss:$16 sps:$4 sm:$0xff]   ;;  %v6191_v25 = vld [vmem:[#allocation5 + $0x1a0] ss:$16 sps:$4 sm:$0xff]  }
 0x64b   : > { %4673 = vmatprep.subr.bf16.mxu0 %v6151_v32  ;;  %4786 = vmatprep.subr.bf16.mxu1 %v6154_v15  ;;  %v6196_v60 = vld [vmem:[#allocation5 + $0x3a4] ss:$16 sps:$4 sm:$0xff]   ;;  %v6194_v39 = vld [vmem:[#allocation5 + $0x3a0] ss:$16 sps:$4 sm:$0xff]  }
 0x64c   : > { %v6199_v33 = vld [vmem:[#allocation5 + $0x184] ss:$16 sps:$4 sm:$0xff]   ;;  %v6197_v28 = vld [vmem:[#allocation5 + $0x180] ss:$16 sps:$4 sm:$0xff]  }
 0x64d   : > { %v6202_v6 = vld [vmem:[#allocation5 + $0x384] ss:$16 sps:$4 sm:$0xff]   ;;  %v6200_v3 = vld [vmem:[#allocation5 + $0x380] ss:$16 sps:$4 sm:$0xff]  }
 0x64e   : > { %4674 = vmatpush1.bf16.msra.mxu0 %v6149_v27  ;;  %4787 = vmatpush1.bf16.msra.mxu1 %v6152_v52  ;;  %v6205_v63 = vld [vmem:[#allocation5 + $0x164] ss:$16 sps:$4 sm:$0xff]   ;;  %v6203_v1 = vld [vmem:[#allocation5 + $0x160] ss:$16 sps:$4 sm:$0xff]  }
 0x64f   : > { %4675 = vmatprep.subr.bf16.mxu0 %v6157_v26  ;;  %4788 = vmatprep.subr.bf16.mxu1 %v6160_v51  ;;  %v6208_v35 = vld [vmem:[#allocation5 + $0x364] ss:$16 sps:$4 sm:$0xff]   ;;  %v6206_v40 = vld [vmem:[#allocation5 + $0x360] ss:$16 sps:$4 sm:$0xff]  }
 0x650   : > { %5612 = vmatmul.mubr.msk.bf16.gmra.mxu0 %vm682_vm2, %v6125_v24  ;;  %5620 = vmatmul.mubr.msk.bf16.gmra.mxu1 %vm682_vm2, %v6125_v24  ;;  %v6211_v49 = vld [vmem:[#allocation5 + $0x144] ss:$16 sps:$4 sm:$0xff]   ;;  %v6209_v12 = vld [vmem:[#allocation5 + $0x140] ss:$16 sps:$4 sm:$0xff]  }
 0x651   : > { %3617 = vmatprep.mubr.bf16.mxu0 %v6552_v2  ;;  %3730 = vmatprep.mubr.bf16.mxu1 %v6552_v2  ;;  %v6214_v5 = vld [vmem:[#allocation5 + $0x344] ss:$16 sps:$4 sm:$0xff]   ;;  %v6212_v14 = vld [vmem:[#allocation5 + $0x340] ss:$16 sps:$4 sm:$0xff]  }
 0x652   : > { %4676 = vmatpush1.bf16.msra.mxu0 %v6155_v34  ;;  %4789 = vmatpush1.bf16.msra.mxu1 %v6158_v17  ;;  %v6217_v43 = vld [vmem:[#allocation5 + $0x124] ss:$16 sps:$4 sm:$0xff]   ;;  %v6215_v30 = vld [vmem:[#allocation5 + $0x120] ss:$16 sps:$4 sm:$0xff]  }
 0x653   : > { %4677 = vmatprep.subr.bf16.mxu0 %v6163_v61  ;;  %4790 = vmatprep.subr.bf16.mxu1 %v6166_v47  ;;  %v6218_v38 = vld [vmem:[#allocation5 + $0x320] ss:$16 sps:$4 sm:$0xff]   ;;  %v6223_v4 = vld [vmem:[#allocation5 + $0x104] ss:$16 sps:$4 sm:$0xff]  }
 0x654   : > { %v6226_v62 = vld [vmem:[#allocation5 + $0x304] ss:$16 sps:$4 sm:$0xff]   ;;  %v6221_v48 = vld [vmem:[#allocation5 + $0x100] ss:$16 sps:$4 sm:$0xff]  }
 0x655   : > { %v6224_v55 = vld [vmem:[#allocation5 + $0x300] ss:$16 sps:$4 sm:$0xff]  }
 0x656   : > { %4678 = vmatpush1.bf16.msra.mxu0 %v6161_v20  ;;  %4791 = vmatpush1.bf16.msra.mxu1 %v6164_v46  ;;  %v3389_v32 = vld [vmem:[%s3388_s1] ss:$2 sm:$0xf]  ;;  %v9671_v15 = vld [vmem:[#allocation45_spill] sm:$0xff]  ;;  %v9672_v34 = vld [vmem:[#allocation44_spill] sm:$0xff] }
 0x657   : > { %4679 = vmatprep.subr.bf16.mxu0 %v6169_v7  ;;  %4792 = vmatprep.subr.bf16.mxu1 %v6172_v22  ;;  %v9143_v24 = vrot.slane %v3389_v32, %v9671_v15  ;;  %v9146_v52 = vrot.slane %v3389_v32, %v9084_v36  ;;  %v9149_v26 = vrot.slane %v3389_v32, %v9672_v34 }
 0x658   : > { %5613 = vmatmul.mubr.msk.bf16.gmra.mxu0 %vm682_vm2, %v6126_v59  ;;  %5621 = vmatmul.mubr.msk.bf16.gmra.mxu1 %vm682_vm2, %v6126_v59  ;;  %v9152_v51 = vrot.slane %v3389_v32, %v9081_v54  ;;  %v6241_v32 = vld [vmem:[#allocation5 + $0xac] ss:$16 sps:$4 sm:$0xff]  }
 0x659   : > { %3627 = vmatprep.mubr.bf16.mxu0 %v6552_v2  ;;  %3740 = vmatprep.mubr.bf16.mxu1 %v6552_v2 }
 0x65a   : > { %4680 = vmatpush1.bf16.msra.mxu0 %v6167_v58  ;;  %4793 = vmatpush1.bf16.msra.mxu1 %v6170_v9 }
 0x65b   : > { %4681 = vmatprep.subr.bf16.mxu0 %v6175_v19  ;;  %4794 = vmatprep.subr.bf16.mxu1 %v6178_v37 }
 0x65e   : > { %4682 = vmatpush1.bf16.msra.mxu0 %v6173_v53  ;;  %4795 = vmatpush1.bf16.msra.mxu1 %v6176_v44 }
 0x65f   : > { %4683 = vmatprep.subr.bf16.mxu0 %v6181_v21  ;;  %4796 = vmatprep.subr.bf16.mxu1 %v6184_v16 }
 0x660   : > { %5614 = vmatmul.mubr.msk.bf16.gmra.mxu0 %vm682_vm2, %v6127_v13  ;;  %5622 = vmatmul.mubr.msk.bf16.gmra.mxu1 %vm682_vm2, %v6127_v13 }
 0x661   : > { %3637 = vmatprep.mubr.bf16.mxu0 %v6552_v2  ;;  %3750 = vmatprep.mubr.bf16.mxu1 %v6552_v2 }
 0x662   : > { %4684 = vmatpush2.bf16.msra.mxu0 %v6179_v57  ;;  %4797 = vmatpush2.bf16.msra.mxu1 %v6182_v45 }
 0x663   : > { %4685 = vmatprep.subr.bf16.mxu0 %v6187_v56  ;;  %4798 = vmatprep.subr.bf16.mxu1 %v6190_v29 }
 0x666   : > { %4686 = vmatpush2.bf16.msra.mxu0 %v6185_v31  ;;  %4799 = vmatpush2.bf16.msra.mxu1 %v6188_v23 }
 0x667   : > { %4687 = vmatprep.subr.bf16.mxu0 %v6193_v41  ;;  %4800 = vmatprep.subr.bf16.mxu1 %v6196_v60 }
 0x668   : > { %5615 = vmatmul.mubr.msk.bf16.gmra.mxu0 %vm682_vm2, %v6128_v8  ;;  %5623 = vmatmul.mubr.msk.bf16.gmra.mxu1 %vm682_vm2, %v6128_v8 }
 0x669   : > { %3647 = vmatprep.mubr.bf16.mxu0 %v6552_v2  ;;  %3760 = vmatprep.mubr.bf16.mxu1 %v6552_v2 }
 0x66a   : > { %4688 = vmatpush2.bf16.msra.mxu0 %v6191_v25  ;;  %4801 = vmatpush2.bf16.msra.mxu1 %v6194_v39  ;;  %v6227_v39 = vld [vmem:[#allocation5 + $0xe8] ss:$16 sps:$4 sm:$0xff]  }
 0x66b   : > { %4689 = vmatprep.subr.bf16.mxu0 %v6199_v33  ;;  %4802 = vmatprep.subr.bf16.mxu1 %v6202_v6 }
 0x66e   : > { %4690 = vmatpush2.bf16.msra.mxu0 %v6197_v28  ;;  %4803 = vmatpush2.bf16.msra.mxu1 %v6200_v3  ;;  %v6230_v28 = vld [vmem:[#allocation5 + $0x2e8] ss:$16 sps:$4 sm:$0xff]  }
 0x66f   : > { %4691 = vmatprep.subr.bf16.mxu0 %v6205_v63  ;;  %4804 = vmatprep.subr.bf16.mxu1 %v6208_v35  ;;  %v6235_v35 = vld [vmem:[#allocation5 + $0xcc] ss:$16 sps:$4 sm:$0xff]  }
 0x670   : > { %5616 = vmatmul.mubr.msk.bf16.gmra.mxu0 %vm682_vm2, %v6129_v50  ;;  %5624 = vmatmul.mubr.msk.bf16.gmra.mxu1 %vm682_vm2, %v6129_v50 }
 0x671   : > { %3657 = vmatprep.mubr.bf16.mxu0 %v6552_v2  ;;  %3770 = vmatprep.mubr.bf16.mxu1 %v6552_v2  ;;  %v6220_v2 = vld [vmem:[#allocation5 + $0x324] ss:$16 sps:$4 sm:$0xff]  }
 0x672   : > { %4692 = vmatpush2.bf16.msra.mxu0 %v6203_v1  ;;  %4805 = vmatpush2.bf16.msra.mxu1 %v6206_v40  ;;  %v6238_v40 = vld [vmem:[#allocation5 + $0x2cc] ss:$16 sps:$4 sm:$0xff]  }
 0x673   : > { %4693 = vmatprep.subr.bf16.mxu0 %v6211_v49  ;;  %4806 = vmatprep.subr.bf16.mxu1 %v6214_v5 }
 0x676   : > { %4694 = vmatpush2.bf16.msra.mxu0 %v6209_v12  ;;  %4807 = vmatpush2.bf16.msra.mxu1 %v6212_v14 }
 0x677   : > { %4695 = vmatprep.subr.bf16.mxu0 %v6217_v43  ;;  %4808 = vmatprep.subr.bf16.mxu1 %v6220_v2 }
 0x678   : > { %5617 = vmatmul.mubr.msk.bf16.gmra.mxu0 %vm682_vm2, %v6130_v11  ;;  %5625 = vmatmul.mubr.msk.bf16.gmra.mxu1 %vm682_vm2, %v6130_v11 }
 0x67a   : > { %4696 = vmatpush2.bf16.msra.mxu0 %v6215_v30  ;;  %4809 = vmatpush2.bf16.msra.mxu1 %v6218_v38 }
 0x67b   : > { %4697 = vmatprep.subr.bf16.mxu0 %v6223_v4  ;;  %4810 = vmatprep.subr.bf16.mxu1 %v6226_v62  ;;  %v6233_v4 = vld [vmem:[#allocation5 + $0xc8] ss:$16 sps:$4 sm:$0xff]  }
 0x67e   : > { %4698 = vmatpush2.bf16.msra.mxu0 %v6221_v48  ;;  %4811 = vmatpush2.bf16.msra.mxu1 %v6224_v55 }
 0x67f   : > { %4893 = vmatprep.subr.bf16.mxu0 %v6229_v42  ;;  %5006 = vmatprep.subr.bf16.mxu1 %v6232_v18  ;;  %v6236_v18 = vld [vmem:[#allocation5 + $0x2c8] ss:$16 sps:$4 sm:$0xff]  }
 0x700   : > { %v3589_v0 = vpop.f32.mrf.mxu0  ;;  %v3702_v27 = vpop.f32.mrf.mxu1 }
 0x701   : > { %v3590_v22 = vadd.f32 %v3589_v0, %v9149_v26  ;;  %v3703_v19 = vadd.f32 %v3702_v27, %v9152_v51 }
 0x702   : > { %v3591_v61 = vpop.f32.mrf.mxu0  ;;  %v3704_v17 = vpop.f32.mrf.mxu1 }
 0x703   : > { %v3592_v59 = vadd.f32 %v3591_v61, %v9143_v24  ;;  %v3705_v46 = vadd.f32 %v3704_v17, %v9146_v52  ;;  %v3781_v8 = vmax.f32 %v3590_v22, 0.0  ;;  %v3783_v23 = vmax.f32 %v3703_v19, 0.0  ;;  %v6239_v22 = vld [vmem:[#allocation5 + $0xa8] ss:$16 sps:$4 sm:$0xff]   ;;  %v6244_v19 = vld [vmem:[#allocation5 + $0x2ac] ss:$16 sps:$4 sm:$0xff]  }
 0x704   : > { %v3593_v20 = vpop.f32.mrf.mxu0  ;;  %v3706_v47 = vpop.f32.mrf.mxu1 }
 0x705   : > { %v3594_v58 = vadd.f32 %v3593_v20, %v9149_v26  ;;  %v3707_v7 = vadd.f32 %v3706_v47, %v9152_v51  ;;  %v3782_v45 = vmax.f32 %v3592_v59, 0.0  ;;  %v3784_v56 = vmax.f32 %v3705_v46, 0.0 }
 0x706   : > { %v3595_v9 = vpop.f32.mrf.mxu0  ;;  %v3708_v53 = vpop.f32.mrf.mxu1 }
 0x707   : > { %v3596_v37 = vadd.f32 %v3595_v9, %v9143_v24  ;;  %v3709_v13 = vadd.f32 %v3708_v53, %v9146_v52  ;;  %v3785_v44 = vmax.f32 %v3594_v58, 0.0  ;;  %v3787_v57 = vmax.f32 %v3707_v7, 0.0 }
 0x708   : > { %v3599_v21 = vpop.f32.mrf.mxu0  ;;  %v3712_v16 = vpop.f32.mrf.mxu1 }
 0x709   : > { %v3786_v31 = vmax.f32 %v3596_v37, 0.0  ;;  %v3788_v29 = vmax.f32 %v3709_v13, 0.0  ;;  %v9166_v6 = vpack.c.bf16 %v3785_v44, %v3781_v8  ;;  %v9168_v50 = vpack.c.bf16 %v3787_v57, %v3783_v23  ;;  %v6242_v57 = vld [vmem:[#allocation5 + $0x2a8] ss:$16 sps:$4 sm:$0xff]  }
 0x70a   : > { %v3601_v41 = vpop.f32.mrf.mxu0  ;;  %v3714_v25 = vpop.f32.mrf.mxu1  ;;  %v3600_v12 = vadd.f32 %v3599_v21, %v9149_v26  ;;  %v3713_v14 = vadd.f32 %v3712_v16, %v9152_v51  ;;  %v6247_v21 = vld [vmem:[#allocation5 + $0x8c] ss:$16 sps:$4 sm:$0xff]  }
 0x70b   : > { %v9162_v60 = vpack.c.bf16 %v3786_v31, %v3782_v45  ;;  %v9164_v33 = vpack.c.bf16 %v3788_v29, %v3784_v56  ;;  %v3602_v3 = vadd.f32 %v3601_v41, %v9143_v24  ;;  %v3715_v11 = vadd.f32 %v3714_v25, %v9146_v52  ;;  %v6250_v31 = vld [vmem:[#allocation5 + $0x28c] ss:$16 sps:$4 sm:$0xff]  }
 0x70c   : > { %v3603_v63 = vpop.f32.mrf.mxu0  ;;  %v3716_v1 = vpop.f32.mrf.mxu1  ;;  %v3789_v20 = vmax.f32 %v3600_v12, 0.0  ;;  %v3791_v47 = vmax.f32 %v3713_v14, 0.0 }
 0x70d   : > { %v3604_v49 = vadd.f32 %v3603_v63, %v9149_v26  ;;  %v3717_v5 = vadd.f32 %v3716_v1, %v9152_v51  ;;  %4699 = vmatprep.mubr.bf16.mxu0 %v9162_v60  ;;  %4812 = vmatprep.mubr.bf16.mxu1 %v9164_v33  ;;  %v3790_v0 = vmax.f32 %v3602_v3, 0.0  ;;  %v3792_v27 = vmax.f32 %v3715_v11, 0.0  ;;  %v6253_v11 = vld [vmem:[#allocation5 + $0x6c] ss:$16 sps:$4 sm:$0xff]  }
 0x70e   : > { %v3605_v43 = vpop.f32.mrf.mxu0  ;;  %v3718_v2 = vpop.f32.mrf.mxu1  ;;  %4700 = vmatmul.mubr.bf16.vlgmr.msra.gmra.mxu0 %v9166_v6  ;;  %4813 = vmatmul.mubr.bf16.vlgmr.msra.gmra.mxu1 %v9168_v50 }
 0x70f   : > { %v3606_v30 = vadd.f32 %v3605_v43, %v9143_v24  ;;  %v3719_v38 = vadd.f32 %v3718_v2, %v9146_v52  ;;  %4894 = vmatpush1.bf16.msra.mxu0 %v6227_v39  ;;  %5007 = vmatpush1.bf16.msra.mxu1 %v6230_v28  ;;  %v3793_v62 = vmax.f32 %v3604_v49, 0.0  ;;  %v3795_v48 = vmax.f32 %v3717_v5, 0.0  ;;  %v6245_v28 = vld [vmem:[#allocation5 + $0x88] ss:$16 sps:$4 sm:$0xff]  }
 0x710   : > { %v3609_v55 = vpop.f32.mrf.mxu0  ;;  %v3722_v42 = vpop.f32.mrf.mxu1  ;;  %4895 = vmatprep.subr.bf16.mxu0 %v6235_v35  ;;  %5008 = vmatprep.subr.bf16.mxu1 %v6238_v40  ;;  %v6248_v40 = vld [vmem:[#allocation5 + $0x288] ss:$16 sps:$4 sm:$0xff]  }
 0x711   : > { %v3794_v61 = vmax.f32 %v3606_v30, 0.0  ;;  %v3796_v17 = vmax.f32 %v3719_v38, 0.0  ;;  %v9186_v9 = vpack.c.bf16 %v3793_v62, %v3789_v20  ;;  %v9188_v53 = vpack.c.bf16 %v3795_v48, %v3791_v47  ;;  %v6251_v48 = vld [vmem:[#allocation5 + $0x68] ss:$16 sps:$4 sm:$0xff]  }
 0x712   : > { %v3611_v59 = vpop.f32.mrf.mxu0  ;;  %v3724_v46 = vpop.f32.mrf.mxu1  ;;  %v3610_v29 = vadd.f32 %v3609_v55, %v9149_v26  ;;  %v3723_v8 = vadd.f32 %v3722_v42, %v9152_v51  ;;  %v6256_v55 = vld [vmem:[#allocation5 + $0x26c] ss:$16 sps:$4 sm:$0xff]  }
 0x713   : > { %v9182_v58 = vpack.c.bf16 %v3794_v61, %v3790_v0  ;;  %v9184_v7 = vpack.c.bf16 %v3796_v17, %v3792_v27  ;;  %4896 = vmatpush1.bf16.msra.mxu0 %v6233_v4  ;;  %v3612_v37 = vadd.f32 %v3611_v59, %v9143_v24  ;;  %5009 = vmatpush1.bf16.msra.mxu1 %v6236_v18  ;;  %v6254_v61 = vld [vmem:[#allocation5 + $0x268] ss:$16 sps:$4 sm:$0xff]   ;;  %v6259_v17 = vld [vmem:[#allocation5 + $0x4c] ss:$16 sps:$4 sm:$0xff]  }
 0x714   : > { %v3613_v13 = vpop.f32.mrf.mxu0  ;;  %v3726_v44 = vpop.f32.mrf.mxu1  ;;  %4897 = vmatprep.subr.bf16.mxu0 %v6241_v32  ;;  %v3725_v16 = vadd.f32 %v3724_v46, %v9146_v52  ;;  %5010 = vmatprep.subr.bf16.mxu1 %v6244_v19  ;;  %v3797_v43 = vmax.f32 %v3610_v29, 0.0  ;;  %v3799_v2 = vmax.f32 %v3723_v8, 0.0  ;;  %v6262_v46 = vld [vmem:[#allocation5 + $0x24c] ss:$16 sps:$4 sm:$0xff]   ;;  %v6260_v29 = vld [vmem:[#allocation5 + $0x248] ss:$16 sps:$4 sm:$0xff]  }
 0x715   : > { %v3614_v45 = vadd.f32 %v3613_v13, %v9149_v26  ;;  %v3727_v56 = vadd.f32 %v3726_v44, %v9152_v51  ;;  %4709 = vmatprep.mubr.bf16.mxu0 %v9182_v58  ;;  %4822 = vmatprep.mubr.bf16.mxu1 %v9184_v7  ;;  %v3798_v49 = vmax.f32 %v3612_v37, 0.0  ;;  %v6265_v8 = vld [vmem:[#allocation5 + $0x2c] ss:$16 sps:$4 sm:$0xff]  }
 0x716   : > { %v3615_v23 = vpop.f32.mrf.mxu0  ;;  %v3728_v41 = vpop.f32.mrf.mxu1  ;;  %4710 = vmatmul.mubr.bf16.gmra.mxu0 %v9186_v9  ;;  %4823 = vmatmul.mubr.bf16.gmra.mxu1 %v9188_v53  ;;  %v3800_v5 = vmax.f32 %v3725_v16, 0.0 }
 0x717   : > { %v3616_v25 = vadd.f32 %v3615_v23, %v9143_v24  ;;  %v3729_v39 = vadd.f32 %v3728_v41, %v9146_v52  ;;  %4898 = vmatpush1.bf16.msra.mxu0 %v6239_v22  ;;  %v3801_v3 = vmax.f32 %v3614_v45, 0.0  ;;  %v3803_v63 = vmax.f32 %v3727_v56, 0.0  ;;  %5011 = vmatpush1.bf16.msra.mxu1 %v6242_v57 }
 0x718   : > { %v3619_v1 = vpop.f32.mrf.mxu0  ;;  %v3732_v35 = vpop.f32.mrf.mxu1  ;;  %4899 = vmatprep.subr.bf16.mxu0 %v6247_v21  ;;  %5012 = vmatprep.subr.bf16.mxu1 %v6250_v31  ;;  %v6257_v21 = vld [vmem:[#allocation5 + $0x48] ss:$16 sps:$4 sm:$0xff]  }
 0x719   : > { %v3802_v12 = vmax.f32 %v3616_v25, 0.0  ;;  %v3804_v14 = vmax.f32 %v3729_v39, 0.0  ;;  %v9206_v42 = vpack.c.bf16 %v3801_v3, %v3797_v43  ;;  %v9208_v18 = vpack.c.bf16 %v3803_v63, %v3799_v2 }
 0x71a   : > { %v3621_v30 = vpop.f32.mrf.mxu0  ;;  %v3734_v38 = vpop.f32.mrf.mxu1  ;;  %v3620_v22 = vadd.f32 %v3619_v1, %v9149_v26  ;;  %v3733_v19 = vadd.f32 %v3732_v35, %v9152_v51 }
 0x71b   : > { %v9202_v4 = vpack.c.bf16 %v3802_v12, %v3798_v49  ;;  %v9204_v62 = vpack.c.bf16 %v3804_v14, %v3800_v5  ;;  %4900 = vmatpush1.bf16.msra.mxu0 %v6245_v28  ;;  %v3622_v32 = vadd.f32 %v3621_v30, %v9143_v24  ;;  %5013 = vmatpush1.bf16.msra.mxu1 %v6248_v40  ;;  %v6268_v49 = vld [vmem:[#allocation5 + $0x22c] ss:$16 sps:$4 sm:$0xff]   ;;  %v6266_v30 = vld [vmem:[#allocation5 + $0x228] ss:$16 sps:$4 sm:$0xff]  }
 0x71c   : > { %v3623_v0 = vpop.f32.mrf.mxu0  ;;  %v3736_v27 = vpop.f32.mrf.mxu1  ;;  %4901 = vmatprep.subr.bf16.mxu0 %v6253_v11  ;;  %v3735_v20 = vadd.f32 %v3734_v38, %v9146_v52  ;;  %5014 = vmatprep.subr.bf16.mxu1 %v6256_v55  ;;  %v3805_v28 = vmax.f32 %v3620_v22, 0.0  ;;  %v3807_v3 = vmax.f32 %v3733_v19, 0.0  ;;  %v6263_v11 = vld [vmem:[#allocation5 + $0x28] ss:$16 sps:$4 sm:$0xff]   ;;  %v6271_v38 = vld [vmem:[#allocation5 + $0xc] ss:$16 sps:$4 sm:$0xff]  }
 0x71d   : > { %v3624_v47 = vadd.f32 %v3623_v0, %v9149_v26  ;;  %v3737_v59 = vadd.f32 %v3736_v27, %v9152_v51  ;;  %4719 = vmatprep.mubr.bf16.mxu0 %v9202_v4  ;;  %4832 = vmatprep.mubr.bf16.mxu1 %v9204_v62  ;;  %v3806_v23 = vmax.f32 %v3622_v32, 0.0  ;;  %v6274_v0 = vld [vmem:[#allocation5 + $0x20c] ss:$16 sps:$4 sm:$0xff]  }
 0x71e   : > { %v3625_v37 = vpop.f32.mrf.mxu0  ;;  %v3738_v13 = vpop.f32.mrf.mxu1  ;;  %4720 = vmatmul.mubr.bf16.gmra.mxu0 %v9206_v42  ;;  %4833 = vmatmul.mubr.bf16.gmra.mxu1 %v9208_v18  ;;  %v3808_v41 = vmax.f32 %v3735_v20, 0.0 }
 0x71f   : > { %v3626_v44 = vadd.f32 %v3625_v37, %v9143_v24  ;;  %v3739_v57 = vadd.f32 %v3738_v13, %v9146_v52  ;;  %4902 = vmatpush1.bf16.msra.mxu0 %v6251_v48  ;;  %v3809_v16 = vmax.f32 %v3624_v47, 0.0  ;;  %v3811_v45 = vmax.f32 %v3737_v59, 0.0  ;;  %5015 = vmatpush1.bf16.msra.mxu1 %v6254_v61 }
 0x720   : > { %v3629_v56 = vpop.f32.mrf.mxu0  ;;  %v3742_v31 = vpop.f32.mrf.mxu1  ;;  %4903 = vmatprep.subr.bf16.mxu0 %v6259_v17  ;;  %5016 = vmatprep.subr.bf16.mxu1 %v6262_v46  ;;  %v6269_v46 = vld [vmem:[#allocation5 + $0x8] ss:$16 sps:$4 sm:$0xff]  }
 0x721   : > { %v3810_v25 = vmax.f32 %v3626_v44, 0.0  ;;  %v3812_v39 = vmax.f32 %v3739_v57, 0.0  ;;  %v9226_v5 = vpack.c.bf16 %v3809_v16, %v3805_v28  ;;  %v9228_v12 = vpack.c.bf16 %v3811_v45, %v3807_v3  ;;  %v6272_v44 = vld [vmem:[#allocation5 + $0x208] ss:$16 sps:$4 sm:$0xff]   ;;  %v6277_v57 = vld [vmem:[#allocation5 + $0x1ec] ss:$16 sps:$4 sm:$0xff]  }
 0x722   : > { %v3631_v63 = vpop.f32.mrf.mxu0  ;;  %v3744_v1 = vpop.f32.mrf.mxu1  ;;  %v3630_v27 = vadd.f32 %v3629_v56, %v9149_v26  ;;  %v3743_v61 = vadd.f32 %v3742_v31, %v9152_v51  ;;  %v6280_v28 = vld [vmem:[#allocation5 + $0x3ec] ss:$16 sps:$4 sm:$0xff]  }
 0x723   : > { %v9222_v35 = vpack.c.bf16 %v3810_v25, %v3806_v23  ;;  %v9224_v40 = vpack.c.bf16 %v3812_v39, %v3808_v41  ;;  %4904 = vmatpush1.bf16.msra.mxu0 %v6257_v21  ;;  %v3632_v14 = vadd.f32 %v3631_v63, %v9143_v24  ;;  %5017 = vmatpush1.bf16.msra.mxu1 %v6260_v29  ;;  %v6275_v39 = vld [vmem:[#allocation5 + $0x1e8] ss:$16 sps:$4 sm:$0xff]  }
 0x724   : > { %v3633_v43 = vpop.f32.mrf.mxu0  ;;  %v3746_v2 = vpop.f32.mrf.mxu1  ;;  %4905 = vmatprep.subr.bf16.mxu0 %v6265_v8  ;;  %v3745_v48 = vadd.f32 %v3744_v1, %v9146_v52  ;;  %5018 = vmatprep.subr.bf16.mxu1 %v6268_v49  ;;  %v3813_v31 = vmax.f32 %v3630_v27, 0.0  ;;  %v3815_v29 = vmax.f32 %v3743_v61, 0.0 }
 0x725   : > { %v3634_v55 = vadd.f32 %v3633_v43, %v9149_v26  ;;  %v3747_v32 = vadd.f32 %v3746_v2, %v9152_v51  ;;  %4729 = vmatprep.mubr.bf16.mxu0 %v9222_v35  ;;  %4842 = vmatprep.mubr.bf16.mxu1 %v9224_v40  ;;  %v3814_v21 = vmax.f32 %v3632_v14, 0.0  ;;  %v6278_v14 = vld [vmem:[#allocation5 + $0x3e8] ss:$16 sps:$4 sm:$0xff]   ;;  %v6283_v43 = vld [vmem:[#allocation5 + $0x1cc] ss:$16 sps:$4 sm:$0xff]  }
 0x726   : > { %v3635_v17 = vpop.f32.mrf.mxu0  ;;  %v3748_v20 = vpop.f32.mrf.mxu1  ;;  %4730 = vmatmul.mubr.bf16.gmra.mxu0 %v9226_v5  ;;  %4843 = vmatmul.mubr.bf16.gmra.mxu1 %v9228_v12  ;;  %v3816_v16 = vmax.f32 %v3745_v48, 0.0  ;;  %v6286_v48 = vld [vmem:[#allocation5 + $0x3cc] ss:$16 sps:$4 sm:$0xff]  }
 0x727   : > { %v3636_v47 = vadd.f32 %v3635_v17, %v9143_v24  ;;  %v3749_v59 = vadd.f32 %v3748_v20, %v9146_v52  ;;  %4906 = vmatpush1.bf16.msra.mxu0 %v6263_v11  ;;  %v3817_v22 = vmax.f32 %v3634_v55, 0.0  ;;  %v3819_v19 = vmax.f32 %v3747_v32, 0.0  ;;  %5019 = vmatpush1.bf16.msra.mxu1 %v6266_v30  ;;  %v6281_v20 = vld [vmem:[#allocation5 + $0x1c8] ss:$16 sps:$4 sm:$0xff]  }
 0x728   : > { %v3639_v37 = vpop.f32.mrf.mxu0  ;;  %v3752_v13 = vpop.f32.mrf.mxu1  ;;  %4907 = vmatprep.subr.bf16.mxu0 %v6271_v38  ;;  %5020 = vmatprep.subr.bf16.mxu1 %v6274_v0 }
 0x729   : > { %v3818_v45 = vmax.f32 %v3636_v47, 0.0  ;;  %v3820_v56 = vmax.f32 %v3749_v59, 0.0  ;;  %v9246_v3 = vpack.c.bf16 %v3817_v22, %v3813_v31  ;;  %v9248_v63 = vpack.c.bf16 %v3819_v19, %v3815_v29  ;;  %v6284_v19 = vld [vmem:[#allocation5 + $0x3c8] ss:$16 sps:$4 sm:$0xff]  }
 0x72a   : > { %v3641_v8 = vpop.f32.mrf.mxu0  ;;  %v3754_v23 = vpop.f32.mrf.mxu1  ;;  %v3640_v55 = vadd.f32 %v3639_v37, %v9149_v26  ;;  %v3753_v32 = vadd.f32 %v3752_v13, %v9152_v51  ;;  %v6289_v37 = vld [vmem:[#allocation5 + $0x1ac] ss:$16 sps:$4 sm:$0xff]  }
 0x72b   : > { %v9242_v41 = vpack.c.bf16 %v3818_v45, %v3814_v21  ;;  %v9244_v25 = vpack.c.bf16 %v3820_v56, %v3816_v16  ;;  %4908 = vmatpush1.bf16.msra.mxu0 %v6269_v46  ;;  %v3642_v1 = vadd.f32 %v3641_v8, %v9143_v24  ;;  %5021 = vmatpush1.bf16.msra.mxu1 %v6272_v44 }
 0x72c   : > { %v3643_v11 = vpop.f32.mrf.mxu0  ;;  %v3756_v49 = vpop.f32.mrf.mxu1  ;;  %4909 = vmatprep.subr.bf16.mxu0 %v6277_v57  ;;  %v3755_v2 = vadd.f32 %v3754_v23, %v9146_v52  ;;  %5022 = vmatprep.subr.bf16.mxu1 %v6280_v28  ;;  %v3821_v16 = vmax.f32 %v3640_v55, 0.0  ;;  %v3823_v45 = vmax.f32 %v3753_v32, 0.0  ;;  %v6287_v23 = vld [vmem:[#allocation5 + $0x1a8] ss:$16 sps:$4 sm:$0xff]   ;;  %v6298_v55 = vld [vmem:[#allocation5 + $0x38c] ss:$16 sps:$4 sm:$0xff]  }
 0x72d   : > { %v3644_v30 = vadd.f32 %v3643_v11, %v9149_v26  ;;  %v3757_v38 = vadd.f32 %v3756_v49, %v9152_v51  ;;  %4739 = vmatprep.mubr.bf16.mxu0 %v9242_v41  ;;  %4852 = vmatprep.mubr.bf16.mxu1 %v9244_v25  ;;  %v3822_v13 = vmax.f32 %v3642_v1, 0.0 }
 0x72e   : > { %v3645_v0 = vpop.f32.mrf.mxu0  ;;  %v3758_v27 = vpop.f32.mrf.mxu1  ;;  %4740 = vmatmul.mubr.bf16.gmra.mxu0 %v9246_v3  ;;  %4853 = vmatmul.mubr.bf16.gmra.mxu1 %v9248_v63  ;;  %v3824_v44 = vmax.f32 %v3755_v2, 0.0  ;;  %v6295_v2 = vld [vmem:[#allocation5 + $0x18c] ss:$16 sps:$4 sm:$0xff]  }
 0x72f   : > { %v3646_v61 = vadd.f32 %v3645_v0, %v9143_v24  ;;  %v3759_v17 = vadd.f32 %v3758_v27, %v9146_v52  ;;  %4910 = vmatpush2.bf16.msra.mxu0 %v6275_v39  ;;  %v3825_v47 = vmax.f32 %v3644_v30, 0.0  ;;  %v3827_v59 = vmax.f32 %v3757_v38, 0.0  ;;  %5023 = vmatpush2.bf16.msra.mxu1 %v6278_v14  ;;  %v6292_v39 = vld [vmem:[#allocation5 + $0x3ac] ss:$16 sps:$4 sm:$0xff]  }
 0x730   : > { %v3649_v46 = vpop.f32.mrf.mxu0  ;;  %v3762_v22 = vpop.f32.mrf.mxu1  ;;  %4911 = vmatprep.subr.bf16.mxu0 %v6283_v43  ;;  %5024 = vmatprep.subr.bf16.mxu1 %v6286_v48  ;;  %v6290_v43 = vld [vmem:[#allocation5 + $0x3a8] ss:$16 sps:$4 sm:$0xff]  }
 0x731   : > { %v3826_v57 = vmax.f32 %v3646_v61, 0.0  ;;  %v3828_v21 = vmax.f32 %v3759_v17, 0.0  ;;  %v9266_v28 = vpack.c.bf16 %v3825_v47, %v3821_v16  ;;  %v9268_v11 = vpack.c.bf16 %v3827_v59, %v3823_v45  ;;  %v6293_v47 = vld [vmem:[#allocation5 + $0x188] ss:$16 sps:$4 sm:$0xff]  }
 0x732   : > { %v3651_v56 = vpop.f32.mrf.mxu0  ;;  %v3764_v31 = vpop.f32.mrf.mxu1  ;;  %v3650_v32 = vadd.f32 %v3649_v46, %v9149_v26  ;;  %v3763_v0 = vadd.f32 %v3762_v22, %v9152_v51  ;;  %v6296_v22 = vld [vmem:[#allocation5 + $0x388] ss:$16 sps:$4 sm:$0xff]  }
 0x733   : > { %v9262_v29 = vpack.c.bf16 %v3826_v57, %v3822_v13  ;;  %v9264_v8 = vpack.c.bf16 %v3828_v21, %v3824_v44  ;;  %4912 = vmatpush2.bf16.msra.mxu0 %v6281_v20  ;;  %v3652_v1 = vadd.f32 %v3651_v56, %v9143_v24  ;;  %5025 = vmatpush2.bf16.msra.mxu1 %v6284_v19  ;;  %v6301_v13 = vld [vmem:[#allocation5 + $0x16c] ss:$16 sps:$4 sm:$0xff]  }
 0x734   : > { %v3653_v49 = vpop.f32.mrf.mxu0  ;;  %v3766_v14 = vpop.f32.mrf.mxu1  ;;  %4913 = vmatprep.subr.bf16.mxu0 %v6289_v37  ;;  %v3765_v30 = vadd.f32 %v3764_v31, %v9146_v52  ;;  %5026 = vmatprep.subr.bf16.mxu1 %v6292_v39  ;;  %v3829_v45 = vmax.f32 %v3650_v32, 0.0  ;;  %v3831_v56 = vmax.f32 %v3763_v0, 0.0  ;;  %v6307_v32 = vld [vmem:[#allocation5 + $0x14c] ss:$16 sps:$4 sm:$0xff]  }
 0x735   : > { %v3654_v38 = vadd.f32 %v3653_v49, %v9149_v26  ;;  %v3767_v48 = vadd.f32 %v3766_v14, %v9152_v51  ;;  %4749 = vmatprep.mubr.bf16.mxu0 %v9262_v29  ;;  %4862 = vmatprep.mubr.bf16.mxu1 %v9264_v8  ;;  %v3830_v44 = vmax.f32 %v3652_v1, 0.0  ;;  %v6299_v14 = vld [vmem:[#allocation5 + $0x168] ss:$16 sps:$4 sm:$0xff]  }
 0x736   : > { %v3655_v27 = vpop.f32.mrf.mxu0  ;;  %v3768_v61 = vpop.f32.mrf.mxu1  ;;  %4750 = vmatmul.mubr.bf16.gmra.mxu0 %v9266_v28  ;;  %4863 = vmatmul.mubr.bf16.gmra.mxu1 %v9268_v11  ;;  %v3832_v57 = vmax.f32 %v3765_v30, 0.0 }
 0x737   : > { %v3656_v17 = vadd.f32 %v3655_v27, %v9143_v24  ;;  %v3769_v20 = vadd.f32 %v3768_v61, %v9146_v52  ;;  %4914 = vmatpush2.bf16.msra.mxu0 %v6287_v23  ;;  %v3833_v59 = vmax.f32 %v3654_v38, 0.0  ;;  %v3835_v19 = vmax.f32 %v3767_v48, 0.0  ;;  %5027 = vmatpush2.bf16.msra.mxu1 %v6290_v43  ;;  %v6304_v43 = vld [vmem:[#allocation5 + $0x36c] ss:$16 sps:$4 sm:$0xff]  }
 0x738   : > { %v3659_v37 = vpop.f32.mrf.mxu0  ;;  %v3772_v46 = vpop.f32.mrf.mxu1  ;;  %4915 = vmatprep.subr.bf16.mxu0 %v6295_v2  ;;  %5028 = vmatprep.subr.bf16.mxu1 %v6298_v55  ;;  %v6302_v55 = vld [vmem:[#allocation5 + $0x368] ss:$16 sps:$4 sm:$0xff]  }
 0x739   : > { %v3834_v21 = vmax.f32 %v3656_v17, 0.0  ;;  %v3836_v16 = vmax.f32 %v3769_v20, 0.0  ;;  %v9286_v38 = vpack.c.bf16 %v3833_v59, %v3829_v45  ;;  %v9288_v2 = vpack.c.bf16 %v3835_v19, %v3831_v56  ;;  %v6310_v17 = vld [vmem:[#allocation5 + $0x34c] ss:$16 sps:$4 sm:$0xff]  }
 0x73a   : > { %v3661_v31 = vpop.f32.mrf.mxu0  ;;  %v3774_v49 = vpop.f32.mrf.mxu1  ;;  %v3660_v20 = vadd.f32 %v3659_v37, %v9149_v26  ;;  %v6313_v37 = vld [vmem:[#allocation5 + $0x12c] ss:$16 sps:$4 sm:$0xff]  }
 0x73b   : > { %v9282_v23 = vpack.c.bf16 %v3834_v21, %v3830_v44  ;;  %v9284_v39 = vpack.c.bf16 %v3836_v16, %v3832_v57  ;;  %4916 = vmatpush2.bf16.msra.mxu0 %v6293_v47  ;;  %v3662_v1 = vadd.f32 %v3661_v31, %v9143_v24  ;;  %5029 = vmatpush2.bf16.msra.mxu1 %v6296_v22  ;;  %v6305_v44 = vld [vmem:[#allocation5 + $0x148] ss:$16 sps:$4 sm:$0xff]  }
 0x73c   : > { %v3663_v30 = vpop.f32.mrf.mxu0  ;;  %v3776_v48 = vpop.f32.mrf.mxu1  ;;  %4917 = vmatprep.subr.bf16.mxu0 %v6301_v13  ;;  %v3775_v0 = vadd.f32 %v3774_v49, %v9146_v52  ;;  %v3773_v47 = vadd.f32 %v3772_v46, %v9152_v51  ;;  %5030 = vmatprep.subr.bf16.mxu1 %v6304_v43  ;;  %v3837_v56 = vmax.f32 %v3660_v20, 0.0 }
 0x73d   : > { %v3664_v27 = vadd.f32 %v3663_v30, %v9149_v26  ;;  %v3777_v61 = vadd.f32 %v3776_v48, %v9152_v51  ;;  %4759 = vmatprep.mubr.bf16.mxu0 %v9282_v23  ;;  %4872 = vmatprep.mubr.bf16.mxu1 %v9284_v39  ;;  %v6308_v26 = vld [vmem:[#allocation5 + $0x348] ss:$16 sps:$4 sm:$0xff]   ;;  %v3838_v51 = vmax.f32 %v3662_v1, 0.0  ;;  %v6322_v1 = vld [vmem:[#allocation5 + $0x30c] ss:$16 sps:$4 sm:$0xff]  }
 0x73e   : > { %v3665_v59 = vpop.f32.mrf.mxu0  ;;  %v3778_v19 = vpop.f32.mrf.mxu1  ;;  %4760 = vmatmul.mubr.bf16.gmra.mxu0 %v9286_v38  ;;  %4873 = vmatmul.mubr.bf16.gmra.mxu1 %v9288_v2  ;;  %v3840_v46 = vmax.f32 %v3775_v0, 0.0  ;;  %v3839_v31 = vmax.f32 %v3773_v47, 0.0  ;;  %v6314_v48 = vld [vmem:[#allocation5 + $0x328] ss:$16 sps:$4 sm:$0xff]  }
 0x73f   : > { %v3666_v22 = vadd.f32 %v3665_v59, %v9143_v24  ;;  %v3779_v13 = vadd.f32 %v3778_v19, %v9146_v52  ;;  %4918 = vmatpush2.bf16.msra.mxu0 %v6299_v14  ;;  %v3841_v57 = vmax.f32 %v3664_v27, 0.0  ;;  %v3843_v21 = vmax.f32 %v3777_v61, 0.0  ;;  %5031 = vmatpush2.bf16.msra.mxu1 %v6302_v55  ;;  %v6311_v52 = vld [vmem:[#allocation5 + $0x128] ss:$16 sps:$4 sm:$0xff]   ;;  %v6316_v14 = vld [vmem:[#allocation5 + $0x32c] ss:$16 sps:$4 sm:$0xff]  }
 0x740   : > { %4919 = vmatprep.subr.bf16.mxu0 %v6307_v32  ;;  %5032 = vmatprep.subr.bf16.mxu1 %v6310_v17  ;;  %v6319_v55 = vld [vmem:[#allocation5 + $0x10c] ss:$16 sps:$4 sm:$0xff]   ;;  %v6317_v32 = vld [vmem:[#allocation5 + $0x108] ss:$16 sps:$4 sm:$0xff]  }
 0x741   : > { %v3842_v16 = vmax.f32 %v3666_v22, 0.0  ;;  %v3844_v45 = vmax.f32 %v3779_v13, 0.0  ;;  %v3873_v43 = vpack.c.bf16 %v3841_v57, %v3837_v56  ;;  %v3875_v30 = vpack.c.bf16 %v3843_v21, %v3839_v31  ;;  %v6320_v0 = vld [vmem:[#allocation5 + $0x308] ss:$16 sps:$4 sm:$0xff]  }
 0x743   : > { %v3874_v49 = vpack.c.bf16 %v3842_v16, %v3838_v51  ;;  %v3876_v24 = vpack.c.bf16 %v3844_v45, %v3840_v46  ;;  %4920 = vmatpush2.bf16.msra.mxu0 %v6305_v44  ;;  %5033 = vmatpush2.bf16.msra.mxu1 %v6308_v26 }
 0x744   : > { %4921 = vmatprep.subr.bf16.mxu0 %v6313_v37  ;;  %5034 = vmatprep.subr.bf16.mxu1 %v6316_v14 }
 0x745   : > { %4769 = vmatprep.mubr.bf16.mxu0 %v3874_v49  ;;  %4882 = vmatprep.mubr.bf16.mxu1 %v3876_v24 }
 0x746   : > { %4770 = vmatmul.mubr.bf16.gmra.mxu0 %v3873_v43  ;;  %4883 = vmatmul.mubr.bf16.gmra.mxu1 %v3875_v30 }
 0x747   : > { %4922 = vmatpush2.bf16.msra.mxu0 %v6311_v52  ;;  %4925 = vmatprep.mubr.bf16.mxu0 %v9162_v60  ;;  %v9330_v60 = vld [vmem:[#allocation6] sm:$0xf] }
 0x748   : > { %5035 = vmatpush2.bf16.msra.mxu1 %v6314_v48  ;;  %5038 = vmatprep.mubr.bf16.mxu1 %v9164_v33  ;;  %v9334_v33 = vrot.slane %v9330_v60, %v9672_v34 }
 0x749   : > { %4923 = vmatprep.subr.bf16.mxu0 %v6319_v55  ;;  %5036 = vmatprep.subr.bf16.mxu1 %v6322_v1 }
 0x74b   : > { %4924 = vmatpush2.bf16.msra.mxu0 %v6317_v32 }
 0x74c   : > { %5037 = vmatpush2.bf16.msra.mxu1 %v6320_v0 }
 0x74e   : > { %4926 = vmatmul.mubr.bf16.vlgmr.msra.gmra.mxu0 %v9166_v6  ;;  %v9338_v6 = vrot.slane %v9330_v60, %v9671_v15 }
 0x74f   : > { %5039 = vmatmul.mubr.bf16.vlgmr.msra.gmra.mxu1 %v9168_v50  ;;  %4935 = vmatprep.mubr.bf16.mxu0 %v9182_v58 }
 0x750   : > { %5048 = vmatprep.mubr.bf16.mxu1 %v9184_v7 }
 0x756   : > { %4936 = vmatmul.mubr.bf16.gmra.mxu0 %v9186_v9 }
 0x757   : > { %5049 = vmatmul.mubr.bf16.gmra.mxu1 %v9188_v53  ;;  %4945 = vmatprep.mubr.bf16.mxu0 %v9202_v4 }
 0x758   : > { %5058 = vmatprep.mubr.bf16.mxu1 %v9204_v62 }
 0x75e   : > { %4946 = vmatmul.mubr.bf16.gmra.mxu0 %v9206_v42 }
 0x75f   : > { %5059 = vmatmul.mubr.bf16.gmra.mxu1 %v9208_v18  ;;  %4955 = vmatprep.mubr.bf16.mxu0 %v9222_v35 }
 0x760   : > { %5068 = vmatprep.mubr.bf16.mxu1 %v9224_v40 }
 0x766   : > { %4956 = vmatmul.mubr.bf16.gmra.mxu0 %v9226_v5 }
 0x767   : > { %5069 = vmatmul.mubr.bf16.gmra.mxu1 %v9228_v12  ;;  %4965 = vmatprep.mubr.bf16.mxu0 %v9242_v41 }
 0x768   : > { %5078 = vmatprep.mubr.bf16.mxu1 %v9244_v25 }
 0x76e   : > { %4966 = vmatmul.mubr.bf16.gmra.mxu0 %v9246_v3 }
 0x76f   : > { %5079 = vmatmul.mubr.bf16.gmra.mxu1 %v9248_v63  ;;  %4975 = vmatprep.mubr.bf16.mxu0 %v9262_v29 }
 0x770   : > { %5088 = vmatprep.mubr.bf16.mxu1 %v9264_v8 }
 0x776   : > { %4976 = vmatmul.mubr.bf16.gmra.mxu0 %v9266_v28 }
 0x777   : > { %5089 = vmatmul.mubr.bf16.gmra.mxu1 %v9268_v11  ;;  %4985 = vmatprep.mubr.bf16.mxu0 %v9282_v23 }
 0x778   : > { %5098 = vmatprep.mubr.bf16.mxu1 %v9284_v39 }
 0x77e   : > { %4986 = vmatmul.mubr.bf16.gmra.mxu0 %v9286_v38 }
 0x77f   : > { %5099 = vmatmul.mubr.bf16.gmra.mxu1 %v9288_v2  ;;  %4995 = vmatprep.mubr.bf16.mxu0 %v3874_v49 }
 0x780   : > { %5108 = vmatprep.mubr.bf16.mxu1 %v3876_v24 }
 0x786   : > { %4996 = vmatmul.mubr.bf16.gmra.mxu0 %v3873_v43 }
 0x787   : > { %5109 = vmatmul.mubr.bf16.gmra.mxu1 %v3875_v30 }
 0x7ce   : > { %v4701_v50 = vpop.f32.mrf.mxu0  ;;  %v4814_v58 = vpop.f32.mrf.mxu1 }
 0x7cf   : > { %v4702_v7 = vadd.f32 %v4701_v50, %v9334_v33 }
 0x7d0   : > { %v4703_v9 = vpop.f32.mrf.mxu0  ;;  %v4816_v53 = vpop.f32.mrf.mxu1 }
 0x7d1   : > { %v4815_v4 = vadd.f32 %v4814_v58, %v4702_v7  ;;  %v4704_v62 = vadd.f32 %v4703_v9, %v9338_v6 }
 0x7d2   : > { %v4705_v42 = vpop.f32.mrf.mxu0  ;;  %v4818_v18 = vpop.f32.mrf.mxu1 }
 0x7d3   : > { %v4817_v35 = vadd.f32 %v4816_v53, %v4704_v62  ;;  %v4706_v40 = vadd.f32 %v4705_v42, %v9334_v33  ;;  %v5119_v3 = vmax.f32 %v4815_v4, 0.0 }
 0x7d4   : > { %v4707_v34 = vpop.f32.mrf.mxu0  ;;  %v4820_v5 = vpop.f32.mrf.mxu1 }
 0x7d5   : > { %v4819_v12 = vadd.f32 %v4818_v18, %v4706_v40  ;;  %v4708_v15 = vadd.f32 %v4707_v34, %v9338_v6  ;;  %v5120_v28 = vmax.f32 %v4817_v35, 0.0 }
 0x7d6   : > { %v4711_v41 = vpop.f32.mrf.mxu0  ;;  %v4824_v25 = vpop.f32.mrf.mxu1 }
 0x7d7   : > { %v5123_v63 = vmax.f32 %v4819_v12, 0.0  ;;  %v4821_v29 = vadd.f32 %v4820_v5, %v4708_v15  ;;  %v4712_v8 = vadd.f32 %v4711_v41, %v9334_v33 }
 0x7d8   : > { %v4713_v11 = vpop.f32.mrf.mxu0  ;;  %v4826_v23 = vpop.f32.mrf.mxu1 }
 0x7d9   : > { %v5183_v39 = vmax.f32 %v5119_v3, %v5123_v63  ;;  %v5124_v38 = vmax.f32 %v4821_v29, 0.0  ;;  %v4825_v2 = vadd.f32 %v4824_v25, %v4712_v8  ;;  %v4714_v27 = vadd.f32 %v4713_v11, %v9338_v6 }
 0x7da   : > { %v4715_v61 = vpop.f32.mrf.mxu0  ;;  %v4828_v17 = vpop.f32.mrf.mxu1 }
 0x7db   : > { %v5204_v20 = vmax.f32 %v5120_v28, %v5124_v38  ;;  %v5127_v47 = vmax.f32 %v4825_v2, 0.0  ;;  %v4827_v59 = vadd.f32 %v4826_v23, %v4714_v27  ;;  %v4716_v19 = vadd.f32 %v4715_v61, %v9334_v33 }
 0x7dc   : > { %v4717_v22 = vpop.f32.mrf.mxu0  ;;  %v4830_v13 = vpop.f32.mrf.mxu1 }
 0x7dd   : > { %v5184_v44 = vmax.f32 %v5183_v39, %v5127_v47  ;;  %v5128_v57 = vmax.f32 %v4827_v59, 0.0  ;;  %v4829_v21 = vadd.f32 %v4828_v17, %v4716_v19  ;;  %v4718_v26 = vadd.f32 %v4717_v22, %v9338_v6 }
 0x7de   : > { %v4721_v37 = vpop.f32.mrf.mxu0  ;;  %v4834_v51 = vpop.f32.mrf.mxu1 }
 0x7df   : > { %v5205_v46 = vmax.f32 %v5204_v20, %v5128_v57  ;;  %v5131_v16 = vmax.f32 %v4829_v21, 0.0  ;;  %v4831_v45 = vadd.f32 %v4830_v13, %v4718_v26  ;;  %v4722_v56 = vadd.f32 %v4721_v37, %v9334_v33 }
 0x7e0   : > { %v4723_v31 = vpop.f32.mrf.mxu0  ;;  %v4836_v49 = vpop.f32.mrf.mxu1 }
 0x7e1   : > { %v5185_v24 = vmax.f32 %v5184_v44, %v5131_v16  ;;  %v5132_v52 = vmax.f32 %v4831_v45, 0.0  ;;  %v4835_v14 = vadd.f32 %v4834_v51, %v4722_v56  ;;  %v4724_v43 = vadd.f32 %v4723_v31, %v9338_v6 }
 0x7e2   : > { %v4725_v30 = vpop.f32.mrf.mxu0  ;;  %v4838_v48 = vpop.f32.mrf.mxu1 }
 0x7e3   : > { %v5206_v55 = vmax.f32 %v5205_v46, %v5132_v52  ;;  %v5135_v1 = vmax.f32 %v4835_v14, 0.0  ;;  %v4837_v32 = vadd.f32 %v4836_v49, %v4724_v43  ;;  %v4726_v0 = vadd.f32 %v4725_v30, %v9334_v33 }
 0x7e4   : > { %v4727_v50 = vpop.f32.mrf.mxu0  ;;  %v4840_v58 = vpop.f32.mrf.mxu1 }
 0x7e5   : > { %v5186_v7 = vmax.f32 %v5185_v24, %v5135_v1  ;;  %v5136_v9 = vmax.f32 %v4837_v32, 0.0  ;;  %v4839_v53 = vadd.f32 %v4838_v48, %v4726_v0  ;;  %v4728_v4 = vadd.f32 %v4727_v50, %v9338_v6 }
 0x7e6   : > { %v4731_v62 = vpop.f32.mrf.mxu0  ;;  %v4844_v42 = vpop.f32.mrf.mxu1 }
 0x7e7   : > { %v5207_v18 = vmax.f32 %v5206_v55, %v5136_v9  ;;  %v5139_v35 = vmax.f32 %v4839_v53, 0.0  ;;  %v4841_v40 = vadd.f32 %v4840_v58, %v4728_v4  ;;  %v4732_v34 = vadd.f32 %v4731_v62, %v9334_v33 }
 0x7e8   : > { %v4733_v5 = vpop.f32.mrf.mxu0  ;;  %v4846_v12 = vpop.f32.mrf.mxu1 }
 0x7e9   : > { %v5187_v15 = vmax.f32 %v5186_v7, %v5139_v35  ;;  %v5140_v41 = vmax.f32 %v4841_v40, 0.0  ;;  %v4845_v25 = vadd.f32 %v4844_v42, %v4732_v34  ;;  %v4734_v3 = vadd.f32 %v4733_v5, %v9338_v6 }
 0x7ea   : > { %v4735_v63 = vpop.f32.mrf.mxu0  ;;  %v4848_v29 = vpop.f32.mrf.mxu1 }
 0x7eb   : > { %v5208_v8 = vmax.f32 %v5207_v18, %v5140_v41  ;;  %v5143_v28 = vmax.f32 %v4845_v25, 0.0  ;;  %v4847_v11 = vadd.f32 %v4846_v12, %v4734_v3  ;;  %v4736_v23 = vadd.f32 %v4735_v63, %v9334_v33 }
 0x7ec   : > { %v4737_v39 = vpop.f32.mrf.mxu0  ;;  %v4850_v38 = vpop.f32.mrf.mxu1 }
 0x7ed   : > { %v5188_v2 = vmax.f32 %v5187_v15, %v5143_v28  ;;  %v5144_v27 = vmax.f32 %v4847_v11, 0.0  ;;  %v4849_v61 = vadd.f32 %v4848_v29, %v4736_v23  ;;  %v4738_v17 = vadd.f32 %v4737_v39, %v9338_v6 }
 0x7ee   : > { %v4741_v20 = vpop.f32.mrf.mxu0  ;;  %v4854_v47 = vpop.f32.mrf.mxu1 }
 0x7ef   : > { %v5209_v59 = vmax.f32 %v5208_v8, %v5144_v27  ;;  %v5147_v19 = vmax.f32 %v4849_v61, 0.0  ;;  %v4851_v22 = vadd.f32 %v4850_v38, %v4738_v17  ;;  %v4742_v13 = vadd.f32 %v4741_v20, %v9334_v33 }
 0x7f0   : > { %v4743_v44 = vpop.f32.mrf.mxu0  ;;  %v4856_v57 = vpop.f32.mrf.mxu1 }
 0x7f1   : > { %v5189_v21 = vmax.f32 %v5188_v2, %v5147_v19  ;;  %v5148_v26 = vmax.f32 %v4851_v22, 0.0  ;;  %v4855_v37 = vadd.f32 %v4854_v47, %v4742_v13  ;;  %v4744_v51 = vadd.f32 %v4743_v44, %v9338_v6 }
 0x7f2   : > { %v4745_v46 = vpop.f32.mrf.mxu0  ;;  %v4858_v16 = vpop.f32.mrf.mxu1 }
 0x7f3   : > { %v5210_v45 = vmax.f32 %v5209_v59, %v5148_v26  ;;  %v5151_v56 = vmax.f32 %v4855_v37, 0.0  ;;  %v4857_v31 = vadd.f32 %v4856_v57, %v4744_v51  ;;  %v4746_v49 = vadd.f32 %v4745_v46, %v9334_v33 }
 0x7f4   : > { %v4747_v24 = vpop.f32.mrf.mxu0  ;;  %v4860_v52 = vpop.f32.mrf.mxu1 }
 0x7f5   : > { %v5190_v14 = vmax.f32 %v5189_v21, %v5151_v56  ;;  %v5152_v43 = vmax.f32 %v4857_v31, 0.0  ;;  %v4859_v30 = vadd.f32 %v4858_v16, %v4746_v49  ;;  %v4748_v48 = vadd.f32 %v4747_v24, %v9338_v6 }
 0x7f6   : > { %v4751_v55 = vpop.f32.mrf.mxu0  ;;  %v4864_v1 = vpop.f32.mrf.mxu1 }
 0x7f7   : > { %v5211_v32 = vmax.f32 %v5210_v45, %v5152_v43  ;;  %v5155_v0 = vmax.f32 %v4859_v30, 0.0  ;;  %v4861_v50 = vadd.f32 %v4860_v52, %v4748_v48  ;;  %v4752_v58 = vadd.f32 %v4751_v55, %v9334_v33 }
 0x7f8   : > { %v4753_v7 = vpop.f32.mrf.mxu0  ;;  %v4866_v9 = vpop.f32.mrf.mxu1 }
 0x7f9   : > { %v5191_v53 = vmax.f32 %v5190_v14, %v5155_v0  ;;  %v5156_v4 = vmax.f32 %v4861_v50, 0.0  ;;  %v4865_v62 = vadd.f32 %v4864_v1, %v4752_v58  ;;  %v4754_v42 = vadd.f32 %v4753_v7, %v9338_v6 }
 0x7fa   : > { %v4755_v18 = vpop.f32.mrf.mxu0  ;;  %v4868_v35 = vpop.f32.mrf.mxu1 }
 0x7fb   : > { %v5212_v40 = vmax.f32 %v5211_v32, %v5156_v4  ;;  %v5159_v34 = vmax.f32 %v4865_v62, 0.0  ;;  %v4867_v5 = vadd.f32 %v4866_v9, %v4754_v42  ;;  %v4756_v12 = vadd.f32 %v4755_v18, %v9334_v33 }
 0x7fc   : > { %v4757_v15 = vpop.f32.mrf.mxu0  ;;  %v4870_v41 = vpop.f32.mrf.mxu1 }
 0x7fd   : > { %v5192_v25 = vmax.f32 %v5191_v53, %v5159_v34  ;;  %v5160_v3 = vmax.f32 %v4867_v5, 0.0  ;;  %v4869_v63 = vadd.f32 %v4868_v35, %v4756_v12  ;;  %v4758_v29 = vadd.f32 %v4757_v15, %v9338_v6 }
 0x7fe   : > { %v4761_v8 = vpop.f32.mrf.mxu0  ;;  %v4874_v28 = vpop.f32.mrf.mxu1 }
 0x7ff   : > { %v5213_v11 = vmax.f32 %v5212_v40, %v5160_v3  ;;  %v5163_v23 = vmax.f32 %v4869_v63, 0.0  ;;  %v4871_v39 = vadd.f32 %v4870_v41, %v4758_v29  ;;  %v4762_v38 = vadd.f32 %v4761_v8, %v9334_v33 }
 0x800   : > { %v4763_v2 = vpop.f32.mrf.mxu0  ;;  %v4876_v27 = vpop.f32.mrf.mxu1 }
 0x801   : > { %v5193_v61 = vmax.f32 %v5192_v25, %v5163_v23  ;;  %v5164_v17 = vmax.f32 %v4871_v39, 0.0  ;;  %v4875_v20 = vadd.f32 %v4874_v28, %v4762_v38  ;;  %v4764_v47 = vadd.f32 %v4763_v2, %v9338_v6 }
 0x802   : > { %v4765_v59 = vpop.f32.mrf.mxu0  ;;  %v4878_v19 = vpop.f32.mrf.mxu1 }
 0x803   : > { %v5214_v22 = vmax.f32 %v5213_v11, %v5164_v17  ;;  %v5167_v13 = vmax.f32 %v4875_v20, 0.0  ;;  %v4877_v44 = vadd.f32 %v4876_v27, %v4764_v47  ;;  %v4766_v57 = vadd.f32 %v4765_v59, %v9334_v33 }
 0x804   : > { %v4767_v21 = vpop.f32.mrf.mxu0  ;;  %v4880_v26 = vpop.f32.mrf.mxu1 }
 0x805   : > { %v5194_v37 = vmax.f32 %v5193_v61, %v5167_v13  ;;  %v5168_v51 = vmax.f32 %v4877_v44, 0.0  ;;  %v4879_v46 = vadd.f32 %v4878_v19, %v4766_v57  ;;  %v4768_v16 = vadd.f32 %v4767_v21, %v9338_v6 }
 0x806   : > { %v4771_v45 = vpop.f32.mrf.mxu0  ;;  %v4884_v56 = vpop.f32.mrf.mxu1 }
 0x807   : > { %v5215_v31 = vmax.f32 %v5214_v22, %v5168_v51  ;;  %v5171_v49 = vmax.f32 %v4879_v46, 0.0  ;;  %v4881_v24 = vadd.f32 %v4880_v26, %v4768_v16  ;;  %v4772_v52 = vadd.f32 %v4771_v45, %v9334_v33 }
 0x808   : > { %v4773_v14 = vpop.f32.mrf.mxu0  ;;  %v4886_v43 = vpop.f32.mrf.mxu1 }
 0x809   : > { %v5195_v30 = vmax.f32 %v5194_v37, %v5171_v49  ;;  %v5172_v48 = vmax.f32 %v4881_v24, 0.0  ;;  %v4885_v55 = vadd.f32 %v4884_v56, %v4772_v52  ;;  %v4774_v1 = vadd.f32 %v4773_v14, %v9338_v6 }
 0x80a   : > { %v4775_v32 = vpop.f32.mrf.mxu0  ;;  %v4888_v0 = vpop.f32.mrf.mxu1  ;;  %v9380_v24 = vrot.slane %v9330_v60, %v9081_v54 }
 0x80b   : > { %v5216_v50 = vmax.f32 %v5215_v31, %v5172_v48  ;;  %v5175_v58 = vmax.f32 %v4885_v55, 0.0  ;;  %v4887_v7 = vadd.f32 %v4886_v43, %v4774_v1  ;;  %v4776_v9 = vadd.f32 %v4775_v32, %v9334_v33 }
 0x80c   : > { %v4777_v53 = vpop.f32.mrf.mxu0  ;;  %v4890_v4 = vpop.f32.mrf.mxu1  ;;  %v9384_v43 = vrot.slane %v9330_v60, %v9084_v36 }
 0x80d   : > { %v5196_v62 = vmax.f32 %v5195_v30, %v5175_v58  ;;  %v5176_v42 = vmax.f32 %v4887_v7, 0.0  ;;  %v4889_v18 = vadd.f32 %v4888_v0, %v4776_v9  ;;  %v4778_v35 = vadd.f32 %v4777_v53, %v9338_v6 }
 0x80e   : > { %v4927_v40 = vpop.f32.mrf.mxu0 }
 0x80f   : > { %v5217_v34 = vmax.f32 %v5216_v50, %v5176_v42  ;;  %v5179_v5 = vmax.f32 %v4889_v18, 0.0  ;;  %v4891_v12 = vadd.f32 %v4890_v4, %v4778_v35  ;;  %v5040_v15 = vpop.f32.mrf.mxu1  ;;  %v4928_v1 = vadd.f32 %v4927_v40, %v9380_v24 }
 0x810   : > { %v4929_v41 = vpop.f32.mrf.mxu0 }
 0x811   : > { %v5197_v25 = vmax.f32 %v5196_v62, %v5179_v5  ;;  %v5180_v3 = vmax.f32 %v4891_v12, 0.0  ;;  %v5042_v63 = vpop.f32.mrf.mxu1  ;;  %v4930_v7 = vadd.f32 %v4929_v41, %v9384_v43  ;;  %v5041_v42 = vadd.f32 %v5040_v15, %v4928_v1 }
 0x812   : > { %v4931_v29 = vpop.f32.mrf.mxu0 }
 0x813   : > { %v5198_v8 = vrot.slane %v5197_v25, 4  ;;  %v5218_v28 = vmax.f32 %v5217_v34, %v5180_v3  ;;  %v5044_v33 = vpop.f32.mrf.mxu1  ;;  %v4932_v48 = vadd.f32 %v4931_v29, %v9380_v24 }
 0x814   : > { %v4933_v11 = vpop.f32.mrf.mxu0 }
 0x815   : > { %v5199_v23 = vmax.f32 %v5197_v25, %v5198_v8  ;;  %v5219_v39 = vrot.slane %v5218_v28, 4  ;;  %v5046_v38 = vpop.f32.mrf.mxu1  ;;  %v4934_v0 = vadd.f32 %v4933_v11, %v9384_v43  ;;  %v5045_v53 = vadd.f32 %v5044_v33, %v4932_v48 }
 0x816   : > { %v4937_v2 = vpop.f32.mrf.mxu0  ;;  %v5043_v25 = vadd.f32 %v5042_v63, %v4930_v7  ;;  %v5121_v11 = vmax.f32 %v5041_v42, 0.0 }
 0x817   : > { %v5200_v27 = vrot.slane %v5199_v23, 2  ;;  %v5220_v6 = vmax.f32 %v5218_v28, %v5219_v39  ;;  %v5050_v61 = vpop.f32.mrf.mxu1  ;;  %v4938_v50 = vadd.f32 %v4937_v2, %v9380_v24  ;;  %v5047_v35 = vadd.f32 %v5046_v38, %v4934_v0 }
 0x818   : > { %v4939_v17 = vpop.f32.mrf.mxu0  ;;  %v5125_v29 = vmax.f32 %v5045_v53, 0.0 }
 0x819   : > { %v5201_v20 = vmax.f32 %v5199_v23, %v5200_v27  ;;  %v5221_v47 = vrot.slane %v5220_v6, 2  ;;  %v5052_v59 = vpop.f32.mrf.mxu1  ;;  %v4940_v4 = vadd.f32 %v4939_v17, %v9384_v43  ;;  %v5051_v34 = vadd.f32 %v5050_v61, %v4938_v50 }
 0x81a   : > { %v4941_v19 = vpop.f32.mrf.mxu0  ;;  %v5126_v39 = vmax.f32 %v5047_v35, 0.0  ;;  %v5122_v61 = vmax.f32 %v5043_v25, 0.0 }
 0x81b   : > { %v5202_v22 = vrot.slane %v5201_v20, 1  ;;  %v5222_v13 = vmax.f32 %v5220_v6, %v5221_v47  ;;  %v5054_v44 = vpop.f32.mrf.mxu1  ;;  %v4942_v60 = vadd.f32 %v4941_v19, %v9380_v24  ;;  %v5053_v41 = vadd.f32 %v5052_v59, %v4940_v4 }
 0x81c   : > { %v4943_v57 = vpop.f32.mrf.mxu0  ;;  %v5129_v38 = vmax.f32 %v5051_v34, 0.0  ;;  %v5225_v47 = vmax.f32 %v5121_v11, %v5125_v29 }
 0x81d   : > { %v5223_v21 = vrot.slane %v5222_v13, 1  ;;  %v5056_v26 = vpop.f32.mrf.mxu1  ;;  %v9372_v51 = vmax.f32 %v5201_v20, %v5202_v22  ;;  %v4944_v40 = vadd.f32 %v4943_v57, %v9384_v43  ;;  %v5055_v8 = vadd.f32 %v5054_v44, %v4942_v60 }
 0x81e   : > { %v4947_v37 = vpop.f32.mrf.mxu0  ;;  %v5130_v59 = vmax.f32 %v5053_v41, 0.0 }
 0x81f   : > { %v9374_v46 = vmax.f32 %v5222_v13, %v5223_v21  ;;  %v5060_v16 = vpop.f32.mrf.mxu1  ;;  %v4948_v5 = vadd.f32 %v4947_v37, %v9380_v24  ;;  %v5057_v2 = vadd.f32 %v5056_v26, %v4944_v40  ;;  %v5133_v19 = vmax.f32 %v5055_v8, 0.0 }
 0x820   : > { %v4949_v45 = vpop.f32.mrf.mxu0  ;;  %v5246_v26 = vmax.f32 %v5122_v61, %v5126_v39 }
 0x821   : > { %v5271_v56 = vcombine.low %v9372_v51, %v9374_v46  ;;  %v5062_v31 = vpop.f32.mrf.mxu1  ;;  %v4950_v28 = vadd.f32 %v4949_v45, %v9384_v43  ;;  %v5061_v27 = vadd.f32 %v5060_v16, %v4948_v5  ;;  %v5226_v16 = vmax.f32 %v5225_v47, %v5129_v38 }
 0x822   : > { %v4951_v49 = vpop.f32.mrf.mxu0  ;;  %v5134_v45 = vmax.f32 %v5057_v2, 0.0 }
 0x823   : > { %v5064_v52 = vpop.f32.mrf.mxu1  ;;  %v4952_v23 = vadd.f32 %v4951_v49, %v9380_v24  ;;  %v5063_v22 = vadd.f32 %v5062_v31, %v4950_v28  ;;  %v5137_v49 = vmax.f32 %v5061_v27, 0.0  ;;  %v5247_v31 = vmax.f32 %v5246_v26, %v5130_v59 }
 0x824   : > { %v4953_v14 = vpop.f32.mrf.mxu0  ;;  %v5227_v7 = vmax.f32 %v5226_v16, %v5133_v19 }
 0x825   : > { %v5066_v30 = vpop.f32.mrf.mxu1  ;;  %v4954_v17 = vadd.f32 %v4953_v14, %v9384_v43  ;;  %v5065_v44 = vadd.f32 %v5064_v52, %v4952_v23  ;;  %v5138_v52 = vmax.f32 %v5063_v22, 0.0  ;;  %v5248_v35 = vmax.f32 %v5247_v31, %v5134_v45 }
 0x826   : > { %v4957_v55 = vpop.f32.mrf.mxu0  ;;  %v5228_v34 = vmax.f32 %v5227_v7, %v5137_v49 }
 0x827   : > { %v5070_v32 = vpop.f32.mrf.mxu1  ;;  %v4958_v63 = vadd.f32 %v4957_v55, %v9380_v24  ;;  %v5067_v14 = vadd.f32 %v5066_v30, %v4954_v17  ;;  %v5249_v41 = vmax.f32 %v5248_v35, %v5138_v52 }
 0x828   : > { %v4959_v58 = vpop.f32.mrf.mxu0 }
 0x829   : > { %v5072_v9 = vpop.f32.mrf.mxu1  ;;  %v4960_v57 = vadd.f32 %v4959_v58, %v9384_v43  ;;  %v5071_v1 = vadd.f32 %v5070_v32, %v4958_v63  ;;  %v5141_v58 = vmax.f32 %v5065_v44, 0.0  ;;  %v5142_v40 = vmax.f32 %v5067_v14, 0.0 }
 0x82a   : > { %v4961_v62 = vpop.f32.mrf.mxu0 }
 0x82b   : > { %v5074_v18 = vpop.f32.mrf.mxu1  ;;  %v4962_v21 = vadd.f32 %v4961_v62, %v9380_v24  ;;  %v5073_v4 = vadd.f32 %v5072_v9, %v4960_v57  ;;  %v5145_v5 = vmax.f32 %v5071_v1, 0.0 }
 0x82c   : > { %v4963_v12 = vpop.f32.mrf.mxu0 }
 0x82d   : > { %v5076_v3 = vpop.f32.mrf.mxu1  ;;  %v4964_v55 = vadd.f32 %v4963_v12, %v9384_v43  ;;  %v5075_v60 = vadd.f32 %v5074_v18, %v4962_v21  ;;  %v5229_v18 = vmax.f32 %v5228_v34, %v5141_v58 }
 0x82e   : > { %v4967_v33 = vpop.f32.mrf.mxu0 }
 0x82f   : > { %v5080_v15 = vpop.f32.mrf.mxu1  ;;  %v4968_v0 = vadd.f32 %v4967_v33, %v9380_v24  ;;  %v5077_v12 = vadd.f32 %v5076_v3, %v4964_v55  ;;  %v5146_v33 = vmax.f32 %v5073_v4, 0.0  ;;  %v5149_v11 = vmax.f32 %v5075_v60, 0.0 }
 0x830   : > { %v4969_v6 = vpop.f32.mrf.mxu0  ;;  %v5250_v3 = vmax.f32 %v5249_v41, %v5142_v40 }
 0x831   : > { %v5082_v20 = vpop.f32.mrf.mxu1  ;;  %v4970_v62 = vadd.f32 %v4969_v6, %v9384_v43  ;;  %v5081_v25 = vadd.f32 %v5080_v15, %v4968_v0  ;;  %v5230_v15 = vmax.f32 %v5229_v18, %v5145_v5  ;;  %v5150_v61 = vmax.f32 %v5077_v12, 0.0 }
 0x832   : > { %v4971_v13 = vpop.f32.mrf.mxu0 }
 0x833   : > { %v5084_v37 = vpop.f32.mrf.mxu1  ;;  %v4972_v30 = vadd.f32 %v4971_v13, %v9380_v24  ;;  %v5083_v23 = vadd.f32 %v5082_v20, %v4970_v62  ;;  %v5153_v17 = vmax.f32 %v5081_v25, 0.0  ;;  %v5251_v13 = vmax.f32 %v5250_v3, %v5146_v33 }
 0x834   : > { %v4973_v48 = vpop.f32.mrf.mxu0  ;;  %v5231_v44 = vmax.f32 %v5230_v15, %v5149_v11 }
 0x835   : > { %v5086_v50 = vpop.f32.mrf.mxu1  ;;  %v4974_v8 = vadd.f32 %v4973_v48, %v9384_v43  ;;  %v5085_v38 = vadd.f32 %v5084_v37, %v4972_v30  ;;  %v5154_v20 = vmax.f32 %v5083_v23, 0.0  ;;  %v5252_v49 = vmax.f32 %v5251_v13, %v5150_v61 }
 0x836   : > { %v4977_v53 = vpop.f32.mrf.mxu0  ;;  %v5232_v48 = vmax.f32 %v5231_v44, %v5153_v17 }
 0x837   : > { %v5090_v42 = vpop.f32.mrf.mxu1  ;;  %v4978_v28 = vadd.f32 %v4977_v53, %v9380_v24  ;;  %v5087_v47 = vadd.f32 %v5086_v50, %v4974_v8  ;;  %v5157_v37 = vmax.f32 %v5085_v38, 0.0  ;;  %v5253_v52 = vmax.f32 %v5252_v49, %v5154_v20 }
 0x838   : > { %v4979_v32 = vpop.f32.mrf.mxu0 }
 0x839   : > { %v5092_v29 = vpop.f32.mrf.mxu1  ;;  %v4980_v2 = vadd.f32 %v4979_v32, %v9384_v43  ;;  %v5091_v59 = vadd.f32 %v5090_v42, %v4978_v28  ;;  %v5158_v55 = vmax.f32 %v5087_v47, 0.0  ;;  %v5233_v4 = vmax.f32 %v5232_v48, %v5157_v37 }
 0x83a   : > { %v4981_v9 = vpop.f32.mrf.mxu0 }
 0x83b   : > { %v5094_v39 = vpop.f32.mrf.mxu1  ;;  %v4982_v27 = vadd.f32 %v4981_v9, %v9380_v24  ;;  %v5093_v26 = vadd.f32 %v5092_v29, %v4980_v2  ;;  %v5161_v0 = vmax.f32 %v5091_v59, 0.0  ;;  %v5254_v40 = vmax.f32 %v5253_v52, %v5158_v55 }
 0x83c   : > { %v4983_v6 = vpop.f32.mrf.mxu0 }
 0x83d   : > { %v5096_v63 = vpop.f32.mrf.mxu1  ;;  %v4984_v19 = vadd.f32 %v4983_v6, %v9384_v43  ;;  %v5095_v16 = vadd.f32 %v5094_v39, %v4982_v27  ;;  %v5162_v60 = vmax.f32 %v5093_v26, 0.0  ;;  %v5234_v5 = vmax.f32 %v5233_v4, %v5161_v0 }
 0x83e   : > { %v4987_v22 = vpop.f32.mrf.mxu0 }
 0x83f   : > { %v4988_v57 = vadd.f32 %v4987_v22, %v9380_v24  ;;  %v5100_v21 = vpop.f32.mrf.mxu1  ;;  %v5097_v50 = vadd.f32 %v5096_v63, %v4984_v19  ;;  %v5165_v62 = vmax.f32 %v5095_v16, 0.0  ;;  %v5255_v9 = vmax.f32 %v5254_v40, %v5162_v60 }
 0x840   : > { %v4989_v45 = vpop.f32.mrf.mxu0 }
 0x841   : > { %v4990_v14 = vadd.f32 %v4989_v45, %v9384_v43  ;;  %v5102_v1 = vpop.f32.mrf.mxu1  ;;  %v5101_v31 = vadd.f32 %v5100_v21, %v4988_v57  ;;  %v5166_v12 = vmax.f32 %v5097_v50, 0.0  ;;  %v5235_v18 = vmax.f32 %v5234_v5, %v5165_v62 }
 0x842   : > { %v4991_v7 = vpop.f32.mrf.mxu0  ;;  %v5279_v62 = vrot.slane %v5271_v56, %v9066_v10 }
 0x843   : > { %v4992_v53 = vadd.f32 %v4991_v7, %v9380_v24  ;;  %v5104_v58 = vpop.f32.mrf.mxu1  ;;  %v5103_v42 = vadd.f32 %v5102_v1, %v4990_v14  ;;  %v5169_v25 = vmax.f32 %v5101_v31, 0.0  ;;  %v5256_v27 = vmax.f32 %v5255_v9, %v5166_v12 }
 0x844   : > { %v4993_v35 = vpop.f32.mrf.mxu0 }
 0x845   : > { %v5105_v34 = vadd.f32 %v5104_v58, %v4992_v53  ;;  %v4994_v30 = vadd.f32 %v4993_v35, %v9384_v43  ;;  %v5106_v32 = vpop.f32.mrf.mxu1  ;;  %v5170_v33 = vmax.f32 %v5103_v42, 0.0  ;;  %v5236_v6 = vmax.f32 %v5235_v18, %v5169_v25 }
 0x846   : > { %v4997_v29 = vpop.f32.mrf.mxu0 }
 0x847   : > { %v5107_v41 = vadd.f32 %v5106_v32, %v4994_v30  ;;  %v4998_v8 = vadd.f32 %v4997_v29, %v9380_v24  ;;  %v5110_v28 = vpop.f32.mrf.mxu1  ;;  %v5173_v23 = vmax.f32 %v5105_v34, 0.0  ;;  %v5257_v59 = vmax.f32 %v5256_v27, %v5170_v33 }
 0x848   : > { %v4999_v11 = vpop.f32.mrf.mxu0  ;;  %v9673_v34 = vlaneseq }
 0x849   : > { %v5111_v39 = vadd.f32 %v5110_v28, %v4998_v8  ;;  %v5000_v38 = vadd.f32 %v4999_v11, %v9384_v43  ;;  %v5112_v2 = vpop.f32.mrf.mxu1  ;;  %v5174_v15 = vmax.f32 %v5107_v41, 0.0  ;;  %v5237_v22 = vmax.f32 %v5236_v6, %v5173_v23 }
 0x84a   : > { %v5001_v3 = vpop.f32.mrf.mxu0  ;;  %vm5298_vm5 = vcmp.lt.s32.totalorder %v9673_v34, 512 }
 0x84b   : > { %v5177_v61 = vmax.f32 %v5111_v39, 0.0  ;;  %v5113_v17 = vadd.f32 %v5112_v2, %v5000_v38  ;;  %v5002_v63 = vadd.f32 %v5001_v3, %v9380_v24  ;;  %v5114_v47 = vpop.f32.mrf.mxu1  ;;  %v5258_v21 = vmax.f32 %v5257_v59, %v5174_v15 }
 0x84c   : > { %v5003_v19 = vpop.f32.mrf.mxu0 }
 0x84d   : > { %v5178_v13 = vmax.f32 %v5113_v17, 0.0  ;;  %v5115_v44 = vadd.f32 %v5114_v47, %v5002_v63  ;;  %v5004_v20 = vadd.f32 %v5003_v19, %v9384_v43  ;;  %v5116_v57 = vpop.f32.mrf.mxu1  ;;  %v5238_v37 = vmax.f32 %v5237_v22, %v5177_v61 }
 0x84f   : > { %v5181_v26 = vmax.f32 %v5115_v44, 0.0  ;;  %v5117_v16 = vadd.f32 %v5116_v57, %v5004_v20  ;;  %v5259_v45 = vmax.f32 %v5258_v21, %v5178_v13 }
 0x851   : > { %v5239_v49 = vmax.f32 %v5238_v37, %v5181_v26  ;;  %v5182_v48 = vmax.f32 %v5117_v16, 0.0 }
 0x853   : > { %v5240_v14 = vrot.slane %v5239_v49, 4  ;;  %v5260_v1 = vmax.f32 %v5259_v45, %v5182_v48 }
 0x855   : > { %v5241_v55 = vmax.f32 %v5239_v49, %v5240_v14  ;;  %v5261_v24 = vrot.slane %v5260_v1, 4 }
 0x857   : > { %v5242_v0 = vrot.slane %v5241_v55, 2  ;;  %v5262_v50 = vmax.f32 %v5260_v1, %v5261_v24 }
 0x859   : > { %v5243_v31 = vmax.f32 %v5241_v55, %v5242_v0  ;;  %v5263_v7 = vrot.slane %v5262_v50, 2 }
 0x85b   : > { %v5244_v52 = vrot.slane %v5243_v31, 1  ;;  %v5264_v53 = vmax.f32 %v5262_v50, %v5263_v7 }
 0x85d   : > { %v5265_v43 = vrot.slane %v5264_v53, 1  ;;  %v5245_v58 = vmax.f32 %v5243_v31, %v5244_v52 }
 0x85f   : > { %v5266_v4 = vmax.f32 %v5264_v53, %v5265_v43 }
 0x861   : > { %v5272_v60 = vcombine.low %v5245_v58, %v5266_v4 }
 0x863   : > { %v5286_v42 = vrot.slane %v5272_v60, %v9066_v10 }
 0x865   : > { %v5287_v35 = vcombine.low %v5279_v62, %v5286_v42  ;;  %3342 = sbr.rel (!%p3340_p13) target bundleno = 1582 (0x62e), region = 264 }
 0x867   : > { %v5294_v30 = vrot.slane %v5287_v35, %v9066_v10 }
 0x869   : > { %5301 = vst.msk [vmem:[%s5300_s20] ss:$2 sm:$0xf] %vm5298_vm5, %v5294_v30 }
 0x86a   :  { %6494 = shalt.err (!%p6491_p4)
}
 0x86b   :  { %5311 = dma.vmem_to_hbm [thread:$0]  %s5309_s9, 128, %s9450_s18, [#allocation14]  }
 0x86c   :  { %6529 = dma.done.wait [#allocation14], 128  }
 0x86d   :  { %6530 = vsyncadd [#allocation14], 4294967168 }
 0x86e   :  { %5315 = vsyncpa [#allocation13], 1 }
 0x86f   :  { %5316 = vsyncpa [#allocation16], 1 }
 0x870   :  { %5317 = vsyncpa [#allocation19], 1 }
 0x871   :  { %5318 = vsyncpa [#allocation22], 1 }
 0x872   :  { %5319 = vsyncpa [#allocation14], 1 }
 0x873   :  { %5320 = vsyncmov [#allocation7] }
 0x876   :  { %s5321_s10 = vpop.sfrf %5320 }
 0x877   :  { %p5754_p5 = scmp.ne.s32.totalorder %s5321_s10, 0 }
 0x879   :  { %5325 = shalt.err (%p5754_p5)  }
 0x87a   :  { %5327 = vsyncmov [#allocation7 + $0x1] }
 0x87d   :  { %s5328_s17 = vpop.sfrf %5327 }
 0x87e   :  { %p5755_p6 = scmp.ne.s32.totalorder %s5328_s17, 0 }
 0x880   :  { %5332 = shalt.err (%p5755_p6)  }
 0x881   :  { %5334 = vsyncmov [#allocation7 + $0x2] }
 0x884   :  { %s5335_s7 = vpop.sfrf %5334 }
 0x885   :  { %p5756_p7 = scmp.ne.s32.totalorder %s5335_s7, 0 }
 0x887   :  { %5339 = shalt.err (%p5756_p7)  }
 0x888   :  { %5341 = vsyncmov [#allocation7 + $0x3] }
 0x88b   :  { %s5342_s18 = vpop.sfrf %5341 }
 0x88c   :  { %p5757_p8 = scmp.ne.s32.totalorder %s5342_s18, 0 }
 0x88e   :  { %5346 = shalt.err (%p5757_p8)  }
 0x88f   :  { %5348 = vsyncmov [#allocation7 + $0x4] }
 0x892   :  { %s5349_s22 = vpop.sfrf %5348 }
 0x893   :  { %p5758_p9 = scmp.ne.s32.totalorder %s5349_s22, 0 }
 0x895   :  { %5353 = shalt.err (%p5758_p9)  }

</bundles_post_ra>
